<compile_context>
chip_gen: v7x
topology: tpu7x:2x2x1
jax: 0.10.0
libtpu: 0.0.40
codegen_flags: <defaults>
</compile_context>

<pallas_src>
import functools

import jax
import jax.numpy as jnp
from jax.experimental import pallas as pl
from jax.experimental.pallas import tpu as pltpu

MXU_LANES = 128


def _bf16_round(x):
    return x.astype(jnp.bfloat16).astype(jnp.float32)


# ----------------------------- XLA-side helpers ------------------------------

def _im2col3x3(x):
    """(B, H, W, C) -> (B, (H-2)*(W-2), 9*C), column order (dy, dx, cin)."""
    B, H, W, C = x.shape
    Ho, Wo = H - 2, W - 2
    cols = []
    for dy in range(3):
        for dx in range(3):
            cols.append(x[:, dy:dy + Ho, dx:dx + Wo, :].reshape(B, Ho * Wo, C))
    return jnp.concatenate(cols, axis=-1)


def _fold_batch(p, nsteps, bb):
    """(nsteps*bb, M, K) -> (nsteps, M, bb*K): batch slots interleaved along K."""
    _, M, K = p.shape
    return (p.reshape(nsteps, bb, M, K)
             .transpose(0, 2, 1, 3)
             .reshape(nsteps, M, bb * K))


# --------------------------------- kernel ------------------------------------

def _run_fused(zp, xp, fp, spatial):
    """zp: (S, Mk, K) bf16 template patches; xp: (S, Ms, K) bf16 search patches."""
    Hk, Wk, Hs, Ws = spatial
    Ho, Wo = Hs - Hk + 1, Ws - Wk + 1
    S, Mk, K = zp.shape
    _, Ms, _ = xp.shape
    LANE = fp['w1'].shape[0]
    MO = Ho * Wo
    M_PAD = -(-MO // 8) * 8          # pad output rows to a sublane multiple

    def kernel(zp_ref, xp_ref, w_ref, w1_ref, w2_ref, vp_ref, out_ref):
        vp = vp_ref[...]                              # (8, LANE) f32
        kbias, sbias, b1, b2 = vp[0:1], vp[1:2], vp[2:3], vp[3:4]

        # 3x3 conv == one im2col matmul per image (BN scale already folded
        # into the bf16 weights); bias + ReLU in f32.
        kfeat = jnp.maximum(
            jnp.dot(zp_ref[0], w_ref[0], preferred_element_type=jnp.float32)
            + kbias, 0.0)                             # (Mk, LANE) f32
        sfeat = jnp.maximum(
            jnp.dot(xp_ref[0], w_ref[1], preferred_element_type=jnp.float32)
            + sbias, 0.0)                             # (Ms, LANE) f32

        # Depthwise valid xcorr at full 128-lane occupancy (batch slots and
        # both branches share the lane axis).
        kf3 = kfeat.reshape(Hk, Wk, LANE)
        sf3 = sfeat.reshape(Hs, Ws, LANE)
        acc = jnp.zeros((Ho, Wo, LANE), jnp.float32)
        for p in range(Hk):
            for q in range(Wk):
                acc = acc + sf3[p:p + Ho, q:q + Wo, :] * kf3[p, q, :]

        # Head: two 1x1 convs == two matmuls (block-diag per branch & slot).
        f2 = acc.reshape(MO, LANE).astype(jnp.bfloat16)
        h = jnp.maximum(
            jnp.dot(f2, w1_ref[...], preferred_element_type=jnp.float32) + b1,
            0.0)
        o = jnp.dot(h.astype(jnp.bfloat16), w2_ref[...],
                    preferred_element_type=jnp.float32) + b2
        o = o.astype(out_ref.dtype)
        if M_PAD > MO:                                # unmasked, dense store
            o = jnp.concatenate(
                [o, jnp.zeros((M_PAD - MO, LANE), out_ref.dtype)], axis=0)
        out_ref[0] = o

    out = pl.pallas_call(
        kernel,
        out_shape=jax.ShapeDtypeStruct((S, M_PAD, LANE), jnp.bfloat16),
        grid=(S,),
        in_specs=[
            pl.BlockSpec((1, Mk, K), lambda s: (s, 0, 0)),
            pl.BlockSpec((1, Ms, K), lambda s: (s, 0, 0)),
            pl.BlockSpec(fp['wstack'].shape, lambda s: (0, 0, 0)),
            pl.BlockSpec(fp['w1'].shape, lambda s: (0, 0)),
            pl.BlockSpec(fp['w2'].shape, lambda s: (0, 0)),
            pl.BlockSpec(fp['vp'].shape, lambda s: (0, 0)),
        ],
        out_specs=pl.BlockSpec((1, M_PAD, LANE), lambda s: (s, 0, 0)),
        compiler_params=pltpu.CompilerParams(
            dimension_semantics=("parallel",)),       # batch blocks across TCs (v7x)
    )(zp, xp, fp['wstack'], fp['w1'], fp['w2'], fp['vp'])
    return out, (Ho, Wo)


# ------------------------------- parameters ----------------------------------

def _make_branch_params(key, cin, hidden, out_ch):
    ks = jax.random.split(key, 10)
    s = 0.1
    wk_raw = jax.random.normal(ks[0], (3, 3, cin, hidden), jnp.float32) * s
    ksc = 0.75 + 0.5 * jax.random.uniform(ks[1], (hidden,), jnp.float32)   # BN scale
    kbi = jax.random.normal(ks[2], (hidden,), jnp.float32) * s             # BN bias
    ws_raw = jax.random.normal(ks[3], (3, 3, cin, hidden), jnp.float32) * s
    ssc = 0.75 + 0.5 * jax.random.uniform(ks[4], (hidden,), jnp.float32)
    sbi = jax.random.normal(ks[5], (hidden,), jnp.float32) * s
    # Fold the per-Cout BN scale into the conv weights BEFORE bf16 rounding,
    # so the kernel and the reference use the exact same effective weights.
    wk = _bf16_round(wk_raw * ksc)
    ws = _bf16_round(ws_raw * ssc)
    w1 = _bf16_round(jax.random.normal(ks[6], (hidden, hidden), jnp.float32) * s)
    b1 = jax.random.normal(ks[7], (hidden,), jnp.float32) * s
    w2 = _bf16_round(jax.random.normal(ks[8], (hidden, out_ch), jnp.float32) * s)
    b2 = jax.random.normal(ks[9], (out_ch,), jnp.float32) * s
    return dict(wk=wk, kbi=kbi, ws=ws, sbi=sbi, w1=w1, b1=b1, w2=w2, b2=b2)


def _fuse_params(p_cls, p_loc, bb):
    """Pack both branches (and `bb` batch slots) into lane-dense kernel operands."""
    cin = p_cls['wk'].shape[2]
    hid = p_cls['wk'].shape[3]
    HID = 2 * hid
    oc_c = p_cls['w2'].shape[1]
    oc_l = p_loc['w2'].shape[1]
    assert oc_c + oc_l <= HID

    def im2col_w(wc, wl):                      # (3,3,cin,hid)x2 -> (9*cin, HID)
        return jnp.concatenate([wc, wl], axis=-1).reshape(9 * cin, HID)

    wk2 = im2col_w(p_cls['wk'], p_loc['wk'])
    ws2 = im2col_w(p_cls['ws'], p_loc['ws'])

    w1 = jnp.zeros((HID, HID), jnp.float32)
    w1 = w1.at[:hid, :hid].set(p_cls['w1']).at[hid:, hid:].set(p_loc['w1'])
    w2 = jnp.zeros((HID, HID), jnp.float32)
    w2 = w2.at[:hid, :oc_c].set(p_cls['w2'])
    w2 = w2.at[hid:, oc_c:oc_c + oc_l].set(p_loc['w2'])

    kbi = jnp.concatenate([p_cls['kbi'], p_loc['kbi']])
    sbi = jnp.concatenate([p_cls['sbi'], p_loc['sbi']])
    b1 = jnp.concatenate([p_cls['b1'], p_loc['b1']])
    b2 = jnp.zeros((HID,), jnp.float32)
    b2 = b2.at[:oc_c].set(p_cls['b2']).at[oc_c:oc_c + oc_l].set(p_loc['b2'])

    # Replicate block-diagonally per batch slot (bb slots along lanes).
    eye = jnp.eye(bb, dtype=jnp.float32)
    wstack = jnp.stack([jnp.kron(eye, wk2),
                        jnp.kron(eye, ws2)]).astype(jnp.bfloat16)
    w1b = jnp.kron(eye, w1).astype(jnp.bfloat16)
    w2b = jnp.kron(eye, w2).astype(jnp.bfloat16)

    LANE = bb * HID
    vp = jnp.zeros((8, LANE), jnp.float32)
    vp = vp.at[0].set(jnp.tile(kbi, bb))
    vp = vp.at[1].set(jnp.tile(sbi, bb))
    vp = vp.at[2].set(jnp.tile(b1, bb))
    vp = vp.at[3].set(jnp.tile(b2, bb))
    return dict(wstack=wstack, w1=w1b, w2=w2b, vp=vp)


# ------------------------------- forward path ---------------------------------

def _rpn_forward(fused, z_f, x_f, *, bb, hid2, out_cls, out_loc):
    B, _, Hz, Wz = z_f.shape
    _, _, Hx, Wx = x_f.shape
    Hk, Wk = Hz - 2, Wz - 2
    Hs, Ws = Hx - 2, Wx - 2

    # NCHW -> NHWC, im2col and bf16 cast happen in XLA (fused by jit).
    z = jnp.transpose(z_f, (0, 2, 3, 1))
    x = jnp.transpose(x_f, (0, 2, 3, 1))
    zp = _im2col3x3(z).astype(jnp.bfloat16)        # (B, Hk*Wk, 9*Cin)
    xp = _im2col3x3(x).astype(jnp.bfloat16)        # (B, Hs*Ws, 9*Cin)

    nsteps = -(-B // bb)
    pad_b = nsteps * bb - B
    if pad_b:
        zp = jnp.concatenate([zp, jnp.zeros((pad_b,) + zp.shape[1:], zp.dtype)], 0)
        xp = jnp.concatenate([xp, jnp.zeros((pad_b,) + xp.shape[1:], xp.dtype)], 0)
    zp = _fold_batch(zp, nsteps, bb)               # (nsteps, Mk, bb*9*Cin)
    xp = _fold_batch(xp, nsteps, bb)               # (nsteps, Ms, bb*9*Cin)

    out, (Ho, Wo) = _run_fused(zp, xp, fused, (Hk, Wk, Hs, Ws))
    out = out[:, :Ho * Wo, :].astype(jnp.float32)  # drop sublane padding
    out = (out.reshape(nsteps, Ho * Wo, bb, hid2)
              .transpose(0, 2, 1, 3)
              .reshape(nsteps * bb, Ho, Wo, hid2))[:B]
    cls = jnp.transpose(out[..., :out_cls], (0, 3, 1, 2))
    loc = jnp.transpose(out[..., out_cls:out_cls + out_loc], (0, 3, 1, 2))
    return cls, loc


class DepthwiseRPNPallas:
    """Concrete Pallas implementation of the (abstract) RPN head."""

    def __init__(self, in_channels=16, hidden=32, anchor_num=3,
                 key=jax.random.PRNGKey(0)):
        kc, kl = jax.random.split(key)
        self.out_cls = 2 * anchor_num
        self.out_loc = 4 * anchor_num
        self.hid2 = 2 * hidden                      # fused (cls|loc) hidden width
        self.bb = max(1, MXU_LANES // self.hid2)    # batch slots per grid step
        self.params_cls = _make_branch_params(kc, in_channels, hidden, self.out_cls)
        self.params_loc = _make_branch_params(kl, in_channels, hidden, self.out_loc)
        self.fused = _fuse_params(self.params_cls, self.params_loc, self.bb)
        self._fwd = jax.jit(functools.partial(
            _rpn_forward, bb=self.bb, hid2=self.hid2,
            out_cls=self.out_cls, out_loc=self.out_loc))
        self._zf = None

    def forward(self, z_f, x_f):
        # z_f: (B, Cin, Hz, Wz) NCHW,  x_f: (B, Cin, Hx, Wx) NCHW
        return self._fwd(self.fused, z_f, x_f)

    def template(self, template):
        self._zf = template

    def track(self, search):
        return self.forward(self._zf, search)

    # TODO(synk): `param_groups` (optimizer lr-group plumbing) has no kernel
    # equivalent and is intentionally not ported.


# --------------------------- plain-JAX reference ------------------------------

def _ref_branch(z_nhwc, x_nhwc, p):
    def conv(inp, w, bi):
        y = jax.lax.conv_general_dilated(
            inp, w, (1, 1), 'VALID',
            dimension_numbers=('NHWC', 'HWIO', 'NHWC'))
        return jnp.maximum(y + bi, 0.0)

    kf = conv(z_nhwc, p['wk'], p['kbi'])   # (B, Hk, Wk, hidden)
    sf = conv(x_nhwc, p['ws'], p['sbi'])   # (B, Hs, Ws, hidden)

    def xcorr_one(s, k):
        kk = k[:, :, None, :]              # (hk, wk, 1, C) grouped
        return jax.lax.conv_general_dilated(
            s[None], kk, (1, 1), 'VALID',
            dimension_numbers=('NHWC', 'HWIO', 'NHWC'),
            feature_group_count=s.shape[-1])[0]

    feat = jax.vmap(xcorr_one)(sf, kf)
    h = jnp.maximum(jnp.einsum('bhwc,cd->bhwd', feat, p['w1']) + p['b1'], 0.0)
    return jnp.einsum('bhwc,cd->bhwd', h, p['w2']) + p['b2']


# ------------------------------------ main ------------------------------------

if __name__ == "__main__":
    key = jax.random.PRNGKey(0)
    k1, k2, k3 = jax.random.split(key, 3)

    B, Cin = 2, 16
    z_f = jax.random.normal(k1, (B, Cin, 6, 6), jnp.float32)     # template features (NCHW)
    x_f = jax.random.normal(k2, (B, Cin, 14, 14), jnp.float32)   # search features (NCHW)

    rpn = DepthwiseRPNPallas(in_channels=Cin, hidden=32, anchor_num=3, key=k3)

    cls, loc = rpn.forward(z_f, x_f)
    (cls, loc) = jax.block_until_ready((cls, loc))

    assert cls.shape == (B, 6, 9, 9), cls.shape
    assert loc.shape == (B, 12, 9, 9), loc.shape

    # Verify against a plain-JAX f32 reference (activations / weights go
    # through the MXU in bf16 and the output slab is bf16, so tolerances are
    # bf16-grade).
    z_nhwc = jnp.transpose(z_f, (0, 2, 3, 1))
    x_nhwc = jnp.transpose(x_f, (0, 2, 3, 1))
    cls_ref = jnp.transpose(_ref_branch(z_nhwc, x_nhwc, rpn.params_cls), (0, 3, 1, 2))
    loc_ref = jnp.transpose(_ref_branch(z_nhwc, x_nhwc, rpn.params_loc), (0, 3, 1, 2))
    assert jnp.allclose(cls, cls_ref, rtol=2e-2, atol=1e-1), \
        float(jnp.max(jnp.abs(cls - cls_ref)))
    assert jnp.allclose(loc, loc_ref, rtol=2e-2, atol=1e-1), \
        float(jnp.max(jnp.abs(loc - loc_ref)))

    print("KERNEL_OK")
</pallas_src>

<mosaic_0001>
module attributes {stable_mosaic.version = 11 : i64} {
  func.func @kernel(%arg0: i32, %arg1: memref<1x16x288xbf16, #tpu.memory_space<vmem>>, %arg2: memref<1x144x288xbf16, #tpu.memory_space<vmem>>, %arg3: memref<2x288x128xbf16, #tpu.memory_space<vmem>>, %arg4: memref<128x128xbf16, #tpu.memory_space<vmem>>, %arg5: memref<128x128xbf16, #tpu.memory_space<vmem>>, %arg6: memref<8x128xf32, #tpu.memory_space<vmem>>, %arg7: memref<1x88x128xbf16, #tpu.memory_space<vmem>>) attributes {dimension_semantics = [#tpu.dimension_semantics<parallel>], iteration_bounds = array<i64: 1>, scalar_prefetch = 0 : i64, scratch_operands = 0 : i64, tpu.core_type = #tpu.core_type<tc>, window_params = [{transform_indices = @transform_0, window_bounds = array<i64: 1, 16, 288>}, {transform_indices = @transform_1, window_bounds = array<i64: 1, 144, 288>}, {pipeline_mode = #tpu.pipeline_mode<synchronous>, transform_indices = @transform_2, window_bounds = array<i64: 2, 288, 128>}, {pipeline_mode = #tpu.pipeline_mode<synchronous>, transform_indices = @transform_3, window_bounds = array<i64: 128, 128>}, {pipeline_mode = #tpu.pipeline_mode<synchronous>, transform_indices = @transform_4, window_bounds = array<i64: 128, 128>}, {pipeline_mode = #tpu.pipeline_mode<synchronous>, transform_indices = @transform_5, window_bounds = array<i64: 8, 128>}, {transform_indices = @transform_6, window_bounds = array<i64: 1, 88, 128>}]} {
    %c0 = arith.constant 0 : index
    %c0_0 = arith.constant 0 : index
    %0 = vector.load %arg6[%c0, %c0_0] : memref<8x128xf32, #tpu.memory_space<vmem>>, vector<8x128xf32>
    %1 = vector.extract_strided_slice %0 {offsets = [0, 0], sizes = [1, 128], strides = [1, 1]} : vector<8x128xf32> to vector<1x128xf32>
    %2 = vector.extract_strided_slice %0 {offsets = [1, 0], sizes = [1, 128], strides = [1, 1]} : vector<8x128xf32> to vector<1x128xf32>
    %3 = vector.extract_strided_slice %0 {offsets = [2, 0], sizes = [1, 128], strides = [1, 1]} : vector<8x128xf32> to vector<1x128xf32>
    %4 = vector.extract_strided_slice %0 {offsets = [3, 0], sizes = [1, 128], strides = [1, 1]} : vector<8x128xf32> to vector<1x128xf32>
    %c0_1 = arith.constant 0 : index
    %c0_2 = arith.constant 0 : index
    %c0_3 = arith.constant 0 : index
    %5 = vector.load %arg1[%c0_1, %c0_2, %c0_3] : memref<1x16x288xbf16, #tpu.memory_space<vmem>>, vector<1x16x288xbf16>
    %6 = vector.shape_cast %5 : vector<1x16x288xbf16> to vector<16x288xbf16>
    %c0_4 = arith.constant 0 : index
    %c0_5 = arith.constant 0 : index
    %c0_6 = arith.constant 0 : index
    %7 = vector.load %arg3[%c0_4, %c0_5, %c0_6] : memref<2x288x128xbf16, #tpu.memory_space<vmem>>, vector<1x288x128xbf16>
    %8 = vector.shape_cast %7 : vector<1x288x128xbf16> to vector<288x128xbf16>
    %cst = arith.constant dense<0.000000e+00> : vector<16x128xf32>
    %9 = tpu.matmul %6, %8, %cst {dimension_numbers = #tpu.dot_dimension_numbers<[1], [0], [0], [1], [0, 0, 1, 1], [], []>} : vector<16x288xbf16>, vector<288x128xbf16>, vector<16x128xf32> -> vector<16x128xf32>
    %10 = vector.broadcast %1 : vector<1x128xf32> to vector<16x128xf32>
    %11 = arith.addf %9, %10 : vector<16x128xf32>
    %cst_7 = arith.constant 0.000000e+00 : f32
    %12 = vector.broadcast %cst_7 : f32 to vector<16x128xf32>
    %13 = arith.maximumf %11, %12 : vector<16x128xf32>
    %c0_8 = arith.constant 0 : index
    %c0_9 = arith.constant 0 : index
    %c0_10 = arith.constant 0 : index
    %14 = vector.load %arg2[%c0_8, %c0_9, %c0_10] : memref<1x144x288xbf16, #tpu.memory_space<vmem>>, vector<1x144x288xbf16>
    %15 = vector.shape_cast %14 : vector<1x144x288xbf16> to vector<144x288xbf16>
    %c1 = arith.constant 1 : index
    %c0_11 = arith.constant 0 : index
    %c0_12 = arith.constant 0 : index
    %16 = vector.load %arg3[%c1, %c0_11, %c0_12] : memref<2x288x128xbf16, #tpu.memory_space<vmem>>, vector<1x288x128xbf16>
    %17 = vector.shape_cast %16 : vector<1x288x128xbf16> to vector<288x128xbf16>
    %cst_13 = arith.constant dense<0.000000e+00> : vector<144x128xf32>
    %18 = tpu.matmul %15, %17, %cst_13 {dimension_numbers = #tpu.dot_dimension_numbers<[1], [0], [0], [1], [0, 0, 1, 1], [], []>} : vector<144x288xbf16>, vector<288x128xbf16>, vector<144x128xf32> -> vector<144x128xf32>
    %19 = vector.broadcast %2 : vector<1x128xf32> to vector<144x128xf32>
    %20 = arith.addf %18, %19 : vector<144x128xf32>
    %cst_14 = arith.constant 0.000000e+00 : f32
    %21 = vector.broadcast %cst_14 : f32 to vector<144x128xf32>
    %22 = arith.maximumf %20, %21 : vector<144x128xf32>
    %23 = vector.shape_cast %13 : vector<16x128xf32> to vector<4x4x128xf32>
    %24 = vector.shape_cast %22 : vector<144x128xf32> to vector<12x12x128xf32>
    %cst_15 = arith.constant 0.000000e+00 : f32
    %25 = vector.broadcast %cst_15 : f32 to vector<9x9x128xf32>
    %26 = vector.extract_strided_slice %24 {offsets = [0, 0, 0], sizes = [9, 9, 128], strides = [1, 1, 1]} : vector<12x12x128xf32> to vector<9x9x128xf32>
    %27 = vector.extract_strided_slice %23 {offsets = [0, 0, 0], sizes = [1, 1, 128], strides = [1, 1, 1]} : vector<4x4x128xf32> to vector<1x1x128xf32>
    %28 = vector.shape_cast %27 : vector<1x1x128xf32> to vector<128xf32>
    %29 = vector.shape_cast %28 : vector<128xf32> to vector<1x1x128xf32>
    %30 = vector.broadcast %29 : vector<1x1x128xf32> to vector<9x9x128xf32>
    %31 = arith.mulf %26, %30 : vector<9x9x128xf32>
    %32 = arith.addf %25, %31 : vector<9x9x128xf32>
    %33 = vector.extract_strided_slice %24 {offsets = [0, 1, 0], sizes = [9, 9, 128], strides = [1, 1, 1]} : vector<12x12x128xf32> to vector<9x9x128xf32>
    %34 = vector.extract_strided_slice %23 {offsets = [0, 1, 0], sizes = [1, 1, 128], strides = [1, 1, 1]} : vector<4x4x128xf32> to vector<1x1x128xf32>
    %35 = vector.shape_cast %34 : vector<1x1x128xf32> to vector<128xf32>
    %36 = vector.shape_cast %35 : vector<128xf32> to vector<1x1x128xf32>
    %37 = vector.broadcast %36 : vector<1x1x128xf32> to vector<9x9x128xf32>
    %38 = arith.mulf %33, %37 : vector<9x9x128xf32>
    %39 = arith.addf %32, %38 : vector<9x9x128xf32>
    %40 = vector.extract_strided_slice %24 {offsets = [0, 2, 0], sizes = [9, 9, 128], strides = [1, 1, 1]} : vector<12x12x128xf32> to vector<9x9x128xf32>
    %41 = vector.extract_strided_slice %23 {offsets = [0, 2, 0], sizes = [1, 1, 128], strides = [1, 1, 1]} : vector<4x4x128xf32> to vector<1x1x128xf32>
    %42 = vector.shape_cast %41 : vector<1x1x128xf32> to vector<128xf32>
    %43 = vector.shape_cast %42 : vector<128xf32> to vector<1x1x128xf32>
    %44 = vector.broadcast %43 : vector<1x1x128xf32> to vector<9x9x128xf32>
    %45 = arith.mulf %40, %44 : vector<9x9x128xf32>
    %46 = arith.addf %39, %45 : vector<9x9x128xf32>
    %47 = vector.extract_strided_slice %24 {offsets = [0, 3, 0], sizes = [9, 9, 128], strides = [1, 1, 1]} : vector<12x12x128xf32> to vector<9x9x128xf32>
    %48 = vector.extract_strided_slice %23 {offsets = [0, 3, 0], sizes = [1, 1, 128], strides = [1, 1, 1]} : vector<4x4x128xf32> to vector<1x1x128xf32>
    %49 = vector.shape_cast %48 : vector<1x1x128xf32> to vector<128xf32>
    %50 = vector.shape_cast %49 : vector<128xf32> to vector<1x1x128xf32>
    %51 = vector.broadcast %50 : vector<1x1x128xf32> to vector<9x9x128xf32>
    %52 = arith.mulf %47, %51 : vector<9x9x128xf32>
    %53 = arith.addf %46, %52 : vector<9x9x128xf32>
    %54 = vector.extract_strided_slice %24 {offsets = [1, 0, 0], sizes = [9, 9, 128], strides = [1, 1, 1]} : vector<12x12x128xf32> to vector<9x9x128xf32>
    %55 = vector.extract_strided_slice %23 {offsets = [1, 0, 0], sizes = [1, 1, 128], strides = [1, 1, 1]} : vector<4x4x128xf32> to vector<1x1x128xf32>
    %56 = vector.shape_cast %55 : vector<1x1x128xf32> to vector<128xf32>
    %57 = vector.shape_cast %56 : vector<128xf32> to vector<1x1x128xf32>
    %58 = vector.broadcast %57 : vector<1x1x128xf32> to vector<9x9x128xf32>
    %59 = arith.mulf %54, %58 : vector<9x9x128xf32>
    %60 = arith.addf %53, %59 : vector<9x9x128xf32>
    %61 = vector.extract_strided_slice %24 {offsets = [1, 1, 0], sizes = [9, 9, 128], strides = [1, 1, 1]} : vector<12x12x128xf32> to vector<9x9x128xf32>
    %62 = vector.extract_strided_slice %23 {offsets = [1, 1, 0], sizes = [1, 1, 128], strides = [1, 1, 1]} : vector<4x4x128xf32> to vector<1x1x128xf32>
    %63 = vector.shape_cast %62 : vector<1x1x128xf32> to vector<128xf32>
    %64 = vector.shape_cast %63 : vector<128xf32> to vector<1x1x128xf32>
    %65 = vector.broadcast %64 : vector<1x1x128xf32> to vector<9x9x128xf32>
    %66 = arith.mulf %61, %65 : vector<9x9x128xf32>
    %67 = arith.addf %60, %66 : vector<9x9x128xf32>
    %68 = vector.extract_strided_slice %24 {offsets = [1, 2, 0], sizes = [9, 9, 128], strides = [1, 1, 1]} : vector<12x12x128xf32> to vector<9x9x128xf32>
    %69 = vector.extract_strided_slice %23 {offsets = [1, 2, 0], sizes = [1, 1, 128], strides = [1, 1, 1]} : vector<4x4x128xf32> to vector<1x1x128xf32>
    %70 = vector.shape_cast %69 : vector<1x1x128xf32> to vector<128xf32>
    %71 = vector.shape_cast %70 : vector<128xf32> to vector<1x1x128xf32>
    %72 = vector.broadcast %71 : vector<1x1x128xf32> to vector<9x9x128xf32>
    %73 = arith.mulf %68, %72 : vector<9x9x128xf32>
    %74 = arith.addf %67, %73 : vector<9x9x128xf32>
    %75 = vector.extract_strided_slice %24 {offsets = [1, 3, 0], sizes = [9, 9, 128], strides = [1, 1, 1]} : vector<12x12x128xf32> to vector<9x9x128xf32>
    %76 = vector.extract_strided_slice %23 {offsets = [1, 3, 0], sizes = [1, 1, 128], strides = [1, 1, 1]} : vector<4x4x128xf32> to vector<1x1x128xf32>
    %77 = vector.shape_cast %76 : vector<1x1x128xf32> to vector<128xf32>
    %78 = vector.shape_cast %77 : vector<128xf32> to vector<1x1x128xf32>
    %79 = vector.broadcast %78 : vector<1x1x128xf32> to vector<9x9x128xf32>
    %80 = arith.mulf %75, %79 : vector<9x9x128xf32>
    %81 = arith.addf %74, %80 : vector<9x9x128xf32>
    %82 = vector.extract_strided_slice %24 {offsets = [2, 0, 0], sizes = [9, 9, 128], strides = [1, 1, 1]} : vector<12x12x128xf32> to vector<9x9x128xf32>
    %83 = vector.extract_strided_slice %23 {offsets = [2, 0, 0], sizes = [1, 1, 128], strides = [1, 1, 1]} : vector<4x4x128xf32> to vector<1x1x128xf32>
    %84 = vector.shape_cast %83 : vector<1x1x128xf32> to vector<128xf32>
    %85 = vector.shape_cast %84 : vector<128xf32> to vector<1x1x128xf32>
    %86 = vector.broadcast %85 : vector<1x1x128xf32> to vector<9x9x128xf32>
    %87 = arith.mulf %82, %86 : vector<9x9x128xf32>
    %88 = arith.addf %81, %87 : vector<9x9x128xf32>
    %89 = vector.extract_strided_slice %24 {offsets = [2, 1, 0], sizes = [9, 9, 128], strides = [1, 1, 1]} : vector<12x12x128xf32> to vector<9x9x128xf32>
    %90 = vector.extract_strided_slice %23 {offsets = [2, 1, 0], sizes = [1, 1, 128], strides = [1, 1, 1]} : vector<4x4x128xf32> to vector<1x1x128xf32>
    %91 = vector.shape_cast %90 : vector<1x1x128xf32> to vector<128xf32>
    %92 = vector.shape_cast %91 : vector<128xf32> to vector<1x1x128xf32>
    %93 = vector.broadcast %92 : vector<1x1x128xf32> to vector<9x9x128xf32>
    %94 = arith.mulf %89, %93 : vector<9x9x128xf32>
    %95 = arith.addf %88, %94 : vector<9x9x128xf32>
    %96 = vector.extract_strided_slice %24 {offsets = [2, 2, 0], sizes = [9, 9, 128], strides = [1, 1, 1]} : vector<12x12x128xf32> to vector<9x9x128xf32>
    %97 = vector.extract_strided_slice %23 {offsets = [2, 2, 0], sizes = [1, 1, 128], strides = [1, 1, 1]} : vector<4x4x128xf32> to vector<1x1x128xf32>
    %98 = vector.shape_cast %97 : vector<1x1x128xf32> to vector<128xf32>
    %99 = vector.shape_cast %98 : vector<128xf32> to vector<1x1x128xf32>
    %100 = vector.broadcast %99 : vector<1x1x128xf32> to vector<9x9x128xf32>
    %101 = arith.mulf %96, %100 : vector<9x9x128xf32>
    %102 = arith.addf %95, %101 : vector<9x9x128xf32>
    %103 = vector.extract_strided_slice %24 {offsets = [2, 3, 0], sizes = [9, 9, 128], strides = [1, 1, 1]} : vector<12x12x128xf32> to vector<9x9x128xf32>
    %104 = vector.extract_strided_slice %23 {offsets = [2, 3, 0], sizes = [1, 1, 128], strides = [1, 1, 1]} : vector<4x4x128xf32> to vector<1x1x128xf32>
    %105 = vector.shape_cast %104 : vector<1x1x128xf32> to vector<128xf32>
    %106 = vector.shape_cast %105 : vector<128xf32> to vector<1x1x128xf32>
    %107 = vector.broadcast %106 : vector<1x1x128xf32> to vector<9x9x128xf32>
    %108 = arith.mulf %103, %107 : vector<9x9x128xf32>
    %109 = arith.addf %102, %108 : vector<9x9x128xf32>
    %110 = vector.extract_strided_slice %24 {offsets = [3, 0, 0], sizes = [9, 9, 128], strides = [1, 1, 1]} : vector<12x12x128xf32> to vector<9x9x128xf32>
    %111 = vector.extract_strided_slice %23 {offsets = [3, 0, 0], sizes = [1, 1, 128], strides = [1, 1, 1]} : vector<4x4x128xf32> to vector<1x1x128xf32>
    %112 = vector.shape_cast %111 : vector<1x1x128xf32> to vector<128xf32>
    %113 = vector.shape_cast %112 : vector<128xf32> to vector<1x1x128xf32>
    %114 = vector.broadcast %113 : vector<1x1x128xf32> to vector<9x9x128xf32>
    %115 = arith.mulf %110, %114 : vector<9x9x128xf32>
    %116 = arith.addf %109, %115 : vector<9x9x128xf32>
    %117 = vector.extract_strided_slice %24 {offsets = [3, 1, 0], sizes = [9, 9, 128], strides = [1, 1, 1]} : vector<12x12x128xf32> to vector<9x9x128xf32>
    %118 = vector.extract_strided_slice %23 {offsets = [3, 1, 0], sizes = [1, 1, 128], strides = [1, 1, 1]} : vector<4x4x128xf32> to vector<1x1x128xf32>
    %119 = vector.shape_cast %118 : vector<1x1x128xf32> to vector<128xf32>
    %120 = vector.shape_cast %119 : vector<128xf32> to vector<1x1x128xf32>
    %121 = vector.broadcast %120 : vector<1x1x128xf32> to vector<9x9x128xf32>
    %122 = arith.mulf %117, %121 : vector<9x9x128xf32>
    %123 = arith.addf %116, %122 : vector<9x9x128xf32>
    %124 = vector.extract_strided_slice %24 {offsets = [3, 2, 0], sizes = [9, 9, 128], strides = [1, 1, 1]} : vector<12x12x128xf32> to vector<9x9x128xf32>
    %125 = vector.extract_strided_slice %23 {offsets = [3, 2, 0], sizes = [1, 1, 128], strides = [1, 1, 1]} : vector<4x4x128xf32> to vector<1x1x128xf32>
    %126 = vector.shape_cast %125 : vector<1x1x128xf32> to vector<128xf32>
    %127 = vector.shape_cast %126 : vector<128xf32> to vector<1x1x128xf32>
    %128 = vector.broadcast %127 : vector<1x1x128xf32> to vector<9x9x128xf32>
    %129 = arith.mulf %124, %128 : vector<9x9x128xf32>
    %130 = arith.addf %123, %129 : vector<9x9x128xf32>
    %131 = vector.extract_strided_slice %24 {offsets = [3, 3, 0], sizes = [9, 9, 128], strides = [1, 1, 1]} : vector<12x12x128xf32> to vector<9x9x128xf32>
    %132 = vector.extract_strided_slice %23 {offsets = [3, 3, 0], sizes = [1, 1, 128], strides = [1, 1, 1]} : vector<4x4x128xf32> to vector<1x1x128xf32>
    %133 = vector.shape_cast %132 : vector<1x1x128xf32> to vector<128xf32>
    %134 = vector.shape_cast %133 : vector<128xf32> to vector<1x1x128xf32>
    %135 = vector.broadcast %134 : vector<1x1x128xf32> to vector<9x9x128xf32>
    %136 = arith.mulf %131, %135 : vector<9x9x128xf32>
    %137 = arith.addf %130, %136 : vector<9x9x128xf32>
    %138 = vector.shape_cast %137 : vector<9x9x128xf32> to vector<81x128xf32>
    %139 = arith.truncf %138 : vector<81x128xf32> to vector<81x128xbf16>
    %c0_16 = arith.constant 0 : index
    %c0_17 = arith.constant 0 : index
    %140 = vector.load %arg4[%c0_16, %c0_17] : memref<128x128xbf16, #tpu.memory_space<vmem>>, vector<128x128xbf16>
    %cst_18 = arith.constant dense<0.000000e+00> : vector<81x128xf32>
    %141 = tpu.matmul %139, %140, %cst_18 {dimension_numbers = #tpu.dot_dimension_numbers<[1], [0], [0], [1], [0, 0, 1, 1], [], []>} : vector<81x128xbf16>, vector<128x128xbf16>, vector<81x128xf32> -> vector<81x128xf32>
    %142 = vector.broadcast %3 : vector<1x128xf32> to vector<81x128xf32>
    %143 = arith.addf %141, %142 : vector<81x128xf32>
    %cst_19 = arith.constant 0.000000e+00 : f32
    %144 = vector.broadcast %cst_19 : f32 to vector<81x128xf32>
    %145 = arith.maximumf %143, %144 : vector<81x128xf32>
    %146 = arith.truncf %145 : vector<81x128xf32> to vector<81x128xbf16>
    %c0_20 = arith.constant 0 : index
    %c0_21 = arith.constant 0 : index
    %147 = vector.load %arg5[%c0_20, %c0_21] : memref<128x128xbf16, #tpu.memory_space<vmem>>, vector<128x128xbf16>
    %cst_22 = arith.constant dense<0.000000e+00> : vector<81x128xf32>
    %148 = tpu.matmul %146, %147, %cst_22 {dimension_numbers = #tpu.dot_dimension_numbers<[1], [0], [0], [1], [0, 0, 1, 1], [], []>} : vector<81x128xbf16>, vector<128x128xbf16>, vector<81x128xf32> -> vector<81x128xf32>
    %149 = vector.broadcast %4 : vector<1x128xf32> to vector<81x128xf32>
    %150 = arith.addf %148, %149 : vector<81x128xf32>
    %151 = arith.truncf %150 : vector<81x128xf32> to vector<81x128xbf16>
    %cst_23 = arith.constant 0.000000e+00 : bf16
    %152 = vector.broadcast %cst_23 : bf16 to vector<7x128xbf16>
    %153 = tpu.concatenate %151, %152 in 0 : vector<81x128xbf16>, vector<7x128xbf16> -> vector<88x128xbf16>
    %c0_24 = arith.constant 0 : index
    %c0_25 = arith.constant 0 : index
    %c0_26 = arith.constant 0 : index
    %154 = vector.load %arg7[%c0_24, %c0_25, %c0_26] : memref<1x88x128xbf16, #tpu.memory_space<vmem>>, vector<1x88x128xbf16>
    %155 = vector.shape_cast %154 : vector<1x88x128xbf16> to vector<88x128xbf16>
    %156 = vector.shape_cast %153 : vector<88x128xbf16> to vector<1x88x128xbf16>
    tpu.vector_store %arg7[%c0_24, %c0_25, %c0_26], %156 {strides = array<i32>} : memref<1x88x128xbf16, #tpu.memory_space<vmem>>, vector<1x88x128xbf16>,
    return
  }
  func.func @transform_0(%arg0: i32) -> (i32, i32, i32) {
    %c0_i32 = arith.constant 0 : i32
    %c0_i32_0 = arith.constant 0 : i32
    %c0_i32_1 = arith.constant 0 : i32
    return %arg0, %c0_i32, %c0_i32_0 : i32, i32, i32
  }
  func.func @transform_1(%arg0: i32) -> (i32, i32, i32) {
    %c0_i32 = arith.constant 0 : i32
    %c0_i32_0 = arith.constant 0 : i32
    %c0_i32_1 = arith.constant 0 : i32
    return %arg0, %c0_i32, %c0_i32_0 : i32, i32, i32
  }
  func.func @transform_2(%arg0: i32) -> (i32, i32, i32) {
    %c0_i32 = arith.constant 0 : i32
    %c0_i32_0 = arith.constant 0 : i32
    %c0_i32_1 = arith.constant 0 : i32
    %c0_i32_2 = arith.constant 0 : i32
    return %c0_i32, %c0_i32_0, %c0_i32_1 : i32, i32, i32
  }
  func.func @transform_3(%arg0: i32) -> (i32, i32) {
    %c0_i32 = arith.constant 0 : i32
    %c0_i32_0 = arith.constant 0 : i32
    %c0_i32_1 = arith.constant 0 : i32
    return %c0_i32, %c0_i32_0 : i32, i32
  }
  func.func @transform_4(%arg0: i32) -> (i32, i32) {
    %c0_i32 = arith.constant 0 : i32
    %c0_i32_0 = arith.constant 0 : i32
    %c0_i32_1 = arith.constant 0 : i32
    return %c0_i32, %c0_i32_0 : i32, i32
  }
  func.func @transform_5(%arg0: i32) -> (i32, i32) {
    %c0_i32 = arith.constant 0 : i32
    %c0_i32_0 = arith.constant 0 : i32
    %c0_i32_1 = arith.constant 0 : i32
    return %c0_i32, %c0_i32_0 : i32, i32
  }
  func.func @transform_6(%arg0: i32) -> (i32, i32, i32) {
    %c0_i32 = arith.constant 0 : i32
    %c0_i32_0 = arith.constant 0 : i32
    %c0_i32_1 = arith.constant 0 : i32
    return %arg0, %c0_i32, %c0_i32_0 : i32, i32, i32
  }
}

</mosaic_0001>

<bundles_post_ra>
// kernel: _rpn_forward.1
= control target key start
LH: loop header
LB: loop body
LE: loop exit
PB: predicated region body
PF: predicated region fallthrough
CT: control target
= control target key end

     0   :  { %v5615_v0 = vmov 0.0   ;;  %vm5616_vm0 = vmmov 0   ;;  %vm192_vm1 = vcmask 261120   ;;  %vm976_vm2 = vcmask 1040384   ;;  %s8338_s2 = inlined_call_operand.vmem [shape: bf16[2,288,128], index: 2, kind: input, shape index: {}]   ;;  %s8339_s0 = inlined_call_operand.vmem [shape: bf16[1,16,288], index: 0, kind: input, shape index: {}]   ;;  %s8340_s1 = inlined_call_operand.vmem [shape: bf16[1,144,288], index: 1, kind: input, shape index: {}]   ;;  %s8341_s3 = inlined_call_operand.vmem [shape: bf16[128,128], index: 3, kind: input, shape index: {}]   ;;  %s8342_s5 = inlined_call_operand.vmem [shape: f32[8,128], index: 5, kind: input, shape index: {}]   ;;  %s8343_s4 = inlined_call_operand.vmem [shape: bf16[128,128], index: 4, kind: input, shape index: {}]   ;;  %s8344_s6 = inlined_call_operand.vmem [shape: bf16[1,88,128], index: 6, kind: output, shape index: {}]  }
   0x1   :  { %5415 = vmatprep.subr.bf16.mxu1 %v5615_v0  ;;  %v5522_v1 = vld [vmem:[%s8338_s2 + $0x40] sm:$0xff]   ;;  %5419 = vmatprep.mubr.msk.bf16.mxu1 %vm5616_vm0, %v5615_v0  ;;  %v5525_v4 = vld [vmem:[%s8338_s2 + $0x48] sm:$0xff]   ;;  %v5529_v8 = vld [vmem:[%s8338_s2 + $0xd0] sm:$0xff]   ;;  %vm977_vm3 = vcmask 1044484   ;;  %vm1042_vm4 = vcmask 1042432   ;;  %vm1043_vm5 = vcmask 1046532  }
   0x2   :  { %v5523_v2 = vld [vmem:[%s8338_s2 + $0x80] sm:$0xff]   ;;  %5281 = vmatprep.subr.bf16.mxu0 %v5522_v1  ;;  %v5526_v5 = vld [vmem:[%s8338_s2 + $0x88] sm:$0xff]   ;;  %v5530_v9 = vld [vmem:[%s8338_s2 + $0x50] sm:$0xff]   ;;  %vm1177_vm6 = vcmask 1041408   ;;  %vm1178_vm7 = vcmask 1045508  }
   0x3   :  { %v5524_v3 = vld [vmem:[%s8338_s2] sm:$0xff]   ;;  %5416 = vmatpush3.bf16.msra.mxu1 %v5523_v2  ;;  %v5527_v6 = vld [vmem:[%s8338_s2 + $0x8] sm:$0xff]   ;;  %v5531_v10 = vld [vmem:[%s8338_s2 + $0x90] sm:$0xff]   ;;  %vm4928_vm11 = vsmask.f32 256 }
   0x4   :  { %5282 = vmatpush3.bf16.msra.mxu0 %v5524_v3  ;;  %5417 = vmatprep.subr.bf16.mxu1 %v5615_v0  ;;  %v5528_v7 = vld [vmem:[%s8339_s0 + $0x8] ss:$12 sps:$4 sm:$0xff]   ;;  %v5533_v12 = vld [vmem:[%s8338_s2 + $0xd8] sm:$0xff]   ;;  %v5537_v16 = vld [vmem:[%s8338_s2 + $0xe0] sm:$0xff]  }
   0x5   :  { %5283 = vmatprep.subr.bf16.mxu0 %v5525_v4  ;;  %v5532_v11 = vld [vmem:[%s8338_s2 + $0x10] sm:$0xff]   ;;  %v5534_v13 = vld [vmem:[%s8338_s2 + $0x58] sm:$0xff]   ;;  %v5538_v17 = vld [vmem:[%s8338_s2 + $0x60] sm:$0xff]  }
   0x6   :  { %v5535_v14 = vld [vmem:[%s8338_s2 + $0x98] sm:$0xff]   ;;  %v5539_v18 = vld [vmem:[%s8338_s2 + $0xa0] sm:$0xff]   ;;  %v5541_v20 = vld [vmem:[%s8338_s2 + $0xe8] sm:$0xff]  }
   0x7   :  { %5418 = vmatpush3.bf16.msra.mxu1 %v5526_v5  ;;  %v5536_v15 = vld [vmem:[%s8338_s2 + $0x18] sm:$0xff]   ;;  %v5540_v19 = vld [vmem:[%s8338_s2 + $0x20] sm:$0xff]   ;;  %v5542_v21 = vld [vmem:[%s8338_s2 + $0x68] sm:$0xff]  }
   0x8   :  { %5284 = vmatpush3.bf16.msra.mxu0 %v5527_v6  ;;  %5306 = vmatprep.subr.bf16.mxu1 %v5529_v8  ;;  %v5543_v22 = vld [vmem:[%s8338_s2 + $0xa8] sm:$0xff]   ;;  %v5545_v24 = vld [vmem:[%s8338_s2 + $0xf0] sm:$0xff]   ;;  %v5549_v28 = vld [vmem:[%s8338_s2 + $0xf8] sm:$0xff]  }
   0x9   :  { %5285 = vmatprep.subr.bf16.mxu0 %v5530_v9  ;;  %v5544_v23 = vld [vmem:[%s8338_s2 + $0x28] sm:$0xff]   ;;  %v5546_v25 = vld [vmem:[%s8338_s2 + $0x70] sm:$0xff]   ;;  %v5550_v29 = vld [vmem:[%s8338_s2 + $0x78] sm:$0xff]  }
   0xa   :  { %5420 = vmatmul.mubr.msk.bf16.vlgmr.msra.gmra.mrb[0].mxu1 %vm192_vm1, %v5528_v7  ;;  %v5547_v26 = vld [vmem:[%s8338_s2 + $0xb0] sm:$0xff]   ;;  %v5551_v30 = vld [vmem:[%s8338_s2 + $0xb8] sm:$0xff]   ;;  %v5553_v32 = vld [vmem:[%s8339_s0] ss:$12 sps:$4 sm:$0xff]  }
   0xb   :  { %5307 = vmatpush3.bf16.msra.mxu1 %v5531_v10  ;;  %v5548_v27 = vld [vmem:[%s8338_s2 + $0x30] sm:$0xff]   ;;  %v5552_v31 = vld [vmem:[%s8338_s2 + $0x38] sm:$0xff]   ;;  %v5556_v34 = vld [vmem:[%s8338_s2 + $0x100] sm:$0xff]  }
   0xc   :  { %5286 = vmatpush3.bf16.msra.mxu0 %v5532_v11  ;;  %5308 = vmatprep.subr.bf16.mxu1 %v5533_v12  ;;  %v5555_v33 = vld [vmem:[%s8339_s0 + $0x4] ss:$12 sps:$4 sm:$0xff]   ;;  %v5559_v37 = vld [vmem:[%s8338_s2 + $0x108] sm:$0xff]   ;;  %v5564_v41 = vld [vmem:[%s8338_s2 + $0x118] sm:$0xff]   ;;  %v65_v12 = vlaneseq }
   0xd   :  { %5287 = vmatprep.subr.bf16.mxu0 %v5534_v13  ;;  %228 = vmatprep.mubr.bf16.mxu0 %v5555_v33  ;;  %v5557_v35 = vld [vmem:[%s8338_s2 + $0xc0] sm:$0xff]   ;;  %v5558_v36 = vld [vmem:[%s8338_s2 + $0x110] sm:$0xff]   ;;  %v5560_v38 = vld [vmem:[%s8338_s2 + $0xc8] sm:$0xff]  }
   0xe   :  { %v5561_v39 = vld [vmem:[%s8340_s1] ss:$12 sps:$4 sm:$0xff]   ;;  %v5563_v40 = vld [vmem:[%s8340_s1 + $0x4] ss:$12 sps:$4 sm:$0xff]   ;;  %v5565_v42 = vld [vmem:[%s8340_s1 + $0x8] ss:$12 sps:$4 sm:$0xff]  }
   0xf   :  { %5309 = vmatpush3.bf16.msra.mxu1 %v5535_v14  ;;  %659 = vmatprep.mubr.bf16.mxu1 %v5563_v40  ;;  %v5566_v43 = vld [vmem:[%s8340_s1 + $0x1c] ss:$12 sps:$4 sm:$0xff]   ;;  %v5568_v44 = vld [vmem:[%s8340_s1 + $0x18] ss:$12 sps:$4 sm:$0xff]   ;;  %v5569_v45 = vld [vmem:[%s8340_s1 + $0x20] ss:$12 sps:$4 sm:$0xff]  }
  0x10   :  { %5288 = vmatpush3.bf16.msra.mxu0 %v5536_v15  ;;  %5310 = vmatprep.subr.bf16.mxu1 %v5537_v16  ;;  %v5570_v46 = vld [vmem:[%s8340_s1 + $0x34] ss:$12 sps:$4 sm:$0xff]   ;;  %v5572_v47 = vld [vmem:[%s8340_s1 + $0x30] ss:$12 sps:$4 sm:$0xff]   ;;  %v5573_v48 = vld [vmem:[%s8340_s1 + $0x38] ss:$12 sps:$4 sm:$0xff]  }
  0x11   :  { %5289 = vmatprep.subr.bf16.mxu0 %v5538_v17  ;;  %v5574_v49 = vld [vmem:[%s8340_s1 + $0x4c] ss:$12 sps:$4 sm:$0xff]   ;;  %v5576_v50 = vld [vmem:[%s8340_s1 + $0x48] ss:$12 sps:$4 sm:$0xff]   ;;  %v5577_v51 = vld [vmem:[%s8340_s1 + $0x50] ss:$12 sps:$4 sm:$0xff]  }
  0x12   :  { %v5578_v52 = vld [vmem:[%s8340_s1 + $0x64] ss:$12 sps:$4 sm:$0xff]   ;;  %v5580_v53 = vld [vmem:[%s8340_s1 + $0x60] ss:$12 sps:$4 sm:$0xff]   ;;  %v5581_v54 = vld [vmem:[%s8340_s1 + $0x68] ss:$12 sps:$4 sm:$0xff]  }
  0x13   :  { %5311 = vmatpush3.bf16.msra.mxu1 %v5539_v18  ;;  %v5582_v55 = vld [vmem:[%s8340_s1 + $0x7c] ss:$12 sps:$4 sm:$0xff]   ;;  %v5584_v56 = vld [vmem:[%s8340_s1 + $0x78] ss:$12 sps:$4 sm:$0xff]   ;;  %v5585_v57 = vld [vmem:[%s8340_s1 + $0x80] ss:$12 sps:$4 sm:$0xff]  }
  0x14   :  { %5290 = vmatpush3.bf16.msra.mxu0 %v5540_v19  ;;  %5312 = vmatprep.subr.bf16.mxu1 %v5541_v20  ;;  %v5586_v58 = vld [vmem:[%s8340_s1 + $0x94] ss:$12 sps:$4 sm:$0xff]   ;;  %v5588_v59 = vld [vmem:[%s8340_s1 + $0x90] ss:$12 sps:$4 sm:$0xff]   ;;  %v5589_v60 = vld [vmem:[%s8340_s1 + $0x98] ss:$12 sps:$4 sm:$0xff]  }
  0x15   :  { %5291 = vmatprep.subr.bf16.mxu0 %v5542_v21  ;;  %v5590_v61 = vld [vmem:[%s8340_s1 + $0xac] ss:$12 sps:$4 sm:$0xff]   ;;  %v5592_v62 = vld [vmem:[%s8340_s1 + $0xa8] ss:$12 sps:$4 sm:$0xff]   ;;  %v5593_v63 = vld [vmem:[%s8340_s1 + $0xb0] ss:$12 sps:$4 sm:$0xff]  }
  0x16   :  { %v5594_v1 = vld [vmem:[%s8340_s1 + $0xc4] ss:$12 sps:$4 sm:$0xff]   ;;  %v5596_v2 = vld [vmem:[%s8340_s1 + $0xc0] ss:$12 sps:$4 sm:$0xff]   ;;  %v5597_v3 = vld [vmem:[%s8340_s1 + $0xc8] ss:$12 sps:$4 sm:$0xff]  }
  0x17   :  { %5313 = vmatpush3.bf16.msra.mxu1 %v5543_v22  ;;  %v5598_v4 = vld [vmem:[%s8341_s3] sm:$0xff]   ;;  %v5600_v5 = vld [vmem:[%s8341_s3 + $0x10] sm:$0xff]   ;;  %v5601_v6 = vld [vmem:[%s8341_s3 + $0x18] sm:$0xff]   ;;  %v5903_v14 = vshrl.u32 %v65_v12, 7 }
  0x18   :  { %5292 = vmatpush3.bf16.msra.mxu0 %v5544_v23  ;;  %5314 = vmatprep.subr.bf16.mxu1 %v5545_v24  ;;  %v5602_v7 = vld [vmem:[%s8341_s3 + $0x20] sm:$0xff]   ;;  %v5603_v13 = vld [vmem:[%s8341_s3 + $0x28] sm:$0xff]   ;;  %vm5958_vm8 = vmor %vm1042_vm4, %vm1043_vm5 }
  0x19   :  { %5293 = vmatprep.subr.bf16.mxu0 %v5546_v25  ;;  %8611 = vst [vmem:[#allocation2_spill] sm:$0xff] %v5903_v14  ;;  %v5906_v15 = vsub.s32 0, %v5903_v14  ;;  %v24_v16 = vld [vmem:[%s8342_s5] sm:$0xff]  ;;  %v5913_v22 = vsub.s32 1, %v5903_v14  ;;  %v1822_v33 = vsub.s32 6, %v5903_v14  ;;  %vm5970_vm9 = vmor %vm1177_vm6, %vm1178_vm7 }
  0x1a   :  { %vm5977_vm10 = vmor %vm976_vm2, %vm977_vm3 }
  0x1b   :  { %5315 = vmatpush3.bf16.msra.mxu1 %v5547_v26  ;;  %v68_v18 = vrot.slane %v24_v16, %v5906_v15  ;;  %vm4929_vm12 = vmand %vm976_vm2, %vm4928_vm11 }
  0x1c   :  { %5294 = vmatpush3.bf16.msra.mxu0 %v5548_v27  ;;  %5316 = vmatprep.subr.bf16.mxu1 %v5549_v28  ;;  %v5916_v27 = vsub.s32 2, %v5903_v14  ;;  %v5919_v28 = vsub.s32 3, %v5903_v14 }
  0x1d   :  { %5295 = vmatprep.subr.bf16.mxu0 %v5550_v29 }
  0x1e   :  { %8612 = vst [vmem:[#allocation3_spill] sm:$0xff] %v5916_v27  ;;  %8613 = vst [vmem:[#allocation4_spill] sm:$0xff] %v5919_v28 }
  0x1f   :  { %5317 = vmatpush3.bf16.msra.mxu1 %v5551_v30  ;;  %v5922_v30 = vrot.slane %v24_v16, %v5913_v22 }
  0x20   :  { %5296 = vmatpush3.bf16.msra.mxu0 %v5552_v31  ;;  %5318 = vmatprep.subr.bf16.mxu1 %v5556_v34  ;;  %v1566_v31 = vsub.s32 4, %v5903_v14 }
  0x21   :  { %5423 = vmatprep.subr.bf16.mxu0 %v5615_v0 }
  0x23   :  { %229 = vmatmul.mubr.bf16.vlgmr.msra.gmra.mrb[0].mxu0 %v5553_v32  ;;  %5319 = vmatpush3.bf16.msra.mxu1 %v5557_v35  ;;  %v1627_v32 = vsub.s32 5, %v5903_v14  ;;  %v2017_v35 = vsub.s32 7, %v5903_v14 }
  0x24   :  { %5427 = vmatprep.mubr.msk.bf16.mxu0 %vm5616_vm0, %v5615_v0  ;;  %5424 = vmatpush3.bf16.msra.mxu0 %v5558_v36 }
  0x25   :  { %5320 = vmatprep.subr.bf16.mxu1 %v5559_v37  ;;  %5425 = vmatprep.subr.bf16.mxu0 %v5615_v0 }
  0x27   :  { %5321 = vmatpush3.bf16.msra.mxu1 %v5560_v38 }
  0x28   :  { %5426 = vmatpush3.bf16.msra.mxu0 %v5564_v41 }
  0x29   :  { %5463 = vmatprep.subr.bf16.mxu0 %v5598_v4 }
  0x2a   :  { %660 = vmatmul.mubr.bf16.vlgmr.msra.gmra.mrb[4].mxu1 %v5561_v39 }
  0x2b   :  { %5428 = vmatmul.mubr.msk.bf16.vlgmr.msra.gmra.mrb[4].mxu0 %vm192_vm1, %v5565_v42  ;;  %667 = vmatprep.mubr.bf16.mxu1 %v5566_v43 }
  0x2c   :  { %5431 = vmatprep.mubr.msk.bf16.mxu0 %vm5616_vm0, %v5615_v0  ;;  %5464 = vmatpush3.bf16.msra.mxu0 %v5598_v4 }
  0x32   :  { %668 = vmatmul.mubr.bf16.gmra.mrb[8].mxu1 %v5568_v44 }
  0x33   :  { %5432 = vmatmul.mubr.msk.bf16.gmra.mrb[8].mxu0 %vm192_vm1, %v5569_v45  ;;  %675 = vmatprep.mubr.bf16.mxu1 %v5570_v46 }
  0x34   :  { %5435 = vmatprep.mubr.msk.bf16.mxu0 %vm5616_vm0, %v5615_v0 }
  0x3a   :  { %676 = vmatmul.mubr.bf16.gmra.mrb[12].mxu1 %v5572_v47 }
  0x3b   :  { %5436 = vmatmul.mubr.msk.bf16.gmra.mrb[12].mxu0 %vm192_vm1, %v5573_v48  ;;  %683 = vmatprep.mubr.bf16.mxu1 %v5574_v49 }
  0x3c   :  { %5439 = vmatprep.mubr.msk.bf16.mxu0 %vm5616_vm0, %v5615_v0 }
  0x42   :  { %684 = vmatmul.mubr.bf16.gmra.mrb[16].mxu1 %v5576_v50 }
  0x43   :  { %5440 = vmatmul.mubr.msk.bf16.gmra.mrb[16].mxu0 %vm192_vm1, %v5577_v51  ;;  %691 = vmatprep.mubr.bf16.mxu1 %v5578_v52 }
  0x44   :  { %5443 = vmatprep.mubr.msk.bf16.mxu0 %vm5616_vm0, %v5615_v0 }
  0x4a   :  { %692 = vmatmul.mubr.bf16.gmra.mrb[20].mxu1 %v5580_v53 }
  0x4b   :  { %5444 = vmatmul.mubr.msk.bf16.gmra.mrb[20].mxu0 %vm192_vm1, %v5581_v54  ;;  %699 = vmatprep.mubr.bf16.mxu1 %v5582_v55 }
  0x4c   :  { %5447 = vmatprep.mubr.msk.bf16.mxu0 %vm5616_vm0, %v5615_v0 }
  0x52   :  { %700 = vmatmul.mubr.bf16.gmra.mrb[24].mxu1 %v5584_v56 }
  0x53   :  { %5448 = vmatmul.mubr.msk.bf16.gmra.mrb[24].mxu0 %vm192_vm1, %v5585_v57  ;;  %707 = vmatprep.mubr.bf16.mxu1 %v5586_v58 }
  0x54   :  { %5451 = vmatprep.mubr.msk.bf16.mxu0 %vm5616_vm0, %v5615_v0 }
  0x5a   :  { %708 = vmatmul.mubr.bf16.gmra.mrb[28].mxu1 %v5588_v59 }
  0x5b   :  { %5452 = vmatmul.mubr.msk.bf16.gmra.mrb[28].mxu0 %vm192_vm1, %v5589_v60  ;;  %715 = vmatprep.mubr.bf16.mxu1 %v5590_v61 }
  0x5c   :  { %5455 = vmatprep.mubr.msk.bf16.mxu0 %vm5616_vm0, %v5615_v0 }
  0x62   :  { %716 = vmatmul.mubr.bf16.gmra.mrb[32].mxu1 %v5592_v62 }
  0x63   :  { %5456 = vmatmul.mubr.msk.bf16.gmra.mrb[32].mxu0 %vm192_vm1, %v5593_v63  ;;  %723 = vmatprep.mubr.bf16.mxu1 %v5594_v1 }
  0x64   :  { %5459 = vmatprep.mubr.msk.bf16.mxu0 %vm5616_vm0, %v5615_v0  ;;  %v5599_v0 = vld [vmem:[%s8341_s3 + $0x8] sm:$0xff]  }
  0x65   :  { %5465 = vmatprep.subr.bf16.mxu0 %v5599_v0 }
  0x66   :  { %5466 = vmatpush3.bf16.msra.mxu0 %v5599_v0 }
  0x67   :  { %5467 = vmatprep.subr.bf16.mxu0 %v5600_v5 }
  0x6a   :  { %724 = vmatmul.mubr.bf16.gmra.mrb[36].mxu1 %v5596_v2  ;;  %5468 = vmatpush3.bf16.msra.mxu0 %v5600_v5 }
  0x6b   :  { %5460 = vmatmul.mubr.msk.bf16.gmra.mrb[36].mxu0 %vm192_vm1, %v5597_v3  ;;  %5469 = vmatprep.subr.bf16.mxu0 %v5601_v6  ;;  %v8623_v3 = vmov 0 }
  0x6c   :  { %v8624_v3 = vsel %vm5977_vm10, 4294967295, %v8623_v3 }
  0x6d   :  { %8625 = vst [vmem:[#allocation10_spill] sm:$0xff] %v8624_v3 }
  0x6e   :  { %5470 = vmatpush3.bf16.msra.mxu0 %v5601_v6 }
  0x6f   :  { %5471 = vmatprep.subr.bf16.mxu0 %v5602_v7 }
  0x72   :  { %5472 = vmatpush3.bf16.msra.mxu0 %v5602_v7 }
  0x73   :  { %5473 = vmatprep.subr.bf16.mxu0 %v5603_v13 }
  0x76   :  { %5474 = vmatpush3.bf16.msra.mxu0 %v5603_v13 }
  0xdd   :  { %v271_v8 = vpop.f32.mrb[0].mxu1 }
  0xde   :  { %v5421_v9 = vpop.f32.mrb[1].mxu1 }
  0xdf   :  { %v274_v10 = vpop.f32.mrb[2].mxu1 }
  0xe0   :  { %v5422_v11 = vpop.f32.mrb[3].mxu1 }
  0xf6   :  { %v5297_v17 = vpop.f32.mrb[0].mxu0 }
  0xf7   :  { %v5298_v19 = vpop.f32.mrb[1].mxu0 }
  0xf8   :  { %v5299_v20 = vadd.f32 %v5298_v19, %v5297_v17  ;;  %v5300_v21 = vpop.f32.mrb[2].mxu0 }
  0xf9   :  { %v5301_v23 = vpop.f32.mrb[3].mxu0 }
  0xfa   :  { %v231_v24 = vadd.f32 %v5299_v20, %v68_v18  ;;  %v5302_v25 = vadd.f32 %v5301_v23, %v5300_v21 }
  0xfc   :  { %v272_v26 = vadd.f32 %v271_v8, %v231_v24  ;;  %v234_v29 = vadd.f32 %v5302_v25, %v68_v18 }
  0xfd   :  { %v5928_v37 = vpop.f32.mrb[4].mxu1 }
  0xfe   :  { %v278_v34 = vmax.f32 %v272_v26, 0.0  ;;  %v275_v36 = vadd.f32 %v274_v10, %v234_v29  ;;  %v5323_v38 = vpop.f32.mrb[5].mxu1  ;;  %v5930_v39 = vpop.f32.mrb[4].mxu0 }
  0xff   :  { %v5935_v43 = vpop.f32.mrb[6].mxu1  ;;  %v5429_v44 = vpop.f32.mrb[5].mxu0 }
 0x100   :  { %v973_v40 = vrot.slane %v278_v34, %v5913_v22  ;;  %v1174_v41 = vrot.slane %v278_v34, %v5916_v27  ;;  %v1372_v42 = vrot.slane %v278_v34, %v5919_v28  ;;  %v5938_v45 = vrot.slane %v278_v34, %v5906_v15  ;;  %v5948_v49 = vpop.f32.mrb[7].mxu1  ;;  %v5950_v50 = vpop.f32.mrb[6].mxu0 }
 0x101   :  { %v5942_v46 = vrot.slane %v278_v34, %v1566_v31  ;;  %v1628_v47 = vrot.slane %v278_v34, %v1627_v32  ;;  %v1823_v48 = vrot.slane %v278_v34, %v1822_v33  ;;  %v2018_v54 = vrot.slane %v278_v34, %v2017_v35  ;;  %v5430_v55 = vpop.f32.mrb[7].mxu0 }
 0x102   :  { %8614 = vst [vmem:[#allocation5_spill] sm:$0xff] %v5938_v45  ;;  %v975_v51 = vcombine.high %v973_v40, %v973_v40  ;;  %v1176_v52 = vcombine.high %v1174_v41, %v1174_v41  ;;  %v5952_v53 = vrot.slane %v1174_v41, 6  ;;  %v1374_v57 = vcombine.high %v1372_v42, %v1372_v42 }
 0x103   :  { %8615 = vst [vmem:[#allocation6_spill] sm:$0xff] %v5942_v46  ;;  %v5962_v58 = vrot.slane %v1372_v42, 5  ;;  %v1630_v59 = vcombine.high %v1628_v47, %v1628_v47  ;;  %v5964_v60 = vrot.slane %v1628_v47, 7  ;;  %v5966_v61 = vrot.slane %v973_v40, 7 }
 0x104   :  { %8616 = vst [vmem:[#allocation7_spill] sm:$0xff] %v5952_v53  ;;  %v1181_v63 = vrot.slane %v5952_v53, 4  ;;  %v1182_v1 = vrot.slane %v1176_v52, 6  ;;  %v1825_v2 = vcombine.high %v1823_v48, %v1823_v48  ;;  %v1377_v0 = vrot.slane %v1374_v57, 5 }
 0x105   :  { %8619 = vst [vmem:[#allocation8_spill] sm:$0xff] %v5962_v58  ;;  %8620 = vst [vmem:[#allocation9_spill] sm:$0xff] %v5966_v61  ;;  %v1376_v4 = vrot.slane %v5962_v58, 4  ;;  %v1632_v5 = vrot.slane %v5964_v60, 4  ;;  %v1633_v6 = vrot.slane %v1630_v59, 7  ;;  %v5983_v7 = vrot.slane %v975_v51, 7 }
 0x106   :  { %v1184_v8 = vrot.slane %v1182_v1, 4  ;;  %v5985_v9 = vrot.slane %v1823_v48, 6  ;;  %v1828_v10 = vrot.slane %v1825_v2, 6  ;;  %v5987_v11 = vpop.f32.mrb[8].mxu1  ;;  %v5991_v12 = vsel %vm5970_vm9, %v1181_v63, %v1182_v1  ;;  %v5999_v19 = vpop.f32.mrb[8].mxu0 }
 0x107   :  { %8627 = vst [vmem:[#allocation12_spill] sm:$0xff] %v5991_v12  ;;  %v5995_v13 = vsel %vm5958_vm8, %v1376_v4, %v1377_v0  ;;  %v1379_v16 = vrot.slane %v1377_v0, 4  ;;  %v1635_v17 = vrot.slane %v1633_v6, 4  ;;  %v5997_v18 = vpop.f32.mrb[9].mxu1  ;;  %v6003_v20 = vsel %vm5977_vm10, %v1632_v5, %v1633_v6  ;;  %v5433_v26 = vpop.f32.mrb[9].mxu0 }
 0x108   :  { %8626 = vst [vmem:[#allocation11_spill] sm:$0xff] %v5985_v9  ;;  %8628 = vst [vmem:[#allocation13_spill] sm:$0xff] %v5995_v13  ;;  %v1827_v21 = vrot.slane %v5985_v9, 4  ;;  %v1830_v23 = vrot.slane %v1828_v10, 4  ;;  %v2020_v24 = vcombine.high %v2018_v54, %v2018_v54  ;;  %v6006_v25 = vpop.f32.mrb[10].mxu1  ;;  %v6011_v29 = vsel %vm5970_vm9, %v1184_v8, %v5952_v53  ;;  %v6020_v44 = vpop.f32.mrb[10].mxu0 }
 0x109   :  { %8629 = vst [vmem:[#allocation14_spill] sm:$0xff] %v6011_v29  ;;  %v6016_v34 = vsel %vm5958_vm8, %v1379_v16, %v5962_v58  ;;  %v6018_v40 = vrot.slane %v2018_v54, 5  ;;  %v279_v41 = vmax.f32 %v275_v36, 0.0  ;;  %v5332_v42 = vpop.f32.mrb[11].mxu1  ;;  %v6025_v47 = vsel %vm5977_vm10, %v1635_v17, %v5964_v60  ;;  %v5434_v55 = vpop.f32.mrb[11].mxu0 }
 0x10a   :  { %8631 = vst [vmem:[#allocation16_spill] sm:$0xff] %v6025_v47  ;;  %v6029_v48 = vsel %vm5970_vm9, %v1827_v21, %v1828_v10  ;;  %v2023_v51 = vrot.slane %v2020_v24, 5  ;;  %v5324_v52 = vadd.f32 %v5323_v38, %v5928_v37  ;;  %v6035_v36 = vsel %vm5970_vm9, %v1830_v23, %v5985_v9 }
 0x10b   :  { %8630 = vst [vmem:[#allocation15_spill] sm:$0xff] %v6018_v40  ;;  %8632 = vst [vmem:[#allocation17_spill] sm:$0xff] %v6029_v48  ;;  %v2022_v54 = vrot.slane %v6018_v40, 4  ;;  %v2274_v57 = vrot.slane %v279_v41, %v5913_v22  ;;  %v2469_v59 = vrot.slane %v279_v41, %v5916_v27  ;;  %v6041_v1 = vrot.slane %v279_v41, %v5906_v15 }
 0x10c   :  { %8633 = vst [vmem:[#allocation18_spill] sm:$0xff] %v6035_v36  ;;  %v2025_v63 = vrot.slane %v2023_v51, 4  ;;  %v2664_v2 = vrot.slane %v279_v41, %v5919_v28  ;;  %v6046_v37 = vrot.slane %v279_v41, %v1566_v31  ;;  %v6052_v5 = vrot.slane %v279_v41, %v1627_v32 }
 0x10d   :  { %8634 = vst [vmem:[#allocation19_spill] sm:$0xff] %v6041_v1  ;;  %v2276_v38 = vcombine.high %v2274_v57, %v2274_v57  ;;  %v6048_v4 = vrot.slane %v2274_v57, 7  ;;  %v2471_v0 = vcombine.high %v2469_v59, %v2469_v59  ;;  %v6056_v22 = vsel %vm5958_vm8, %v2022_v54, %v2023_v51  ;;  %v5334_v10 = vpop.f32.mrb[12].mxu1 }
 0x10e   :  { %8635 = vst [vmem:[#allocation20_spill] sm:$0xff] %v6046_v37  ;;  %8637 = vst [vmem:[#allocation22_spill] sm:$0xff] %v6052_v5  ;;  %v6058_v15 = vrot.slane %v2469_v59, 6  ;;  %v2666_v6 = vcombine.high %v2664_v2, %v2664_v2  ;;  %v6060_v8 = vrot.slane %v2664_v2, 5  ;;  %v6065_v31 = vsel %vm5958_vm8, %v2025_v63, %v6018_v40  ;;  %v5335_v21 = vpop.f32.mrb[13].mxu1  ;;  %v6070_v23 = vpop.f32.mrb[12].mxu0 }
 0x10f   :  { %8636 = vst [vmem:[#allocation21_spill] sm:$0xff] %v6048_v4  ;;  %8638 = vst [vmem:[#allocation23_spill] sm:$0xff] %v6056_v22  ;;  %v2278_v16 = vrot.slane %v6048_v4, 4  ;;  %v2279_v17 = vrot.slane %v2276_v38, 7  ;;  %v6068_v32 = vrot.slane %v2471_v0, 6  ;;  %v6078_v55 = vrot.slane %v279_v41, %v1822_v33  ;;  %v5337_v54 = vpop.f32.mrb[14].mxu1 }
 0x110   :  { %8639 = vst [vmem:[#allocation24_spill] sm:$0xff] %v6058_v15  ;;  %8640 = vst [vmem:[#allocation25_spill] sm:$0xff] %v6060_v8  ;;  %v2473_v24 = vrot.slane %v6058_v15, 4  ;;  %v2668_v26 = vrot.slane %v6060_v8, 4  ;;  %v6074_v51 = vrot.slane %v2666_v6, 5  ;;  %v5437_v57 = vpop.f32.mrb[13].mxu0  ;;  %v6089_v38 = vrot.slane %v279_v41, %v2017_v35 }
 0x111   :  { %8641 = vst [vmem:[#allocation26_spill] sm:$0xff] %v6065_v31  ;;  %8642 = vst [vmem:[#allocation27_spill] sm:$0xff] %v6068_v32  ;;  %v6082_v59 = vsel %vm5977_vm10, %v2278_v16, %v2279_v17  ;;  %v2281_v63 = vrot.slane %v2279_v17, 4  ;;  %v6085_v2 = vrot.slane %v6052_v5, 7  ;;  %v5338_v0 = vpop.f32.mrb[15].mxu1  ;;  %v6091_v6 = vpop.f32.mrb[14].mxu0  ;;  %v5330_v17 = vadd.f32 %v5997_v18, %v5987_v11 }
 0x112   :  { %8643 = vst [vmem:[#allocation28_spill] sm:$0xff] %v6074_v51  ;;  %8644 = vst [vmem:[#allocation29_spill] sm:$0xff] %v6078_v55  ;;  %v6096_v33 = vsel %vm5970_vm9, %v2473_v24, %v6068_v32  ;;  %v6102_v16 = vsel %vm5958_vm8, %v2668_v26, %v6074_v51  ;;  %v5438_v28 = vpop.f32.mrb[15].mxu0  ;;  %v6111_v41 = vrot.slane %v6078_v55, 6  ;;  %v662_v24 = vadd.f32 %v5324_v52, %v5922_v30 }
 0x113   :  { %8645 = vst [vmem:[#allocation30_spill] sm:$0xff] %v6082_v59  ;;  %8646 = vst [vmem:[#allocation31_spill] sm:$0xff] %v6085_v2  ;;  %v6108_v35 = vsel %vm5977_vm10, %v2281_v63, %v6048_v4  ;;  %v980_v57 = vrot.slane %v5966_v61, 4  ;;  %v6116_v27 = vrot.slane %v6089_v38, 5  ;;  %v5327_v26 = vadd.f32 %v5948_v49, %v5935_v43 }
 0x114   :  { %8647 = vst [vmem:[#allocation32_spill] sm:$0xff] %v6089_v38  ;;  %8648 = vst [vmem:[#allocation33_spill] sm:$0xff] %v6096_v33  ;;  %v983_v28 = vrot.slane %v5983_v7, 4  ;;  %v767_v63 = vadd.f32 %v5930_v39, %v662_v24  ;;  %v6131_v52 = vcombine.high %v5938_v45, %v5938_v45  ;;  %v670_v49 = vadd.f32 %v5330_v17, %v5922_v30 }
 0x115   :  { %8649 = vst [vmem:[#allocation34_spill] sm:$0xff] %v6102_v16  ;;  %8650 = vst [vmem:[#allocation35_spill] sm:$0xff] %v6108_v35  ;;  %v6127_v14 = vsel %vm5977_vm10, %v980_v57, %v5983_v7  ;;  %v665_v43 = vadd.f32 %v5327_v26, %v5922_v30  ;;  %v6138_v11 = vcombine.high %v5942_v46, %v5942_v46  ;;  %v5340_v18 = vpop.f32.mrb[16].mxu1 }
 0x116   :  { %8651 = vst [vmem:[#allocation36_spill] sm:$0xff] %v6111_v41  ;;  %8652 = vst [vmem:[#allocation37_spill] sm:$0xff] %v6116_v27  ;;  %v5333_v27 = vadd.f32 %v5332_v42, %v6006_v25  ;;  %v5336_v39 = vadd.f32 %v5335_v21, %v5334_v10  ;;  %v837_v24 = vmax.f32 %v767_v63, 0.0  ;;  %v6143_v7 = vsel %vm5977_vm10, %v983_v28, %v5966_v61  ;;  %v5341_v25 = vpop.f32.mrb[17].mxu1  ;;  %v6148_v42 = vpop.f32.mrb[16].mxu0 }
 0x117   :  { %8653 = vst [vmem:[#allocation38_spill] sm:$0xff] %v6127_v14  ;;  %8654 = vst [vmem:[#allocation39_spill] sm:$0xff] %v6131_v52  ;;  %v6146_v38 = vadd.f32 %v5338_v0, %v5337_v54  ;;  %v770_v17 = vadd.f32 %v5950_v50, %v665_v43  ;;  %v775_v26 = vadd.f32 %v5999_v19, %v670_v49  ;;  %v6154_v10 = vpop.f32.mrb[18].mxu1  ;;  %v5441_v21 = vpop.f32.mrb[17].mxu0 }
 0x118   :  { %8655 = vst [vmem:[#allocation40_spill] sm:$0xff] %v6143_v7  ;;  %v673_v57 = vadd.f32 %v5333_v27, %v5922_v30  ;;  %v6152_v41 = vadd.f32 %v5341_v25, %v5340_v18  ;;  %v6158_v28 = vcombine.high %v6041_v1, %v6041_v1  ;;  %v873_v63 = vcombine.high %v837_v24, %v837_v24  ;;  %v6165_v50 = vpop.f32.mrb[19].mxu1  ;;  %v6167_v19 = vpop.f32.mrb[18].mxu0 }
 0x119   :  { %v988_v27 = vmul.f32 %v5966_v61, %v837_v24  ;;  %v1189_v54 = vmul.f32 %v5952_v53, %v837_v24  ;;  %v6163_v0 = vadd.f32 %v5336_v39, %v5922_v30  ;;  %v916_v43 = vmul.f32 %v5938_v45, %v837_v24  ;;  %v5442_v21 = vpop.f32.mrb[19].mxu0 }
 0x11a   :  { %8656 = vst [vmem:[#allocation41_spill] sm:$0xff] %v6158_v28  ;;  %v1384_v49 = vmul.f32 %v5962_v58, %v837_v24  ;;  %v838_v18 = vmax.f32 %v770_v17, 0.0  ;;  %v6172_v25 = vadd.f32 %v6020_v44, %v673_v57  ;;  %v989_v55 = vmul.f32 %v6127_v14, %v873_v63 }
 0x11b   :  { %v5097_v2 = vrot.slane %v988_v27, 9  ;;  %v1190_v16 = vmul.f32 %v5991_v12, %v873_v63  ;;  %v6176_v39 = vmax.f32 %v775_v26, 0.0  ;;  %v5106_v33 = vrot.slane %v1189_v54, 10 }
 0x11c   :  { %v1385_v35 = vmul.f32 %v5995_v13, %v873_v63  ;;  %v5115_v59 = vrot.slane %v1384_v49, 11  ;;  %v6179_v4 = vcombine.high %v838_v18, %v838_v18  ;;  %v1047_v28 = vrot.slane %v989_v55, 5 }
 0x11d   :  { %v1245_v24 = vrot.slane %v1190_v16, 6  ;;  %v917_v17 = vmul.f32 %v6131_v52, %v873_v63  ;;  %v990_v44 = vmul.f32 %v6143_v7, %v838_v18  ;;  %v918_v21 = vmul.f32 %v5938_v45, %v838_v18  ;;  %v6189_v54 = vpop.f32.mrb[20].mxu1 }
 0x11e   :  { %8657 = vst [vmem:[#allocation42_spill] sm:$0xff] %v6179_v4  ;;  %v1440_v57 = vrot.slane %v1385_v35, 7  ;;  %v6186_v27 = vmul.f32 %v5966_v61, %v6179_v4  ;;  %v1191_v26 = vmul.f32 %v6011_v29, %v838_v18  ;;  %v1048_v49 = vsel %vm5958_vm8, %v5097_v2, %v1047_v28  ;;  %v6197_v35 = vpop.f32.mrb[21].mxu1  ;;  %v6199_v1 = vpop.f32.mrb[20].mxu0 }
 0x11f   :  { %v6195_v55 = vmul.f32 %v5938_v45, %v6179_v4  ;;  %v1049_v16 = vrot.slane %v1047_v28, 4  ;;  %v1050_v63 = vrot.slane %v990_v44, 5  ;;  %v1144_v31 = vadd.f32 %v1048_v49, %v916_v43  ;;  %v6207_v9 = vpop.f32.mrb[22].mxu1  ;;  %v5445_v47 = vpop.f32.mrb[21].mxu0 }
 0x120   :  { %v1246_v40 = vsel %vm5970_vm9, %v5106_v33, %v1245_v24  ;;  %v1441_v36 = vsel %vm5977_vm10, %v5115_v59, %v1440_v57  ;;  %v1192_v2 = vmul.f32 %v5952_v53, %v6179_v4  ;;  %v1247_v46 = vrot.slane %v1245_v24, 4  ;;  %v6211_v5 = vpop.f32.mrb[23].mxu1  ;;  %v6213_v43 = vpop.f32.mrb[22].mxu0 }
 0x121   :  { %v1051_v28 = vsel %vm5958_vm8, %v1049_v16, %v1050_v63  ;;  %v1052_v44 = vrot.slane %v1050_v63, 4  ;;  %v1248_v61 = vrot.slane %v1191_v26, 6  ;;  %v1342_v33 = vadd.f32 %v1246_v40, %v1144_v31  ;;  %v5446_v53 = vpop.f32.mrb[23].mxu0 }
 0x122   :  { %v5098_v49 = vrot.slane %v6186_v27, 9  ;;  %v1145_v59 = vadd.f32 %v1051_v28, %v917_v17  ;;  %v1386_v37 = vmul.f32 %v6016_v34, %v838_v18  ;;  %v6221_v24 = vmul.f32 %v5962_v58, %v6179_v4 }
 0x123   :  { %v1146_v51 = vadd.f32 %v1052_v44, %v918_v21  ;;  %v1249_v47 = vsel %vm5970_vm9, %v1247_v46, %v1248_v61  ;;  %v1250_v8 = vrot.slane %v1248_v61, 4  ;;  %v5107_v26 = vrot.slane %v1192_v2, 10 }
 0x124   :  { %8658 = vst [vmem:[#allocation43_spill] sm:$0xff] %v6221_v24  ;;  %v1343_v16 = vadd.f32 %v1249_v47, %v1145_v59  ;;  %v1442_v63 = vrot.slane %v1440_v57, 4  ;;  %v1443_v32 = vrot.slane %v1386_v37, 7  ;;  %v6223_v40 = vadd.f32 %v1441_v36, %v1342_v33 }
 0x125   :  { %v1344_v31 = vadd.f32 %v1250_v8, %v1146_v51  ;;  %v6228_v53 = vcombine.high %v6176_v39, %v6176_v39  ;;  %v6234_v18 = vmul.f32 %v5964_v60, %v6179_v4  ;;  %v992_v37 = vmul.f32 %v6127_v14, %v6176_v39  ;;  %v5352_v36 = vpop.f32.mrb[24].mxu1 }
 0x126   :  { %8659 = vst [vmem:[#allocation44_spill] sm:$0xff] %v6223_v40  ;;  %v1444_v46 = vsel %vm5977_vm10, %v1442_v63, %v1443_v32  ;;  %v1445_v61 = vrot.slane %v1443_v32, 4  ;;  %v920_v8 = vmul.f32 %v6131_v52, %v6176_v39  ;;  %v1193_v21 = vmul.f32 %v5991_v12, %v6176_v39  ;;  %v5353_v32 = vpop.f32.mrb[25].mxu1  ;;  %v6246_v27 = vpop.f32.mrb[24].mxu0 }
 0x127   :  { %8660 = vst [vmem:[#allocation45_spill] sm:$0xff] %v6228_v53  ;;  %8661 = vst [vmem:[#allocation46_spill] sm:$0xff] %v6234_v18  ;;  %v6238_v57 = vadd.f32 %v1444_v46, %v1343_v16  ;;  %v993_v51 = vmul.f32 %v6143_v7, %v6228_v53  ;;  %v921_v2 = vmul.f32 %v5938_v45, %v6228_v53  ;;  %v1055_v28 = vrot.slane %v992_v37, 5  ;;  %v5355_v59 = vpop.f32.mrb[26].mxu1  ;;  %v5449_v47 = vpop.f32.mrb[25].mxu0 }
 0x128   :  { %v1194_v44 = vmul.f32 %v6011_v29, %v6228_v53  ;;  %v6254_v33 = vmul.f32 %v5995_v13, %v6176_v39  ;;  %v6256_v16 = vadd.f32 %v1445_v61, %v1344_v31  ;;  %v1253_v46 = vrot.slane %v1193_v21, 6  ;;  %v5356_v18 = vpop.f32.mrb[27].mxu1 }
 0x129   :  { %8662 = vst [vmem:[#allocation47_spill] sm:$0xff] %v6238_v57  ;;  %v1058_v63 = vrot.slane %v993_v51, 5  ;;  %v6260_v17 = vmul.f32 %v6003_v20, %v6176_v39  ;;  %v809_v57 = vpop.f32.mrb[26].mxu0  ;;  %v1056_v37 = vsel %vm5958_vm8, %v5098_v49, %v1055_v28  ;;  %v1057_v40 = vrot.slane %v1055_v28, 4 }
 0x12a   :  { %v1256_v4 = vrot.slane %v1194_v44, 6  ;;  %v8390_v24 = vrot.slane %v6254_v33, 7  ;;  %v5450_v53 = vpop.f32.mrb[27].mxu0  ;;  %v6266_v31 = vadd.f32 %v1056_v37, %v6195_v55  ;;  %v6270_v61 = vsel %vm5970_vm9, %v5107_v26, %v1253_v46 }
 0x12b   :  { %8663 = vst [vmem:[#allocation48_spill] sm:$0xff] %v6260_v17  ;;  %v1060_v3 = vrot.slane %v1058_v63, 4  ;;  %v1255_v51 = vrot.slane %v1253_v46, 4  ;;  %v1059_v21 = vsel %vm5958_vm8, %v1057_v40, %v1058_v63  ;;  %v6278_v49 = vmul.f32 %v6138_v11, %v6176_v39 }
 0x12c   :  { %v6274_v47 = vrot.slane %v1256_v4, 4  ;;  %v8389_v53 = vrot.slane %v6260_v17, 5  ;;  %v1148_v28 = vadd.f32 %v1059_v21, %v920_v8  ;;  %v6285_v55 = vrot.slane %v8390_v24, 4 }
 0x12d   :  { %v6281_v44 = vadd.f32 %v1060_v3, %v921_v2  ;;  %v6289_v26 = vmul.f32 %v6029_v48, %v6176_v39  ;;  %v1257_v40 = vsel %vm5970_vm9, %v1255_v51, %v1256_v4  ;;  %v6298_v46 = vmax.f32 %v6172_v25, 0.0  ;;  %v5358_v8 = vpop.f32.mrb[28].mxu1 }
 0x12e   :  { %v6295_v63 = vrot.slane %v8389_v53, 4  ;;  %v783_v3 = vadd.f32 %v6070_v23, %v6163_v0  ;;  %v6302_v2 = vadd.f32 %v1257_v40, %v1148_v28  ;;  %v6306_v37 = vmul.f32 %v6056_v22, %v6176_v39  ;;  %v5359_v21 = vpop.f32.mrb[29].mxu1  ;;  %v814_v53 = vpop.f32.mrb[28].mxu0 }
 0x12f   :  { %8664 = vst [vmem:[#allocation49_spill] sm:$0xff] %v6289_v26  ;;  %v681_v4 = vadd.f32 %v6146_v38, %v5922_v30  ;;  %v686_v51 = vadd.f32 %v6152_v41, %v5922_v30  ;;  %v5345_v23 = vadd.f32 %v6165_v50, %v6154_v10  ;;  %v5348_v0 = vadd.f32 %v6197_v35, %v6189_v54  ;;  %v5361_v39 = vpop.f32.mrb[30].mxu1  ;;  %v5453_v28 = vpop.f32.mrb[29].mxu0  ;;  %v8713_v26 = vld [vmem:[#allocation18_spill] sm:$0xff] }
 0x130   :  { %8665 = vst [vmem:[#allocation50_spill] sm:$0xff] %v6295_v63  ;;  %8666 = vst [vmem:[#allocation51_spill] sm:$0xff] %v6306_v37  ;;  %v6313_v24 = vmax.f32 %v783_v3, 0.0  ;;  %v5351_v41 = vadd.f32 %v6211_v5, %v6207_v9  ;;  %v5354_v37 = vadd.f32 %v5353_v32, %v5352_v36  ;;  %v5362_v63 = vpop.f32.mrb[31].mxu1  ;;  %v817_v25 = vpop.f32.mrb[30].mxu0  ;;  %v6325_v3 = vcombine.high %v6298_v46, %v6298_v46 }
 0x131   :  { %v786_v40 = vadd.f32 %v6091_v6, %v681_v4  ;;  %v791_v38 = vadd.f32 %v6148_v42, %v686_v51  ;;  %v689_v10 = vadd.f32 %v5345_v23, %v5922_v30  ;;  %v694_v50 = vadd.f32 %v5348_v0, %v5922_v30  ;;  %v5454_v35 = vpop.f32.mrb[31].mxu0 }
 0x132   :  { %v5357_v54 = vadd.f32 %v5356_v18, %v5355_v59  ;;  %v697_v42 = vadd.f32 %v5351_v41, %v5922_v30  ;;  %v702_v9 = vadd.f32 %v5354_v37, %v5922_v30  ;;  %v5360_v4 = vadd.f32 %v5359_v21, %v5358_v8 }
 0x133   :  { %v6329_v28 = vmax.f32 %v786_v40, 0.0  ;;  %v6331_v6 = vmax.f32 %v791_v38, 0.0  ;;  %v794_v5 = vadd.f32 %v6167_v19, %v689_v10  ;;  %v799_v36 = vadd.f32 %v6199_v1, %v694_v50 }
 0x134   :  { %v705_v32 = vadd.f32 %v5357_v54, %v5922_v30  ;;  %v6340_v51 = vcombine.high %v6313_v24, %v6313_v24  ;;  %v802_v59 = vadd.f32 %v6213_v43, %v697_v42  ;;  %v807_v23 = vadd.f32 %v6246_v27, %v702_v9  ;;  %v8678_v42 = vld [vmem:[#allocation27_spill] sm:$0xff] }
 0x135   :  { %8667 = vst [vmem:[#allocation52_spill] sm:$0xff] %v6329_v28  ;;  %8668 = vst [vmem:[#allocation53_spill] sm:$0xff] %v6331_v6  ;;  %v6344_v18 = vcombine.high %v6329_v28, %v6329_v28  ;;  %v6348_v37 = vmax.f32 %v794_v5, 0.0  ;;  %v6350_v19 = vmax.f32 %v799_v36, 0.0  ;;  %v710_v0 = vadd.f32 %v5360_v4, %v5922_v30  ;;  %v5364_v8 = vpop.f32.mrb[32].mxu1 }
 0x136   :  { %8669 = vst [vmem:[#allocation54_spill] sm:$0xff] %v6340_v51  ;;  %v810_v1 = vadd.f32 %v809_v57, %v705_v32  ;;  %v6355_v21 = vcombine.high %v6331_v6, %v6331_v6  ;;  %v6357_v40 = vmax.f32 %v802_v59, 0.0  ;;  %v6359_v38 = vmax.f32 %v807_v23, 0.0  ;;  %v5365_v43 = vpop.f32.mrb[33].mxu1  ;;  %v822_v10 = vpop.f32.mrb[32].mxu0 }
 0x137   :  { %8670 = vst [vmem:[#allocation55_spill] sm:$0xff] %v6344_v18  ;;  %8671 = vst [vmem:[#allocation56_spill] sm:$0xff] %v6348_v37  ;;  %v5363_v41 = vadd.f32 %v5362_v63, %v5361_v39  ;;  %v6363_v27 = vcombine.high %v6348_v37, %v6348_v37  ;;  %v6367_v57 = vcombine.high %v6350_v19, %v6350_v19  ;;  %v5367_v54 = vpop.f32.mrb[34].mxu1  ;;  %v5457_v35 = vpop.f32.mrb[33].mxu0  ;;  %v8679_v9 = vrot.slane %v8678_v42, 4  ;;  %v8685_v42 = vld [vmem:[#allocation25_spill] sm:$0xff] }
 0x138   :  { %8672 = vst [vmem:[#allocation57_spill] sm:$0xff] %v6350_v19  ;;  %8673 = vst [vmem:[#allocation58_spill] sm:$0xff] %v6355_v21  ;;  %v815_v50 = vadd.f32 %v814_v53, %v710_v0  ;;  %v6378_v63 = vcombine.high %v6357_v40, %v6357_v40  ;;  %v6380_v39 = vmax.f32 %v810_v1, 0.0  ;;  %v5366_v32 = vadd.f32 %v5365_v43, %v5364_v8  ;;  %v5368_v4 = vpop.f32.mrb[35].mxu1  ;;  %v825_v53 = vpop.f32.mrb[34].mxu0 }
 0x139   :  { %8674 = vst [vmem:[#allocation59_spill] sm:$0xff] %v6357_v40  ;;  %8675 = vst [vmem:[#allocation60_spill] sm:$0xff] %v6359_v38  ;;  %v6374_v5 = vsel %vm5970_vm9, %v8679_v9, %v6058_v15  ;;  %v713_v36 = vadd.f32 %v5363_v41, %v5922_v30  ;;  %v6385_v59 = vcombine.high %v6359_v38, %v6359_v38  ;;  %v5458_v35 = vpop.f32.mrb[35].mxu0  ;;  %v8686_v9 = vld [vmem:[#allocation28_spill] sm:$0xff]  ;;  %v8691_v38 = vld [vmem:[#allocation22_spill] sm:$0xff] }
 0x13a   :  { %8676 = vst [vmem:[#allocation61_spill] sm:$0xff] %v6363_v27  ;;  %8677 = vst [vmem:[#allocation62_spill] sm:$0xff] %v6367_v57  ;;  %v6387_v23 = vmax.f32 %v815_v50, 0.0  ;;  %v5369_v0 = vadd.f32 %v5368_v4, %v5367_v54  ;;  %v8687_v57 = vrot.slane %v8686_v9, 4  ;;  %v718_v8 = vadd.f32 %v5366_v32, %v5922_v30  ;;  %v8689_v41 = vld [vmem:[#allocation20_spill] sm:$0xff]  ;;  %v8695_v9 = vld [vmem:[#allocation7_spill] sm:$0xff] }
 0x13b   :  { %8680 = vst [vmem:[#allocation27_spill] sm:$0xff] %v6374_v5  ;;  %8681 = vst [vmem:[#allocation63_spill] sm:$0xff] %v6378_v63  ;;  %v818_v63 = vadd.f32 %v817_v25, %v713_v36  ;;  %v6399_v43 = vcombine.high %v8689_v41, %v8689_v41  ;;  %v8693_v25 = vld [vmem:[#allocation9_spill] sm:$0xff] }
 0x13c   :  { %8682 = vst [vmem:[#allocation64_spill] sm:$0xff] %v6380_v39  ;;  %8683 = vst [vmem:[#allocation65_spill] sm:$0xff] %v6385_v59  ;;  %v6394_v1 = vsel %vm5958_vm8, %v8687_v57, %v8685_v42  ;;  %v6405_v54 = vcombine.high %v6387_v23, %v6387_v23  ;;  %v721_v4 = vadd.f32 %v5369_v0, %v5922_v30 }
 0x13d   :  { %8684 = vst [vmem:[#allocation66_spill] sm:$0xff] %v6387_v23  ;;  %8688 = vst [vmem:[#allocation28_spill] sm:$0xff] %v6394_v1  ;;  %v940_v57 = vmul.f32 %v5938_v45, %v6387_v23  ;;  %v1012_v36 = vmul.f32 %v8693_v25, %v6387_v23  ;;  %v6412_v32 = vmax.f32 %v818_v63, 0.0  ;;  %v823_v35 = vadd.f32 %v822_v10, %v718_v8  ;;  %v5370_v19 = vpop.f32.mrb[36].mxu1 }
 0x13e   :  { %8690 = vst [vmem:[#allocation67_spill] sm:$0xff] %v6399_v43  ;;  %8692 = vst [vmem:[#allocation22_spill] sm:$0xff] %v6405_v54  ;;  %v1213_v59 = vmul.f32 %v8695_v9, %v6387_v23  ;;  %v1408_v50 = vmul.f32 %v5962_v58, %v6387_v23  ;;  %v826_v40 = vadd.f32 %v825_v53, %v721_v4  ;;  %v5371_v63 = vpop.f32.mrb[37].mxu1  ;;  %v830_v25 = vpop.f32.mrb[36].mxu0 }
 0x13f   :  { %8694 = vst [vmem:[#allocation68_spill] sm:$0xff] %v6412_v32  ;;  %v941_v0 = vmul.f32 %v6131_v52, %v6405_v54  ;;  %v1013_v27 = vmul.f32 %v6127_v14, %v6405_v54  ;;  %v5105_v45 = vrot.slane %v1012_v36, 9  ;;  %v6422_v37 = vmax.f32 %v823_v35, 0.0  ;;  %v5373_v58 = vpop.f32.mrb[38].mxu1  ;;  %v5461_v36 = vpop.f32.mrb[37].mxu0 }
 0x140   :  { %v6426_v10 = vcombine.high %v6412_v32, %v6412_v32  ;;  %v6430_v8 = vmul.f32 %v6143_v7, %v6412_v32  ;;  %v1214_v53 = vmul.f32 %v5991_v12, %v6405_v54  ;;  %v6434_v4 = vmax.f32 %v826_v40, 0.0  ;;  %v5374_v52 = vpop.f32.mrb[39].mxu1  ;;  %v833_v7 = vpop.f32.mrb[38].mxu0 }
 0x141   :  { %8696 = vst [vmem:[#allocation69_spill] sm:$0xff] %v6422_v37  ;;  %v5372_v23 = vadd.f32 %v5371_v63, %v5370_v19  ;;  %v1111_v35 = vrot.slane %v1013_v27, 5  ;;  %v6438_v9 = vmul.f32 %v6011_v29, %v6412_v32  ;;  %v6442_v14 = vcombine.high %v6422_v37, %v6422_v37  ;;  %v5462_v36 = vpop.f32.mrb[39].mxu0 }
 0x142   :  { %8697 = vst [vmem:[#allocation70_spill] sm:$0xff] %v6426_v10  ;;  %8698 = vst [vmem:[#allocation71_spill] sm:$0xff] %v6430_v8  ;;  %v5114_v6 = vrot.slane %v1213_v59, 10  ;;  %v1309_v12 = vrot.slane %v1214_v53, 6  ;;  %v6447_v19 = vcombine.high %v6434_v4, %v6434_v4  ;;  %v5375_v40 = vadd.f32 %v5374_v52, %v5373_v58 }
 0x143   :  { %8699 = vst [vmem:[#allocation72_spill] sm:$0xff] %v6434_v4  ;;  %8700 = vst [vmem:[#allocation73_spill] sm:$0xff] %v6438_v9  ;;  %v726_v27 = vadd.f32 %v5372_v23, %v5922_v30  ;;  %v1112_v63 = vsel %vm5958_vm8, %v5105_v45, %v1111_v35  ;;  %v1113_v29 = vrot.slane %v1111_v35, 4  ;;  %v8426_v53 = vrot.slane %v6438_v9, 6 }
 0x144   :  { %8701 = vst [vmem:[#allocation74_spill] sm:$0xff] %v6442_v14  ;;  %8702 = vst [vmem:[#allocation75_spill] sm:$0xff] %v6447_v19  ;;  %v1168_v18 = vadd.f32 %v1112_v63, %v940_v57  ;;  %v1310_v28 = vsel %vm5970_vm9, %v5114_v6, %v1309_v12  ;;  %v1311_v51 = vrot.slane %v1309_v12, 4  ;;  %v729_v59 = vadd.f32 %v5375_v40, %v5922_v30  ;;  %v5604_v30 = vld [vmem:[%s8341_s3 + $0x30] sm:$0xff]   ;;  %v5605_v12 = vld [vmem:[%s8341_s3 + $0x38] sm:$0xff]  }
 0x145   :  { %v831_v21 = vadd.f32 %v830_v25, %v726_v27  ;;  %v1409_v58 = vmul.f32 %v5995_v13, %v6405_v54  ;;  %v8703_v52 = vrot.slane %v6430_v8, 5  ;;  %v6464_v57 = vmul.f32 %v6016_v34, %v6412_v32  ;;  %5475 = vmatprep.subr.bf16.mxu0 %v5604_v30 }
 0x146   :  { %v1366_v23 = vadd.f32 %v1310_v28, %v1168_v18  ;;  %v5123_v6 = vrot.slane %v1408_v50, 11  ;;  %v834_v35 = vadd.f32 %v833_v7, %v729_v59  ;;  %v8706_v50 = vld [vmem:[#allocation6_spill] sm:$0xff]  ;;  %v1596_v63 = vmul.f32 %v6138_v11, %v6422_v37  ;;  %5476 = vmatpush3.bf16.msra.mxu0 %v5604_v30  ;;  %v8711_v30 = vld [vmem:[#allocation11_spill] sm:$0xff] }
 0x147   :  { %v1115_v45 = vsel %vm5958_vm8, %v1113_v29, %v8703_v52  ;;  %8704 = vst [vmem:[#allocation76_spill] sm:$0xff] %v6464_v57  ;;  %v6472_v25 = vmax.f32 %v831_v21, 0.0  ;;  %v1313_v29 = vsel %vm5970_vm9, %v1311_v51, %v8426_v53  ;;  %v1504_v28 = vrot.slane %v1409_v58, 7  ;;  %5477 = vmatprep.subr.bf16.mxu0 %v5605_v12 }
 0x148   :  { %v1169_v40 = vadd.f32 %v1115_v45, %v941_v0  ;;  %v1595_v27 = vmul.f32 %v8706_v50, %v6426_v10  ;;  %v6483_v36 = vmax.f32 %v834_v35, 0.0  ;;  %v1664_v51 = vmul.f32 %v5964_v60, %v6426_v10  ;;  %v8708_v45 = vld [vmem:[#allocation16_spill] sm:$0xff] }
 0x149   :  { %8705 = vst [vmem:[#allocation77_spill] sm:$0xff] %v6472_v25  ;;  %v6487_v7 = vcombine.high %v6472_v25, %v6472_v25  ;;  %v1505_v59 = vsel %vm5977_vm10, %v5123_v6, %v1504_v28  ;;  %v1506_v58 = vrot.slane %v1504_v28, 4  ;;  %v1665_v52 = vmul.f32 %v6003_v20, %v6422_v37 }
 0x14a   :  { %v1367_v21 = vadd.f32 %v1313_v29, %v1169_v40  ;;  %v6497_v35 = vmul.f32 %v8708_v45, %v6442_v14  ;;  %v6501_v53 = vcombine.high %v6483_v36, %v6483_v36  ;;  %v1561_v40 = vadd.f32 %v1505_v59, %v1366_v23  ;;  %5478 = vmatpush3.bf16.msra.mxu0 %v5605_v12 }
 0x14b   :  { %v5132_v29 = vrot.slane %v1664_v51, 9  ;;  %v1859_v18 = vmul.f32 %v8711_v30, %v6426_v10  ;;  %v8712_v6 = vrot.slane %v6464_v57, 7  ;;  %v1760_v9 = vrot.slane %v1665_v52, 5 }
 0x14c   :  { %8709 = vst [vmem:[#allocation6_spill] sm:$0xff] %v6497_v35  ;;  %8710 = vst [vmem:[#allocation10_spill] sm:$0xff] %v6501_v53  ;;  %v1860_v32 = vmul.f32 %v6029_v48, %v6422_v37  ;;  %v1622_v13 = vadd.f32 %v1595_v27, %v1561_v40  ;;  %v6514_v23 = vmul.f32 %v8713_v26, %v6442_v14 }
 0x14d   :  { %v1508_v28 = vsel %vm5977_vm10, %v1506_v58, %v8712_v6  ;;  %v5141_v51 = vrot.slane %v1859_v18, 10  ;;  %v1761_v59 = vsel %vm5958_vm8, %v5132_v29, %v1760_v9  ;;  %v1762_v57 = vrot.slane %v1760_v9, 4  ;;  %v8715_v58 = vld [vmem:[#allocation15_spill] sm:$0xff] }
 0x14e   :  { %v1562_v54 = vadd.f32 %v1508_v28, %v1367_v21  ;;  %8714 = vst [vmem:[#allocation78_spill] sm:$0xff] %v6514_v23  ;;  %v1955_v17 = vrot.slane %v1860_v32, 6  ;;  %v2054_v52 = vmul.f32 %v8715_v58, %v6426_v10  ;;  %v1817_v8 = vadd.f32 %v1761_v59, %v1622_v13  ;;  %v8717_v32 = vld [vmem:[#allocation26_spill] sm:$0xff] }
 0x14f   :  { %v8442_v48 = vrot.slane %v6514_v23, 6  ;;  %v2055_v27 = vmul.f32 %v6056_v22, %v6422_v37  ;;  %v8716_v21 = vrot.slane %v6497_v35, 5  ;;  %v6531_v40 = vmul.f32 %v8717_v32, %v6442_v14 }
 0x150   :  { %v1623_v6 = vadd.f32 %v1596_v63, %v1562_v54  ;;  %v1956_v18 = vsel %vm5970_vm9, %v5141_v51, %v1955_v17  ;;  %v1957_v9 = vrot.slane %v1955_v17, 4  ;;  %v5150_v63 = vrot.slane %v2054_v52, 11  ;;  %v8720_v17 = vld [vmem:[#allocation41_spill] sm:$0xff] }
 0x151   :  { %v1764_v12 = vsel %vm5958_vm8, %v1762_v57, %v8716_v21  ;;  %8718 = vst [vmem:[#allocation79_spill] sm:$0xff] %v6531_v40  ;;  %v2012_v13 = vadd.f32 %v1956_v18, %v1817_v8  ;;  %v2150_v29 = vrot.slane %v2055_v27, 7  ;;  %v8719_v57 = vld [vmem:[#allocation19_spill] sm:$0xff]  ;;  %v2242_v51 = vmul.f32 %v8720_v17, %v6447_v19  ;;  %v8721_v52 = vld [vmem:[#allocation21_spill] sm:$0xff]  ;;  %v8722_v18 = vld [vmem:[#allocation30_spill] sm:$0xff] }
 0x152   :  { %v1818_v54 = vadd.f32 %v1764_v12, %v1623_v6  ;;  %v1959_v28 = vsel %vm5970_vm9, %v1957_v9, %v8442_v48  ;;  %v2241_v21 = vmul.f32 %v8719_v57, %v6434_v4  ;;  %v2310_v27 = vmul.f32 %v8721_v52, %v6434_v4  ;;  %v8723_v48 = vld [vmem:[#allocation35_spill] sm:$0xff] }
 0x153   :  { %v2151_v6 = vsel %vm5977_vm10, %v5150_v63, %v2150_v29  ;;  %v2152_v8 = vrot.slane %v2150_v29, 4  ;;  %v2311_v9 = vmul.f32 %v8722_v18, %v6447_v19  ;;  %v6550_v59 = vmul.f32 %v8723_v48, %v6472_v25 }
 0x154   :  { %v2013_v35 = vadd.f32 %v1959_v28, %v1818_v54  ;;  %v2207_v12 = vadd.f32 %v2151_v6, %v2012_v13  ;;  %v2505_v23 = vmul.f32 %v6058_v15, %v6434_v4  ;;  %v8725_v54 = vrot.slane %v6531_v40, 7  ;;  %v8726_v28 = vld [vmem:[#allocation33_spill] sm:$0xff] }
 0x155   :  { %8724 = vst [vmem:[#allocation80_spill] sm:$0xff] %v6550_v59  ;;  %v5159_v29 = vrot.slane %v2310_v27, 9  ;;  %v2506_v14 = vmul.f32 %v8726_v28, %v6447_v19  ;;  %v6562_v13 = vmul.f32 %v6374_v5, %v6472_v25  ;;  %v2406_v10 = vrot.slane %v2311_v9, 5  ;;  %v8728_v5 = vld [vmem:[#allocation34_spill] sm:$0xff] }
 0x156   :  { %v2154_v63 = vsel %vm5977_vm10, %v2152_v8, %v8725_v54  ;;  %v2268_v37 = vadd.f32 %v2241_v21, %v2207_v12  ;;  %v8455_v48 = vrot.slane %v6550_v59, 5  ;;  %v5168_v18 = vrot.slane %v2505_v23, 10  ;;  %v8736_v59 = vld [vmem:[#allocation32_spill] sm:$0xff] }
 0x157   :  { %8727 = vst [vmem:[#allocation81_spill] sm:$0xff] %v6562_v13  ;;  %v2208_v6 = vadd.f32 %v2154_v63, %v2013_v35  ;;  %v2601_v15 = vrot.slane %v2506_v14, 6  ;;  %v8456_v40 = vrot.slane %v6562_v13, 6  ;;  %v2700_v8 = vmul.f32 %v8685_v42, %v6434_v4 }
 0x158   :  { %v2407_v54 = vsel %vm5958_vm8, %v5159_v29, %v2406_v10  ;;  %v2408_v28 = vrot.slane %v2406_v10, 4  ;;  %v2701_v52 = vmul.f32 %v8728_v5, %v6447_v19  ;;  %v6576_v14 = vmul.f32 %v6394_v1, %v6472_v25 }
 0x159   :  { %v2269_v27 = vadd.f32 %v2242_v51, %v2208_v6  ;;  %v2463_v35 = vadd.f32 %v2407_v54, %v2268_v37  ;;  %v2602_v21 = vsel %vm5970_vm9, %v5168_v18, %v2601_v15  ;;  %v2603_v12 = vrot.slane %v2601_v15, 4 }
 0x15a   :  { %8729 = vst [vmem:[#allocation82_spill] sm:$0xff] %v6576_v14  ;;  %v2410_v23 = vsel %vm5958_vm8, %v2408_v28, %v8455_v48  ;;  %v5177_v51 = vrot.slane %v2700_v8, 11  ;;  %v2796_v9 = vrot.slane %v2701_v52, 7  ;;  %v2887_v10 = vmul.f32 %v8689_v41, %v6487_v7  ;;  %v8730_v52 = vld [vmem:[#allocation31_spill] sm:$0xff] }
 0x15b   :  { %v2464_v63 = vadd.f32 %v2410_v23, %v2269_v27  ;;  %v2605_v15 = vsel %vm5970_vm9, %v2603_v12, %v8456_v40  ;;  %v2658_v37 = vadd.f32 %v2602_v21, %v2463_v35  ;;  %v8458_v18 = vrot.slane %v6576_v14, 7  ;;  %v8732_v12 = vld [vmem:[#allocation29_spill] sm:$0xff] }
 0x15c   :  { %v2797_v29 = vsel %vm5977_vm10, %v5177_v51, %v2796_v9  ;;  %v2798_v6 = vrot.slane %v2796_v9, 4  ;;  %v2888_v28 = vmul.f32 %v6399_v43, %v6483_v36  ;;  %v2924_v8 = vrot.slane %v8730_v52, 4  ;;  %v8733_v9 = vld [vmem:[#allocation36_spill] sm:$0xff] }
 0x15d   :  { %v2659_v54 = vadd.f32 %v2605_v15, %v2464_v63  ;;  %v2853_v48 = vadd.f32 %v2797_v29, %v2658_v37  ;;  %v8731_v27 = vcombine.high %v8691_v38, %v8691_v38  ;;  %v2956_v35 = vmul.f32 %v8730_v52, %v6487_v7 }
 0x15e   :  { %v2800_v21 = vsel %vm5977_vm10, %v2798_v6, %v8458_v18  ;;  %v3117_v51 = vcombine.high %v8732_v12, %v8732_v12  ;;  %v3119_v40 = vrot.slane %v8733_v9, 4  ;;  %v3151_v63 = vmul.f32 %v8733_v9, %v6487_v7 }
 0x15f   :  { %v2925_v23 = vrot.slane %v8731_v27, 7  ;;  %v2854_v15 = vadd.f32 %v2800_v21, %v2659_v54  ;;  %v2914_v37 = vadd.f32 %v2887_v10, %v2853_v48  ;;  %v5186_v14 = vrot.slane %v2956_v35, 9  ;;  %v8737_v10 = vld [vmem:[#allocation37_spill] sm:$0xff] }
 0x160   :  { %v3120_v6 = vrot.slane %v3117_v51, 6  ;;  %v5195_v18 = vrot.slane %v3151_v63, 10  ;;  %v3312_v48 = vcombine.high %v8736_v59, %v8736_v59  ;;  %v3314_v54 = vrot.slane %v8737_v10, 4 }
 0x161   :  { %v6610_v38 = vsel %vm5977_vm10, %v2924_v8, %v2925_v23  ;;  %v2927_v29 = vrot.slane %v2925_v23, 4  ;;  %v2915_v13 = vadd.f32 %v2888_v28, %v2854_v15  ;;  %v3346_v63 = vmul.f32 %v8737_v10, %v6487_v7 }
 0x162   :  { %8734 = vst [vmem:[#allocation29_spill] sm:$0xff] %v6610_v38  ;;  %v2957_v27 = vmul.f32 %v6610_v38, %v6483_v36  ;;  %v6628_v35 = vsel %vm5970_vm9, %v3119_v40, %v3120_v6  ;;  %v3122_v28 = vrot.slane %v3120_v6, 4  ;;  %v3315_v51 = vrot.slane %v3312_v48, 5 }
 0x163   :  { %v6617_v12 = vsel %vm5977_vm10, %v2927_v29, %v8730_v52  ;;  %8739 = vst [vmem:[#allocation84_spill] sm:$0xff] %v6628_v35  ;;  %v3152_v21 = vmul.f32 %v6628_v35, %v6483_v36  ;;  %v1345_v59 = vadd.f32 %v6270_v61, %v6266_v31 }
 0x164   :  { %8735 = vst [vmem:[#allocation83_spill] sm:$0xff] %v6617_v12  ;;  %v6624_v8 = vmul.f32 %v6617_v12, %v6501_v53  ;;  %v3052_v23 = vrot.slane %v2957_v27, 5  ;;  %v6642_v40 = vsel %vm5970_vm9, %v3122_v28, %v8733_v9  ;;  %v6650_v31 = vsel %vm5958_vm8, %v3314_v54, %v3315_v51 }
 0x165   :  { %8740 = vst [vmem:[#allocation85_spill] sm:$0xff] %v6642_v40  ;;  %v6646_v48 = vmul.f32 %v6642_v40, %v6501_v53  ;;  %v3247_v7 = vrot.slane %v3152_v21, 6  ;;  %8742 = vst [vmem:[#allocation87_spill] sm:$0xff] %v6650_v31  ;;  %v5204_v28 = vrot.slane %v3346_v63, 11 }
 0x166   :  { %8738 = vst [vmem:[#allocation32_spill] sm:$0xff] %v6624_v8  ;;  %v3053_v15 = vsel %vm5958_vm8, %v5186_v14, %v3052_v23  ;;  %v3054_v29 = vrot.slane %v3052_v23, 4  ;;  %v8467_v27 = vrot.slane %v6624_v8, 5  ;;  %v3317_v14 = vrot.slane %v3315_v51, 4 }
 0x167   :  { %v3109_v6 = vadd.f32 %v3053_v15, %v2914_v37  ;;  %8741 = vst [vmem:[#allocation86_spill] sm:$0xff] %v6646_v48  ;;  %v3347_v23 = vmul.f32 %v6650_v31, %v6483_v36  ;;  %v3248_v15 = vsel %vm5970_vm9, %v5195_v18, %v3247_v7  ;;  %v3249_v25 = vrot.slane %v3247_v7, 4  ;;  %v8745_v18 = vld [vmem:[#allocation45_spill] sm:$0xff] }
 0x168   :  { %v3056_v61 = vsel %vm5958_vm8, %v3054_v29, %v8467_v27  ;;  %v8466_v21 = vrot.slane %v6646_v48, 6  ;;  %v6664_v54 = vsel %vm5958_vm8, %v3317_v14, %v8737_v10  ;;  %v1347_v51 = vadd.f32 %v6274_v47, %v6281_v44 }
 0x169   :  { %v3110_v37 = vadd.f32 %v3056_v61, %v2915_v13  ;;  %v3304_v19 = vadd.f32 %v3248_v15, %v3109_v6  ;;  %8743 = vst [vmem:[#allocation88_spill] sm:$0xff] %v6664_v54  ;;  %v3442_v8 = vrot.slane %v3347_v23, 7  ;;  %v6674_v13 = vmul.f32 %v6664_v54, %v6501_v53  ;;  %v8747_v6 = vld [vmem:[#allocation43_spill] sm:$0xff] }
 0x16a   :  { %v3251_v36 = vsel %vm5970_vm9, %v3249_v25, %v8466_v21  ;;  %v1389_v63 = vmul.f32 %v6016_v34, %v8745_v18  ;;  %v8746_v29 = vrot.slane %v6254_v33, 7  ;;  %v8748_v7 = vrot.slane %v8747_v6, 11  ;;  %v8753_v21 = vld [vmem:[#allocation42_spill] sm:$0xff] }
 0x16b   :  { %8744 = vst [vmem:[#allocation89_spill] sm:$0xff] %v6674_v13  ;;  %v6686_v47 = vcombine.high %v6380_v39, %v6380_v39  ;;  %v6688_v44 = vadd.f32 %v3251_v36, %v3110_v37  ;;  %v3443_v25 = vsel %vm5977_vm10, %v5204_v28, %v3442_v8  ;;  %v6692_v23 = vrot.slane %v3442_v8, 4  ;;  %v8754_v36 = vld [vmem:[#allocation44_spill] sm:$0xff]  ;;  %v8760_v13 = vld [vmem:[#allocation17_spill] sm:$0xff] }
 0x16c   :  { %v1449_v61 = vsel %vm5977_vm10, %v8748_v7, %v8746_v29  ;;  %v6694_v15 = vadd.f32 %v3443_v25, %v3304_v19  ;;  %v1451_v33 = vrot.slane %v1389_v63, 7  ;;  %v1571_v6 = vmul.f32 %v8706_v50, %v8753_v21  ;;  %v8755_v25 = vld [vmem:[#allocation47_spill] sm:$0xff] }
 0x16d   :  { %8749 = vst [vmem:[#allocation45_spill] sm:$0xff] %v6686_v47  ;;  %8750 = vst [vmem:[#allocation43_spill] sm:$0xff] %v6688_v44  ;;  %v1540_v14 = vadd.f32 %v1449_v61, %v1345_v59  ;;  %v1573_v7 = vmul.f32 %v8706_v50, %v8745_v18  ;;  %v1574_v37 = vmul.f32 %v8706_v50, %v6298_v46 }
 0x16e   :  { %8751 = vst [vmem:[#allocation90_spill] sm:$0xff] %v6692_v23  ;;  %8752 = vst [vmem:[#allocation91_spill] sm:$0xff] %v6694_v15  ;;  %v1575_v28 = vmul.f32 %v6138_v11, %v6325_v3  ;;  %v1452_v19 = vsel %vm5977_vm10, %v6285_v55, %v1451_v33  ;;  %v1453_v8 = vrot.slane %v1451_v33, 4  ;;  %v1576_v59 = vmul.f32 %v8706_v50, %v6313_v24 }
 0x16f   :  { %v1598_v63 = vadd.f32 %v1571_v6, %v8754_v36  ;;  %v1541_v61 = vadd.f32 %v1452_v19, %v6302_v2  ;;  %v1599_v27 = vadd.f32 %v6278_v49, %v8755_v25  ;;  %v1600_v29 = vadd.f32 %v1573_v7, %v6256_v16  ;;  %v8756_v6 = vld [vmem:[#allocation46_spill] sm:$0xff] }
 0x170   :  { %v1601_v48 = vadd.f32 %v1574_v37, %v1540_v14  ;;  %v1542_v53 = vadd.f32 %v1453_v8, %v1347_v51  ;;  %v1642_v15 = vmul.f32 %v8708_v45, %v8745_v18  ;;  %v1643_v55 = vmul.f32 %v5964_v60, %v6298_v46  ;;  %v8757_v37 = vld [vmem:[#allocation48_spill] sm:$0xff] }
 0x171   :  { %v1644_v33 = vmul.f32 %v6003_v20, %v6325_v3  ;;  %v1602_v44 = vadd.f32 %v1575_v28, %v1541_v61  ;;  %v1645_v2 = vmul.f32 %v8708_v45, %v6313_v24  ;;  %v5124_v19 = vrot.slane %v8756_v6, 9  ;;  %v8759_v6 = vld [vmem:[#allocation50_spill] sm:$0xff] }
 0x172   :  { %v1835_v16 = vmul.f32 %v8711_v30, %v8753_v21  ;;  %v1603_v49 = vadd.f32 %v1576_v59, %v1542_v53  ;;  %v1699_v51 = vrot.slane %v1642_v15, 5  ;;  %v5125_v14 = vrot.slane %v1643_v55, 9 }
 0x173   :  { %v1704_v7 = vrot.slane %v1644_v33, 5  ;;  %v8758_v8 = vrot.slane %v8757_v37, 5  ;;  %v1707_v25 = vrot.slane %v1645_v2, 5  ;;  %v1837_v28 = vmul.f32 %v8713_v26, %v8745_v18 }
 0x174   :  { %v1838_v61 = vmul.f32 %v8711_v30, %v6298_v46  ;;  %v1700_v23 = vsel %vm5958_vm8, %v8759_v6, %v1699_v51  ;;  %v1701_v53 = vrot.slane %v1699_v51, 4  ;;  %v1839_v4 = vmul.f32 %v8760_v13, %v6325_v3  ;;  %v8761_v30 = vld [vmem:[#allocation49_spill] sm:$0xff] }
 0x175   :  { %v1697_v36 = vsel %vm5958_vm8, %v5124_v19, %v8758_v8  ;;  %v1705_v15 = vsel %vm5958_vm8, %v5125_v14, %v1704_v7  ;;  %v1706_v59 = vrot.slane %v1704_v7, 4  ;;  %v1709_v55 = vrot.slane %v1707_v25, 4  ;;  %v8968_v56 = vld [vmem:[#allocation91_spill] sm:$0xff] }
 0x176   :  { %v1793_v33 = vadd.f32 %v1697_v36, %v1598_v63  ;;  %v1794_v37 = vadd.f32 %v1700_v23, %v1599_v27  ;;  %v1796_v19 = vadd.f32 %v1705_v15, %v1601_v48  ;;  %v1795_v8 = vadd.f32 %v1701_v53, %v1600_v29 }
 0x177   :  { %v1708_v2 = vsel %vm5958_vm8, %v1706_v59, %v1707_v25  ;;  %v1840_v47 = vmul.f32 %v8713_v26, %v6313_v24  ;;  %v1798_v51 = vadd.f32 %v1709_v55, %v1603_v49  ;;  %v5133_v39 = vrot.slane %v1835_v16, 10 }
 0x178   :  { %v1797_v6 = vadd.f32 %v1708_v2, %v1602_v44  ;;  %v8762_v14 = vrot.slane %v8761_v30, 6  ;;  %v1894_v45 = vrot.slane %v1837_v28, 6  ;;  %v5134_v63 = vrot.slane %v1838_v61, 10  ;;  %v8764_v2 = vld [vmem:[#allocation51_spill] sm:$0xff] }
 0x179   :  { %v1899_v27 = vrot.slane %v1839_v4, 6  ;;  %v1902_v48 = vrot.slane %v1840_v47, 6  ;;  %v2030_v36 = vmul.f32 %v8715_v58, %v8753_v21  ;;  %v2032_v44 = vmul.f32 %v8717_v32, %v8745_v18 }
 0x17a   :  { %v1893_v7 = vrot.slane %v8762_v14, 4  ;;  %v8763_v23 = vmov %v8762_v14  ;;  %v2033_v16 = vmul.f32 %v8715_v58, %v6298_v46  ;;  %v1896_v25 = vrot.slane %v1894_v45, 4 }
 0x17b   :  { %v1892_v29 = vsel %vm5970_vm9, %v5133_v39, %v8763_v23  ;;  %v1900_v4 = vsel %vm5970_vm9, %v5134_v63, %v1899_v27  ;;  %v1901_v30 = vrot.slane %v1899_v27, 4  ;;  %v1904_v47 = vrot.slane %v1902_v48, 4 }
 0x17c   :  { %v1895_v49 = vsel %vm5970_vm9, %v1893_v7, %v1894_v45  ;;  %v1988_v28 = vadd.f32 %v1892_v29, %v1793_v33  ;;  %v1991_v61 = vadd.f32 %v1900_v4, %v1796_v19  ;;  %v1990_v53 = vadd.f32 %v1896_v25, %v1795_v8 }
 0x17d   :  { %v1989_v39 = vadd.f32 %v1895_v49, %v1794_v37  ;;  %v1903_v21 = vsel %vm5970_vm9, %v1901_v30, %v1902_v48  ;;  %v2034_v18 = vmul.f32 %v6056_v22, %v6325_v3  ;;  %v2035_v15 = vmul.f32 %v8717_v32, %v6313_v24 }
 0x17e   :  { %v1992_v59 = vadd.f32 %v1903_v21, %v1797_v6  ;;  %v1993_v45 = vadd.f32 %v1904_v47, %v1798_v51  ;;  %v5142_v55 = vrot.slane %v2030_v36, 11  ;;  %v2086_v14 = vrot.slane %v8764_v2, 7 }
 0x17f   :  { %v2089_v7 = vrot.slane %v2032_v44, 7  ;;  %v5143_v63 = vrot.slane %v2033_v16, 11  ;;  %v2094_v33 = vrot.slane %v2034_v18, 7  ;;  %v2097_v37 = vrot.slane %v2035_v15, 7  ;;  %v8765_v18 = vld [vmem:[#allocation54_spill] sm:$0xff] }
 0x180   :  { %v2087_v19 = vsel %vm5977_vm10, %v5142_v55, %v2086_v14  ;;  %v2088_v27 = vrot.slane %v2086_v14, 4  ;;  %v2217_v8 = vmul.f32 %v8719_v57, %v6298_v46  ;;  %v2218_v48 = vmul.f32 %v8720_v17, %v6325_v3  ;;  %v8766_v55 = vld [vmem:[#allocation52_spill] sm:$0xff]  ;;  %v8767_v14 = vld [vmem:[#allocation55_spill] sm:$0xff] }
 0x181   :  { %v2091_v23 = vrot.slane %v2089_v7, 4  ;;  %v2095_v6 = vsel %vm5977_vm10, %v5143_v63, %v2094_v33  ;;  %v2096_v51 = vrot.slane %v2094_v33, 4  ;;  %v2099_v29 = vrot.slane %v2097_v37, 4  ;;  %v8768_v33 = vld [vmem:[#allocation21_spill] sm:$0xff] }
 0x182   :  { %v2090_v36 = vsel %vm5977_vm10, %v2088_v27, %v2089_v7  ;;  %v2183_v44 = vadd.f32 %v2087_v19, %v1988_v28  ;;  %v2186_v16 = vadd.f32 %v2095_v6, %v1991_v61  ;;  %v2219_v49 = vmul.f32 %v8719_v57, %v6313_v24  ;;  %v8770_v27 = vld [vmem:[#allocation35_spill] sm:$0xff] }
 0x183   :  { %v2098_v25 = vsel %vm5977_vm10, %v2096_v51, %v2097_v37  ;;  %v2184_v4 = vadd.f32 %v2090_v36, %v1989_v39  ;;  %v2185_v30 = vadd.f32 %v2091_v23, %v1990_v53  ;;  %v2188_v47 = vadd.f32 %v2099_v29, %v1993_v45  ;;  %v8771_v36 = vld [vmem:[#allocation24_spill] sm:$0xff] }
 0x184   :  { %v2187_v21 = vadd.f32 %v2098_v25, %v1992_v59  ;;  %v2220_v15 = vmul.f32 %v8719_v57, %v8765_v18  ;;  %v2221_v2 = vmul.f32 %v8720_v17, %v8766_v55  ;;  %v2222_v28 = vmul.f32 %v8719_v57, %v8767_v14  ;;  %v8769_v59 = vld [vmem:[#allocation30_spill] sm:$0xff] }
 0x185   :  { %v2244_v61 = vadd.f32 %v2217_v8, %v2183_v44  ;;  %v2245_v7 = vadd.f32 %v2218_v48, %v2184_v4  ;;  %v2246_v63 = vadd.f32 %v2219_v49, %v2185_v30  ;;  %v2286_v19 = vmul.f32 %v8768_v33, %v6298_v46 }
 0x186   :  { %v2247_v37 = vadd.f32 %v2220_v15, %v2186_v16  ;;  %v2248_v39 = vadd.f32 %v2221_v2, %v2187_v21  ;;  %v2249_v53 = vadd.f32 %v2222_v28, %v2188_v47  ;;  %v2287_v45 = vmul.f32 %v8769_v59, %v6325_v3  ;;  %v8772_v16 = vld [vmem:[#allocation33_spill] sm:$0xff]  ;;  %v8773_v2 = vld [vmem:[#allocation27_spill] sm:$0xff] }
 0x187   :  { %v2288_v23 = vmul.f32 %v8770_v27, %v6313_v24  ;;  %v2289_v6 = vmul.f32 %v8768_v33, %v8765_v18  ;;  %v2290_v8 = vmul.f32 %v8769_v59, %v8766_v55  ;;  %v2291_v48 = vmul.f32 %v8770_v27, %v8767_v14 }
 0x188   :  { %v5151_v51 = vrot.slane %v2286_v19, 9  ;;  %v2342_v29 = vrot.slane %v2287_v45, 5  ;;  %v2481_v44 = vmul.f32 %v8771_v36, %v6298_v46  ;;  %v2482_v49 = vmul.f32 %v8772_v16, %v6325_v3 }
 0x189   :  { %v2345_v25 = vrot.slane %v2288_v23, 5  ;;  %v5152_v4 = vrot.slane %v2289_v6, 9  ;;  %v2350_v30 = vrot.slane %v2290_v8, 5  ;;  %v2353_v47 = vrot.slane %v2291_v48, 5 }
 0x18a   :  { %v2343_v21 = vsel %vm5958_vm8, %v5151_v51, %v2342_v29  ;;  %v2344_v15 = vrot.slane %v2342_v29, 4  ;;  %v2483_v28 = vmul.f32 %v8773_v2, %v6313_v24  ;;  %v2484_v19 = vmul.f32 %v8771_v36, %v8765_v18 }
 0x18b   :  { %v2347_v45 = vrot.slane %v2345_v25, 4  ;;  %v2351_v27 = vsel %vm5958_vm8, %v5152_v4, %v2350_v30  ;;  %v2352_v59 = vrot.slane %v2350_v30, 4  ;;  %v2355_v33 = vrot.slane %v2353_v47, 4 }
 0x18c   :  { %v2346_v23 = vsel %vm5958_vm8, %v2344_v15, %v2345_v25  ;;  %v2439_v6 = vadd.f32 %v2343_v21, %v2244_v61  ;;  %v2442_v8 = vadd.f32 %v2351_v27, %v2247_v37  ;;  %v2485_v48 = vmul.f32 %v8772_v16, %v8766_v55 }
 0x18d   :  { %v2354_v51 = vsel %vm5958_vm8, %v2352_v59, %v2353_v47  ;;  %v2440_v29 = vadd.f32 %v2346_v23, %v2245_v7  ;;  %v2441_v17 = vadd.f32 %v2347_v45, %v2246_v63  ;;  %v2444_v36 = vadd.f32 %v2355_v33, %v2249_v53 }
 0x18e   :  { %v2443_v57 = vadd.f32 %v2354_v51, %v2248_v39  ;;  %v2486_v4 = vmul.f32 %v8773_v2, %v8767_v14  ;;  %v5160_v30 = vrot.slane %v2481_v44, 10  ;;  %v2537_v32 = vrot.slane %v2482_v49, 6 }
 0x18f   :  { %v2540_v22 = vrot.slane %v2483_v28, 6  ;;  %v5161_v58 = vrot.slane %v2484_v19, 10  ;;  %v2545_v25 = vrot.slane %v2485_v48, 6  ;;  %v2676_v61 = vmul.f32 %v8685_v42, %v6298_v46 }
 0x190   :  { %v2538_v37 = vsel %vm5970_vm9, %v5160_v30, %v2537_v32  ;;  %v2539_v27 = vrot.slane %v2537_v32, 4  ;;  %v2548_v59 = vrot.slane %v2486_v4, 6  ;;  %v2677_v7 = vmul.f32 %v8728_v5, %v6325_v3 }
 0x191   :  { %v2542_v63 = vrot.slane %v2540_v22, 4  ;;  %v2546_v33 = vsel %vm5970_vm9, %v5161_v58, %v2545_v25  ;;  %v2547_v39 = vrot.slane %v2545_v25, 4  ;;  %v2634_v53 = vadd.f32 %v2538_v37, %v2439_v6 }
 0x192   :  { %v2541_v44 = vsel %vm5970_vm9, %v2539_v27, %v2540_v22  ;;  %v2550_v49 = vrot.slane %v2548_v59, 4  ;;  %v2637_v47 = vadd.f32 %v2546_v33, %v2442_v8  ;;  %v2678_v21 = vmul.f32 %v6394_v1, %v6313_v24 }
 0x193   :  { %v2549_v32 = vsel %vm5970_vm9, %v2547_v39, %v2548_v59  ;;  %v2635_v15 = vadd.f32 %v2541_v44, %v2440_v29  ;;  %v2636_v28 = vadd.f32 %v2542_v63, %v2441_v17  ;;  %v2679_v19 = vmul.f32 %v8685_v42, %v8765_v18  ;;  %v8774_v44 = vld [vmem:[#allocation53_spill] sm:$0xff] }
 0x194   :  { %v2638_v45 = vadd.f32 %v2549_v32, %v2443_v57  ;;  %v2639_v58 = vadd.f32 %v2550_v49, %v2444_v36  ;;  %v2680_v23 = vmul.f32 %v8728_v5, %v8766_v55  ;;  %v2681_v22 = vmul.f32 %v6394_v1, %v8767_v14 }
 0x195   :  { %v5169_v6 = vrot.slane %v2676_v61, 11  ;;  %v2732_v8 = vrot.slane %v2677_v7, 7  ;;  %v2735_v48 = vrot.slane %v2678_v21, 7  ;;  %v5170_v51 = vrot.slane %v2679_v19, 11 }
 0x196   :  { %v2740_v4 = vrot.slane %v2680_v23, 7  ;;  %v2743_v30 = vrot.slane %v2681_v22, 7  ;;  %v2863_v17 = vmul.f32 %v8689_v41, %v8765_v18  ;;  %v2864_v29 = vmul.f32 %v6399_v43, %v8766_v55  ;;  %v8775_v23 = vld [vmem:[#allocation58_spill] sm:$0xff] }
 0x197   :  { %v2733_v57 = vsel %vm5977_vm10, %v5169_v6, %v2732_v8  ;;  %v2734_v36 = vrot.slane %v2732_v8, 4  ;;  %v2737_v25 = vrot.slane %v2735_v48, 4  ;;  %v2865_v37 = vmul.f32 %v8689_v41, %v8767_v14  ;;  %v8776_v8 = vld [vmem:[#allocation56_spill] sm:$0xff] }
 0x198   :  { %v2741_v61 = vsel %vm5977_vm10, %v5170_v51, %v2740_v4  ;;  %v2742_v27 = vrot.slane %v2740_v4, 4  ;;  %v2745_v59 = vrot.slane %v2743_v30, 4  ;;  %v2829_v7 = vadd.f32 %v2733_v57, %v2634_v53 }
 0x199   :  { %v2736_v63 = vsel %vm5977_vm10, %v2734_v36, %v2735_v48  ;;  %v2831_v33 = vadd.f32 %v2737_v25, %v2636_v28  ;;  %v2832_v39 = vadd.f32 %v2741_v61, %v2637_v47  ;;  %v2866_v49 = vmul.f32 %v8689_v41, %v8774_v44 }
 0x19a   :  { %v2744_v21 = vsel %vm5977_vm10, %v2742_v27, %v2743_v30  ;;  %v2830_v32 = vadd.f32 %v2736_v63, %v2635_v15  ;;  %v2834_v19 = vadd.f32 %v2745_v59, %v2639_v58  ;;  %v2867_v22 = vmul.f32 %v6399_v43, %v8775_v23 }
 0x19b   :  { %v2833_v6 = vadd.f32 %v2744_v21, %v2638_v45  ;;  %v2868_v53 = vmul.f32 %v8689_v41, %v8776_v8  ;;  %v2890_v51 = vadd.f32 %v2863_v17, %v2829_v7  ;;  %v2892_v4 = vadd.f32 %v2865_v37, %v2831_v33 }
 0x19c   :  { %v2891_v48 = vadd.f32 %v2864_v29, %v2830_v32  ;;  %v2893_v28 = vadd.f32 %v2866_v49, %v2832_v39  ;;  %v2932_v47 = vmul.f32 %v8730_v52, %v8765_v18  ;;  %v2933_v57 = vmul.f32 %v6610_v38, %v8766_v55 }
 0x19d   :  { %v2894_v30 = vadd.f32 %v2867_v22, %v2833_v6  ;;  %v2895_v15 = vadd.f32 %v2868_v53, %v2834_v19  ;;  %v2934_v58 = vmul.f32 %v6617_v12, %v8767_v14  ;;  %v2935_v45 = vmul.f32 %v8730_v52, %v8774_v44 }
 0x19e   :  { %v2936_v17 = vmul.f32 %v6610_v38, %v8775_v23  ;;  %v2937_v29 = vmul.f32 %v6617_v12, %v8776_v8  ;;  %v5178_v36 = vrot.slane %v2932_v47, 9  ;;  %v2988_v25 = vrot.slane %v2933_v57, 5 }
 0x19f   :  { %v2991_v37 = vrot.slane %v2934_v58, 5  ;;  %v5179_v61 = vrot.slane %v2935_v45, 9  ;;  %v3127_v27 = vmul.f32 %v8733_v9, %v8765_v18  ;;  %v3128_v59 = vmul.f32 %v6628_v35, %v8766_v55 }
 0x1a0   :  { %v2989_v7 = vsel %vm5958_vm8, %v5178_v36, %v2988_v25  ;;  %v2990_v63 = vrot.slane %v2988_v25, 4  ;;  %v2996_v33 = vrot.slane %v2936_v17, 5  ;;  %v2999_v39 = vrot.slane %v2937_v29, 5 }
 0x1a1   :  { %v2993_v49 = vrot.slane %v2991_v37, 4  ;;  %v3085_v21 = vadd.f32 %v2989_v7, %v2890_v51  ;;  %v3129_v32 = vmul.f32 %v6642_v40, %v8767_v14  ;;  %v3130_v19 = vmul.f32 %v8733_v9, %v8774_v44 }
 0x1a2   :  { %v2992_v22 = vsel %vm5958_vm8, %v2990_v63, %v2991_v37  ;;  %v2997_v6 = vsel %vm5958_vm8, %v5179_v61, %v2996_v33  ;;  %v2998_v53 = vrot.slane %v2996_v33, 4  ;;  %v3001_v47 = vrot.slane %v2999_v39, 4 }
 0x1a3   :  { %v3086_v57 = vadd.f32 %v2992_v22, %v2891_v48  ;;  %v3087_v58 = vadd.f32 %v2993_v49, %v2892_v4  ;;  %v3088_v45 = vadd.f32 %v2997_v6, %v2893_v28  ;;  %v3131_v51 = vmul.f32 %v6628_v35, %v8775_v23 }
 0x1a4   :  { %v3000_v17 = vsel %vm5958_vm8, %v2998_v53, %v2999_v39  ;;  %v3090_v29 = vadd.f32 %v3001_v47, %v2895_v15  ;;  %v3132_v36 = vmul.f32 %v6642_v40, %v8776_v8  ;;  %v5187_v25 = vrot.slane %v3127_v27, 10 }
 0x1a5   :  { %v3089_v37 = vadd.f32 %v3000_v17, %v2894_v30  ;;  %v3183_v7 = vrot.slane %v3128_v59, 6  ;;  %v3186_v63 = vrot.slane %v3129_v32, 6  ;;  %v5188_v61 = vrot.slane %v3130_v19, 10 }
 0x1a6   :  { %v3191_v33 = vrot.slane %v3131_v51, 6  ;;  %v3194_v9 = vrot.slane %v3132_v36, 6  ;;  %v3322_v4 = vmul.f32 %v8737_v10, %v8765_v18  ;;  %v3323_v48 = vmul.f32 %v6650_v31, %v8766_v55 }
 0x1a7   :  { %v3184_v28 = vsel %vm5970_vm9, %v5187_v25, %v3183_v7  ;;  %v3185_v15 = vrot.slane %v3183_v7, 4  ;;  %v3188_v39 = vrot.slane %v3186_v63, 4  ;;  %v3324_v27 = vmul.f32 %v6664_v54, %v8767_v14 }
 0x1a8   :  { %v3192_v30 = vsel %vm5970_vm9, %v5188_v61, %v3191_v33  ;;  %v3193_v59 = vrot.slane %v3191_v33, 4  ;;  %v3196_v49 = vrot.slane %v3194_v9, 4  ;;  %v3280_v32 = vadd.f32 %v3184_v28, %v3085_v21 }
 0x1a9   :  { %v3187_v19 = vsel %vm5970_vm9, %v3185_v15, %v3186_v63  ;;  %v3282_v22 = vadd.f32 %v3188_v39, %v3087_v58  ;;  %v3283_v6 = vadd.f32 %v3192_v30, %v3088_v45  ;;  %v3325_v53 = vmul.f32 %v8737_v10, %v8774_v44 }
 0x1aa   :  { %v3195_v47 = vsel %vm5970_vm9, %v3193_v59, %v3194_v9  ;;  %v3281_v51 = vadd.f32 %v3187_v19, %v3086_v57  ;;  %v3285_v17 = vadd.f32 %v3196_v49, %v3090_v29  ;;  %v3326_v36 = vmul.f32 %v6650_v31, %v8775_v23 }
 0x1ab   :  { %v3284_v25 = vadd.f32 %v3195_v47, %v3089_v37  ;;  %v3327_v21 = vmul.f32 %v6664_v54, %v8776_v8  ;;  %v5196_v7 = vrot.slane %v3322_v4, 11  ;;  %v3378_v61 = vrot.slane %v3323_v48, 7  ;;  %v8777_v47 = vld [vmem:[#allocation5_spill] sm:$0xff] }
 0x1ac   :  { %v3381_v63 = vrot.slane %v3324_v27, 7  ;;  %v5197_v58 = vrot.slane %v3325_v53, 11  ;;  %v3386_v45 = vrot.slane %v3326_v36, 7  ;;  %v5617_v9 = vmov 1966171168  }
 0x1ad   :  { %v3379_v33 = vsel %vm5977_vm10, %v5196_v7, %v3378_v61  ;;  %v3380_v28 = vrot.slane %v3378_v61, 4  ;;  %v3389_v15 = vrot.slane %v3327_v21, 7  ;;  %v3530_v57 = vunpack.c.l.s4 %v5617_v9  ;;  %v8778_v61 = vld [vmem:[#allocation2_spill] sm:$0xff] }
 0x1ae   :  { %v3383_v29 = vrot.slane %v3381_v63, 4  ;;  %v3387_v39 = vsel %vm5977_vm10, %v5197_v58, %v3386_v45  ;;  %v3388_v37 = vrot.slane %v3386_v45, 4  ;;  %v3475_v30 = vadd.f32 %v3379_v33, %v3280_v32  ;;  %v8779_v32 = vld [vmem:[#allocation39_spill] sm:$0xff] }
 0x1af   :  { %v3382_v4 = vsel %vm5977_vm10, %v3380_v28, %v3381_v63  ;;  %v3391_v48 = vrot.slane %v3389_v15, 4  ;;  %v3478_v27 = vadd.f32 %v3387_v39, %v3283_v6  ;;  %v3531_v59 = vunpack.c.0.s8 %v3530_v57 }
 0x1b0   :  { %v3390_v49 = vsel %vm5977_vm10, %v3388_v37, %v3389_v15  ;;  %v3476_v19 = vadd.f32 %v3382_v4, %v3281_v51  ;;  %v3477_v53 = vadd.f32 %v3383_v29, %v3282_v22  ;;  %v6922_v36 = vmul.f32 %v8777_v47, %v6298_v46  ;;  %v8781_v29 = vld [vmem:[#allocation38_spill] sm:$0xff]  ;;  %v8782_v37 = vld [vmem:[#allocation40_spill] sm:$0xff] }
 0x1b1   :  { %v3479_v21 = vadd.f32 %v3390_v49, %v3284_v25  ;;  %v3480_v7 = vadd.f32 %v3391_v48, %v3285_v17  ;;  %v6925_v58 = vsub.s32 %v3531_v59, %v8778_v61  ;;  %v6929_v63 = vmul.f32 %v8779_v32, %v6325_v3  ;;  %v8780_v17 = vld [vmem:[#allocation9_spill] sm:$0xff] }
 0x1b2   :  { %v6933_v6 = vmul.f32 %v8777_v47, %v6313_v24  ;;  %v6937_v22 = vmul.f32 %v8777_v47, %v8765_v18  ;;  %v6941_v51 = vmul.f32 %v8779_v32, %v8766_v55  ;;  %v994_v25 = vmul.f32 %v8780_v17, %v6298_v46 }
 0x1b3   :  { %v3535_v45 = vrot.slane %v3475_v30, %v6925_v58  ;;  %v3559_v33 = vrot.slane %v3476_v19, %v6925_v58  ;;  %v3583_v28 = vrot.slane %v3477_v53, %v6925_v58  ;;  %v3597_v15 = vrot.slane %v3478_v27, %v6925_v58 }
 0x1b4   :  { %v3621_v9 = vrot.slane %v3479_v21, %v6925_v58  ;;  %v3645_v57 = vrot.slane %v3480_v7, %v6925_v58  ;;  %v995_v39 = vmul.f32 %v8781_v29, %v6325_v3  ;;  %v996_v4 = vmul.f32 %v8782_v37, %v6313_v24 }
 0x1b5   :  { %v3536_v48 = vcombine.high %v3535_v45, %v3535_v45  ;;  %v3543_v59 = vrot.slane %v3535_v45, %v6925_v58  ;;  %v3560_v30 = vcombine.high %v3559_v33, %v3559_v33  ;;  %v3567_v49 = vrot.slane %v3559_v33, %v6925_v58 }
 0x1b6   :  { %v3590_v19 = vrot.slane %v3583_v28, %v6925_v58  ;;  %v3598_v53 = vcombine.high %v3597_v15, %v3597_v15  ;;  %v3605_v27 = vrot.slane %v3597_v15, %v6925_v58  ;;  %v3622_v21 = vcombine.high %v3621_v9, %v3621_v9 }
 0x1b7   :  { %v3550_v7 = vrot.slane %v3536_v48, %v6925_v58  ;;  %v3574_v61 = vrot.slane %v3560_v30, %v6925_v58  ;;  %v3629_v32 = vrot.slane %v3621_v9, %v6925_v58  ;;  %v3652_v47 = vrot.slane %v3645_v57, %v6925_v58 }
 0x1b8   :  { %v3612_v54 = vrot.slane %v3598_v53, %v6925_v58  ;;  %v3613_v45 = vcombine.high %v3605_v27, %v3605_v27  ;;  %v3636_v31 = vrot.slane %v3622_v21, %v6925_v58  ;;  %v4136_v33 = vcombine.low %v3590_v19, %v3605_v27 }
 0x1b9   :  { %v3637_v10 = vcombine.high %v3629_v32, %v3629_v32  ;;  %v4087_v28 = vcombine.low %v3543_v59, %v3550_v7  ;;  %v5205_v40 = vcombine.high %v3543_v59, %v3550_v7  ;;  %v4089_v35 = vcombine.low %v3567_v49, %v3574_v61 }
 0x1ba   :  { %v3614_v15 = vcombine.high %v3612_v54, %v3612_v54  ;;  %v3638_v12 = vcombine.high %v3636_v31, %v3636_v31  ;;  %v5206_v38 = vcombine.high %v3567_v49, %v3574_v61  ;;  %v4137_v48 = vcombine.low %v3612_v54, %v3613_v45 }
 0x1bb   :  { %v4097_v30 = vrot.slane %v4087_v28, %v6925_v58  ;;  %v4104_v9 = vrot.slane %v5205_v40, %v6925_v58  ;;  %v4111_v57 = vrot.slane %v4089_v35, %v6925_v58  ;;  %v4139_v52 = vcombine.low %v3636_v31, %v3637_v10 }
 0x1bc   :  { %v4118_v53 = vrot.slane %v5206_v38, %v6925_v58  ;;  %v4138_v43 = vcombine.low %v3614_v15, %v3629_v32  ;;  %v4146_v19 = vrot.slane %v4136_v33, %v6925_v58  ;;  %v4153_v27 = vrot.slane %v4137_v48, %v6925_v58 }
 0x1bd   :  { %v4119_v59 = vcombine.low %v4097_v30, %v4104_v9  ;;  %v4167_v21 = vrot.slane %v4139_v52, %v6925_v58  ;;  %v6972_v7 = vcombine.low %v3638_v12, %v3652_v47  ;;  %v997_v54 = vmul.f32 %v8780_v17, %v8765_v18 }
 0x1be   :  { %v4120_v49 = vcombine.low %v4111_v57, %v4118_v53  ;;  %v4160_v40 = vrot.slane %v4138_v43, %v6925_v58  ;;  %v4168_v35 = vcombine.low %v4146_v19, %v4153_v27  ;;  %v998_v38 = vmul.f32 %v8781_v29, %v8766_v55 }
 0x1bf   :  { %v4127_v10 = vrot.slane %v4119_v59, %v6925_v58  ;;  %v6982_v31 = vmul.f32 %v8782_v37, %v8767_v14  ;;  %v5099_v32 = vrot.slane %v994_v25, 9  ;;  %v1063_v52 = vrot.slane %v995_v39, 5 }
 0x1c0   :  { %v4134_v12 = vrot.slane %v4120_v49, %v6925_v58  ;;  %v4169_v47 = vcombine.low %v4160_v40, %v4167_v21  ;;  %v4176_v61 = vrot.slane %v4168_v35, %v6925_v58  ;;  %v1066_v45 = vrot.slane %v996_v4, 5  ;;  %v8783_v49 = vld [vmem:[#allocation7_spill] sm:$0xff]  ;;  %v8784_v35 = vld [vmem:[#allocation12_spill] sm:$0xff] }
 0x1c1   :  { %v1064_v43 = vsel %vm5958_vm8, %v5099_v32, %v1063_v52  ;;  %v1065_v33 = vrot.slane %v1063_v52, 4  ;;  %v5100_v28 = vrot.slane %v997_v54, 9  ;;  %v1071_v15 = vrot.slane %v998_v38, 5 }
 0x1c2   :  { %v4135_v48 = vcombine.low %v4127_v10, %v4134_v12  ;;  %v4183_v30 = vrot.slane %v4169_v47, %v6925_v58  ;;  %v1068_v9 = vrot.slane %v1066_v45, 4  ;;  %v8510_v57 = vrot.slane %v6982_v31, 5 }
 0x1c3   :  { %v1067_v25 = vsel %vm5958_vm8, %v1065_v33, %v1066_v45  ;;  %v1072_v39 = vsel %vm5958_vm8, %v5100_v28, %v1071_v15  ;;  %v1073_v53 = vrot.slane %v1071_v15, 4  ;;  %v1150_v4 = vadd.f32 %v1064_v43, %v6922_v36  ;;  %v8785_v36 = vld [vmem:[#allocation14_spill] sm:$0xff]  ;;  %v8786_v33 = vld [vmem:[#allocation8_spill] sm:$0xff] }
 0x1c4   :  { %v4184_v19 = vcombine.low %v4176_v61, %v4183_v30  ;;  %v1151_v27 = vadd.f32 %v1067_v25, %v6929_v63  ;;  %v1152_v59 = vadd.f32 %v1068_v9, %v6933_v6  ;;  %v1153_v21 = vadd.f32 %v1072_v39, %v6937_v22 }
 0x1c5   :  { %v1075_v54 = vsel %vm5958_vm8, %v1073_v53, %v8510_v57  ;;  %v1195_v40 = vmul.f32 %v8783_v49, %v6298_v46  ;;  %v1196_v38 = vmul.f32 %v8784_v35, %v6325_v3  ;;  %v1197_v10 = vmul.f32 %v8785_v36, %v6313_v24 }
 0x1c6   :  { %v4602_v32 = vpack.c.bf16 %v4184_v19, %v4135_v48  ;;  %v1154_v63 = vadd.f32 %v1075_v54, %v6941_v51  ;;  %v1198_v6 = vmul.f32 %v8783_v49, %v8765_v18  ;;  %v1199_v22 = vmul.f32 %v8784_v35, %v8766_v55  ;;  %v8787_v51 = vld [vmem:[#allocation13_spill] sm:$0xff] }
 0x1c7   :  { %v7015_v52 = vmul.f32 %v8785_v36, %v8767_v14  ;;  %v5108_v12 = vrot.slane %v1195_v40, 10  ;;  %v1261_v47 = vrot.slane %v1196_v38, 6  ;;  %v1264_v61 = vrot.slane %v1197_v10, 6 }
 0x1c8   :  { %5479 = vmatprep.mubr.bf16.mxu0 %v4602_v32  ;;  %v5109_v45 = vrot.slane %v1198_v6, 10  ;;  %v1269_v43 = vrot.slane %v1199_v22, 6  ;;  %v1390_v28 = vmul.f32 %v8786_v33, %v6298_v46  ;;  %v1391_v15 = vmul.f32 %v8787_v51, %v6325_v3 }
 0x1c9   :  { %v1262_v48 = vsel %vm5970_vm9, %v5108_v12, %v1261_v47  ;;  %v1263_v30 = vrot.slane %v1261_v47, 4  ;;  %v1266_v9 = vrot.slane %v1264_v61, 4  ;;  %v8509_v25 = vrot.slane %v7015_v52, 6 }
 0x1ca   :  { %v1270_v39 = vsel %vm5970_vm9, %v5109_v45, %v1269_v43  ;;  %v1271_v53 = vrot.slane %v1269_v43, 4  ;;  %v1348_v19 = vadd.f32 %v1262_v48, %v1150_v4  ;;  %v1392_v54 = vmul.f32 %v6016_v34, %v6313_v24 }
 0x1cb   :  { %v1265_v46 = vsel %vm5970_vm9, %v1263_v30, %v1264_v61  ;;  %v1350_v40 = vadd.f32 %v1266_v9, %v1152_v59  ;;  %v1351_v3 = vadd.f32 %v1270_v39, %v1153_v21  ;;  %v1393_v38 = vmul.f32 %v8786_v33, %v8765_v18 }
 0x1cc   :  { %v1273_v10 = vsel %vm5970_vm9, %v1271_v53, %v8509_v25  ;;  %v1349_v32 = vadd.f32 %v1265_v46, %v1151_v27  ;;  %v1394_v4 = vmul.f32 %v8787_v51, %v8766_v55  ;;  %v7040_v24 = vmul.f32 %v6016_v34, %v8767_v14 }
 0x1cd   :  { %v1352_v6 = vadd.f32 %v1273_v10, %v1154_v63  ;;  %v5117_v22 = vrot.slane %v1390_v28, 11  ;;  %v1456_v59 = vrot.slane %v1391_v15, 7  ;;  %v1459_v21 = vrot.slane %v1392_v54, 7 }
 0x1ce   :  { %v5118_v12 = vrot.slane %v1393_v38, 11  ;;  %v1464_v47 = vrot.slane %v1394_v4, 7  ;;  %v8508_v61 = vrot.slane %v7040_v24, 7  ;;  %v1577_v45 = vmul.f32 %v8706_v50, %v8765_v18 }
 0x1cf   :  { %v1457_v27 = vsel %vm5977_vm10, %v5117_v22, %v1456_v59  ;;  %v1458_v43 = vrot.slane %v1456_v59, 4  ;;  %v1461_v48 = vrot.slane %v1459_v21, 4  ;;  %v1578_v30 = vmul.f32 %v6138_v11, %v8766_v55 }
 0x1d0   :  { %v1465_v63 = vsel %vm5977_vm10, %v5118_v12, %v1464_v47  ;;  %v1466_v28 = vrot.slane %v1464_v47, 4  ;;  %v1543_v15 = vadd.f32 %v1457_v27, %v1348_v19  ;;  %v1579_v9 = vmul.f32 %v8706_v50, %v8767_v14  ;;  %v8788_v47 = vld [vmem:[#allocation16_spill] sm:$0xff] }
 0x1d1   :  { %v1460_v39 = vsel %vm5977_vm10, %v1458_v43, %v1459_v21  ;;  %v1545_v53 = vadd.f32 %v1461_v48, %v1350_v40  ;;  %v1546_v54 = vadd.f32 %v1465_v63, %v1351_v3  ;;  %v1580_v46 = vmul.f32 %v8706_v50, %v8774_v44 }
 0x1d2   :  { %v1468_v38 = vsel %vm5977_vm10, %v1466_v28, %v8508_v61  ;;  %v1544_v10 = vadd.f32 %v1460_v39, %v1349_v32  ;;  %v1581_v19 = vmul.f32 %v6138_v11, %v8775_v23  ;;  %v1604_v4 = vadd.f32 %v1577_v45, %v1543_v15  ;;  %v8790_v15 = vld [vmem:[#allocation11_spill] sm:$0xff] }
 0x1d3   :  { %v1547_v22 = vadd.f32 %v1468_v38, %v1352_v6  ;;  %v1606_v59 = vadd.f32 %v1579_v9, %v1545_v53  ;;  %v1607_v12 = vadd.f32 %v1580_v46, %v1546_v54  ;;  %v1646_v40 = vmul.f32 %v5964_v60, %v8765_v18 }
 0x1d4   :  { %v1605_v3 = vadd.f32 %v1578_v30, %v1544_v10  ;;  %v1647_v21 = vmul.f32 %v6003_v20, %v8766_v55  ;;  %v1648_v27 = vmul.f32 %v8788_v47, %v8767_v14  ;;  %v1649_v32 = vmul.f32 %v5964_v60, %v8774_v44 }
 0x1d5   :  { %v1608_v43 = vadd.f32 %v1581_v19, %v1547_v22  ;;  %v1650_v45 = vmul.f32 %v6003_v20, %v8775_v23  ;;  %v7075_v6 = vmul.f32 %v8788_v47, %v8776_v8  ;;  %v5126_v48 = vrot.slane %v1646_v40, 9 }
 0x1d6   :  { %v1712_v63 = vrot.slane %v1647_v21, 5  ;;  %v1715_v30 = vrot.slane %v1648_v27, 5  ;;  %v5127_v28 = vrot.slane %v1649_v32, 9  ;;  %v1841_v9 = vmul.f32 %v8790_v15, %v8765_v18 }
 0x1d7   :  { %8789 = vst [vmem:[#allocation42_spill] sm:$0xff] %v7075_v6  ;;  %v1720_v39 = vrot.slane %v1650_v45, 5  ;;  %v8514_v53 = vrot.slane %v7075_v6, 5  ;;  %v1842_v54 = vmul.f32 %v8760_v13, %v8766_v55  ;;  %v1843_v46 = vmul.f32 %v8713_v26, %v8767_v14 }
 0x1d8   :  { %v1713_v38 = vsel %vm5958_vm8, %v5126_v48, %v1712_v63  ;;  %v1714_v10 = vrot.slane %v1712_v63, 4  ;;  %v1717_v19 = vrot.slane %v1715_v30, 4  ;;  %v1844_v22 = vmul.f32 %v8790_v15, %v8774_v44 }
 0x1d9   :  { %v1721_v40 = vsel %vm5958_vm8, %v5127_v28, %v1720_v39  ;;  %v1722_v21 = vrot.slane %v1720_v39, 4  ;;  %v1799_v27 = vadd.f32 %v1713_v38, %v1604_v4  ;;  %v1845_v32 = vmul.f32 %v8760_v13, %v8775_v23 }
 0x1da   :  { %v1716_v45 = vsel %vm5958_vm8, %v1714_v10, %v1715_v30  ;;  %v1801_v61 = vadd.f32 %v1717_v19, %v1606_v59  ;;  %v1802_v25 = vadd.f32 %v1721_v40, %v1607_v12  ;;  %v7096_v48 = vmul.f32 %v8713_v26, %v8776_v8  ;;  %v8792_v10 = vld [vmem:[#allocation15_spill] sm:$0xff] }
 0x1db   :  { %v1724_v63 = vsel %vm5958_vm8, %v1722_v21, %v8514_v53  ;;  %v1800_v28 = vadd.f32 %v1716_v45, %v1605_v3  ;;  %v5135_v39 = vrot.slane %v1841_v9, 10  ;;  %v1907_v4 = vrot.slane %v1842_v54, 6  ;;  %v8798_v53 = vld [vmem:[#allocation57_spill] sm:$0xff] }
 0x1dc   :  { %8791 = vst [vmem:[#allocation44_spill] sm:$0xff] %v7096_v48  ;;  %v1803_v38 = vadd.f32 %v1724_v63, %v1608_v43  ;;  %v1910_v57 = vrot.slane %v1843_v46, 6  ;;  %v5136_v13 = vrot.slane %v1844_v22, 10  ;;  %v1915_v15 = vrot.slane %v1845_v32, 6  ;;  %v8793_v46 = vld [vmem:[#allocation23_spill] sm:$0xff]  ;;  %v8794_v32 = vld [vmem:[#allocation26_spill] sm:$0xff] }
 0x1dd   :  { %v1908_v59 = vsel %vm5970_vm9, %v5135_v39, %v1907_v4  ;;  %v1909_v12 = vrot.slane %v1907_v4, 4  ;;  %v8513_v30 = vrot.slane %v7096_v48, 6  ;;  %v2036_v19 = vmul.f32 %v8792_v10, %v8765_v18 }
 0x1de   :  { %v1912_v40 = vrot.slane %v1910_v57, 4  ;;  %v1916_v21 = vsel %vm5970_vm9, %v5136_v13, %v1915_v15  ;;  %v1917_v3 = vrot.slane %v1915_v15, 4  ;;  %v1994_v9 = vadd.f32 %v1908_v59, %v1799_v27 }
 0x1df   :  { %v1911_v43 = vsel %vm5970_vm9, %v1909_v12, %v1910_v57  ;;  %v1997_v54 = vadd.f32 %v1916_v21, %v1802_v25  ;;  %v2037_v22 = vmul.f32 %v8793_v46, %v8766_v55  ;;  %v2038_v45 = vmul.f32 %v8794_v32, %v8767_v14  ;;  %v8795_v12 = vld [vmem:[#allocation19_spill] sm:$0xff] }
 0x1e0   :  { %v1919_v18 = vsel %vm5970_vm9, %v1917_v3, %v8513_v30  ;;  %v1995_v63 = vadd.f32 %v1911_v43, %v1800_v28  ;;  %v1996_v39 = vadd.f32 %v1912_v40, %v1801_v61  ;;  %v2039_v13 = vmul.f32 %v8792_v10, %v8774_v44  ;;  %v8796_v40 = vld [vmem:[#allocation41_spill] sm:$0xff] }
 0x1e1   :  { %v1998_v15 = vadd.f32 %v1919_v18, %v1803_v38  ;;  %v2040_v57 = vmul.f32 %v8793_v46, %v8775_v23  ;;  %v7125_v55 = vmul.f32 %v8794_v32, %v8776_v8  ;;  %v5144_v25 = vrot.slane %v2036_v19, 11 }
 0x1e2   :  { %v2102_v27 = vrot.slane %v2037_v22, 7  ;;  %v2105_v4 = vrot.slane %v2038_v45, 7  ;;  %v5145_v59 = vrot.slane %v2039_v13, 11  ;;  %v2223_v21 = vmul.f32 %v8795_v12, %v8774_v44  ;;  %v8797_v22 = vld [vmem:[#allocation61_spill] sm:$0xff] }
 0x1e3   :  { %v2110_v28 = vrot.slane %v2040_v57, 7  ;;  %v2224_v38 = vmul.f32 %v8796_v40, %v8775_v23  ;;  %v2225_v3 = vmul.f32 %v8795_v12, %v8776_v8  ;;  %v2226_v45 = vmul.f32 %v8795_v12, %v8797_v22 }
 0x1e4   :  { %v2103_v43 = vsel %vm5977_vm10, %v5144_v25, %v2102_v27  ;;  %v2104_v18 = vrot.slane %v2102_v27, 4  ;;  %v2107_v19 = vrot.slane %v2105_v4, 4  ;;  %v2227_v61 = vmul.f32 %v8796_v40, %v8798_v53  ;;  %v8799_v25 = vld [vmem:[#allocation21_spill] sm:$0xff] }
 0x1e5   :  { %v2111_v13 = vsel %vm5977_vm10, %v5145_v59, %v2110_v28  ;;  %v2112_v57 = vrot.slane %v2110_v28, 4  ;;  %v2189_v30 = vadd.f32 %v2103_v43, %v1994_v9  ;;  %v2292_v27 = vmul.f32 %v8799_v25, %v8774_v44  ;;  %v8801_v9 = vld [vmem:[#allocation30_spill] sm:$0xff] }
 0x1e6   :  { %v2106_v32 = vsel %vm5977_vm10, %v2104_v18, %v2105_v4  ;;  %v2191_v46 = vadd.f32 %v2107_v19, %v1996_v39  ;;  %v2192_v10 = vadd.f32 %v2111_v13, %v1997_v54  ;;  %v8800_v48 = vrot.slane %v7125_v55, 7  ;;  %v8802_v4 = vld [vmem:[#allocation35_spill] sm:$0xff]  ;;  %v8803_v13 = vld [vmem:[#allocation62_spill] sm:$0xff] }
 0x1e7   :  { %v2190_v26 = vadd.f32 %v2106_v32, %v1995_v63  ;;  %v2250_v59 = vadd.f32 %v2223_v21, %v2189_v30  ;;  %v2293_v28 = vmul.f32 %v8801_v9, %v8775_v23  ;;  %v2294_v39 = vmul.f32 %v8802_v4, %v8776_v8 }
 0x1e8   :  { %v2114_v12 = vsel %vm5977_vm10, %v2112_v57, %v8800_v48  ;;  %v2252_v40 = vadd.f32 %v2225_v3, %v2191_v46  ;;  %v2253_v6 = vadd.f32 %v2226_v45, %v2192_v10  ;;  %v2295_v18 = vmul.f32 %v8799_v25, %v8797_v22 }
 0x1e9   :  { %v2193_v43 = vadd.f32 %v2114_v12, %v1998_v15  ;;  %v2251_v54 = vadd.f32 %v2224_v38, %v2190_v26  ;;  %v2296_v19 = vmul.f32 %v8801_v9, %v8798_v53  ;;  %v7160_v48 = vmul.f32 %v8802_v4, %v8803_v13  ;;  %v8805_v26 = vld [vmem:[#allocation24_spill] sm:$0xff] }
 0x1ea   :  { %v5153_v32 = vrot.slane %v2292_v27, 9  ;;  %v2358_v63 = vrot.slane %v2293_v28, 5  ;;  %v2361_v15 = vrot.slane %v2294_v39, 5  ;;  %v5154_v46 = vrot.slane %v2295_v18, 9 }
 0x1eb   :  { %8804 = vst [vmem:[#allocation47_spill] sm:$0xff] %v7160_v48  ;;  %v2254_v30 = vadd.f32 %v2227_v61, %v2193_v43  ;;  %v2366_v10 = vrot.slane %v2296_v19, 5  ;;  %v8524_v12 = vrot.slane %v7160_v48, 5  ;;  %v2487_v21 = vmul.f32 %v8805_v26, %v8774_v44 }
 0x1ec   :  { %v2359_v38 = vsel %vm5958_vm8, %v5153_v32, %v2358_v63  ;;  %v2360_v3 = vrot.slane %v2358_v63, 4  ;;  %v2363_v45 = vrot.slane %v2361_v15, 4  ;;  %v2488_v57 = vmul.f32 %v8772_v16, %v8775_v23 }
 0x1ed   :  { %v2367_v61 = vsel %vm5958_vm8, %v5154_v46, %v2366_v10  ;;  %v2368_v27 = vrot.slane %v2366_v10, 4  ;;  %v2445_v28 = vadd.f32 %v2359_v38, %v2250_v59  ;;  %v2489_v43 = vmul.f32 %v8773_v2, %v8776_v8 }
 0x1ee   :  { %v2362_v39 = vsel %vm5958_vm8, %v2360_v3, %v2361_v15  ;;  %v2447_v18 = vadd.f32 %v2363_v45, %v2252_v40  ;;  %v2448_v19 = vadd.f32 %v2367_v61, %v2253_v6  ;;  %v2490_v32 = vmul.f32 %v8805_v26, %v8797_v22 }
 0x1ef   :  { %v2370_v63 = vsel %vm5958_vm8, %v2368_v27, %v8524_v12  ;;  %v2446_v4 = vadd.f32 %v2362_v39, %v2251_v54  ;;  %v2491_v59 = vmul.f32 %v8772_v16, %v8798_v53  ;;  %v7185_v46 = vmul.f32 %v8773_v2, %v8803_v13 }
 0x1f0   :  { %v2449_v10 = vadd.f32 %v2370_v63, %v2254_v30  ;;  %v5162_v15 = vrot.slane %v2487_v21, 10  ;;  %v2553_v40 = vrot.slane %v2488_v57, 6  ;;  %v2556_v6 = vrot.slane %v2489_v43, 6 }
 0x1f1   :  { %8806 = vst [vmem:[#allocation46_spill] sm:$0xff] %v7185_v46  ;;  %v5163_v38 = vrot.slane %v2490_v32, 10  ;;  %v2561_v3 = vrot.slane %v2491_v59, 6  ;;  %v8526_v45 = vrot.slane %v7185_v46, 6  ;;  %v2682_v61 = vmul.f32 %v8685_v42, %v8774_v44 }
 0x1f2   :  { %v2554_v54 = vsel %vm5970_vm9, %v5162_v15, %v2553_v40  ;;  %v2555_v27 = vrot.slane %v2553_v40, 4  ;;  %v2558_v39 = vrot.slane %v2556_v6, 4  ;;  %v2683_v12 = vmul.f32 %v8728_v5, %v8775_v23 }
 0x1f3   :  { %v2562_v30 = vsel %vm5970_vm9, %v5163_v38, %v2561_v3  ;;  %v2563_v21 = vrot.slane %v2561_v3, 4  ;;  %v2640_v57 = vadd.f32 %v2554_v54, %v2445_v28  ;;  %v2684_v43 = vmul.f32 %v6394_v1, %v8776_v8 }
 0x1f4   :  { %v2557_v32 = vsel %vm5970_vm9, %v2555_v27, %v2556_v6  ;;  %v2642_v63 = vadd.f32 %v2558_v39, %v2447_v18  ;;  %v2643_v59 = vadd.f32 %v2562_v30, %v2448_v19  ;;  %v2685_v15 = vmul.f32 %v8685_v42, %v8797_v22  ;;  %v8809_v39 = vld [vmem:[#allocation59_spill] sm:$0xff] }
 0x1f5   :  { %v2565_v40 = vsel %vm5970_vm9, %v2563_v21, %v8526_v45  ;;  %v2641_v2 = vadd.f32 %v2557_v32, %v2446_v4  ;;  %v2686_v28 = vmul.f32 %v8728_v5, %v8798_v53  ;;  %v7210_v38 = vmul.f32 %v6394_v1, %v8803_v13  ;;  %v8808_v45 = vld [vmem:[#allocation67_spill] sm:$0xff] }
 0x1f6   :  { %v2644_v3 = vadd.f32 %v2565_v40, %v2449_v10  ;;  %v5171_v6 = vrot.slane %v2682_v61, 11  ;;  %v2748_v18 = vrot.slane %v2683_v12, 7  ;;  %v2751_v19 = vrot.slane %v2684_v43, 7 }
 0x1f7   :  { %8807 = vst [vmem:[#allocation48_spill] sm:$0xff] %v7210_v38  ;;  %v5172_v54 = vrot.slane %v2685_v15, 11  ;;  %v2756_v27 = vrot.slane %v2686_v28, 7  ;;  %v2869_v30 = vmul.f32 %v8689_v41, %v8797_v22  ;;  %v2870_v1 = vmul.f32 %v8808_v45, %v8798_v53 }
 0x1f8   :  { %v2749_v4 = vsel %vm5977_vm10, %v5171_v6, %v2748_v18  ;;  %v2750_v21 = vrot.slane %v2748_v18, 4  ;;  %v2753_v32 = vrot.slane %v2751_v19, 4  ;;  %v2871_v43 = vmul.f32 %v8689_v41, %v8803_v13 }
 0x1f9   :  { %v2757_v10 = vsel %vm5977_vm10, %v5172_v54, %v2756_v27  ;;  %v2758_v12 = vrot.slane %v2756_v27, 4  ;;  %v2835_v61 = vadd.f32 %v2749_v4, %v2640_v57  ;;  %v2872_v6 = vmul.f32 %v8689_v41, %v8809_v39  ;;  %v8811_v54 = vld [vmem:[#allocation63_spill] sm:$0xff] }
 0x1fa   :  { %v2752_v15 = vsel %vm5977_vm10, %v2750_v21, %v2751_v19  ;;  %v2837_v40 = vadd.f32 %v2753_v32, %v2642_v63  ;;  %v2838_v28 = vadd.f32 %v2757_v10, %v2643_v59  ;;  %v8810_v18 = vrot.slane %v7210_v38, 7  ;;  %v8812_v19 = vld [vmem:[#allocation31_spill] sm:$0xff]  ;;  %v8813_v21 = vld [vmem:[#allocation29_spill] sm:$0xff] }
 0x1fb   :  { %v2836_v42 = vadd.f32 %v2752_v15, %v2641_v2  ;;  %v2873_v57 = vmul.f32 %v8808_v45, %v8811_v54  ;;  %v2896_v27 = vadd.f32 %v2869_v30, %v2835_v61  ;;  %v2938_v63 = vmul.f32 %v8812_v19, %v8797_v22  ;;  %v8814_v10 = vld [vmem:[#allocation83_spill] sm:$0xff]  ;;  %v8816_v15 = vld [vmem:[#allocation36_spill] sm:$0xff] }
 0x1fc   :  { %v2760_v5 = vsel %vm5977_vm10, %v2758_v12, %v8810_v18  ;;  %v2898_v46 = vadd.f32 %v2871_v43, %v2837_v40  ;;  %v2899_v16 = vadd.f32 %v2872_v6, %v2838_v28  ;;  %v2939_v32 = vmul.f32 %v8813_v21, %v8798_v53  ;;  %v8817_v18 = vld [vmem:[#allocation84_spill] sm:$0xff] }
 0x1fd   :  { %v2839_v4 = vadd.f32 %v2760_v5, %v2644_v3  ;;  %v2897_v59 = vadd.f32 %v2870_v1, %v2836_v42  ;;  %v2940_v41 = vmul.f32 %v8814_v10, %v8803_v13  ;;  %v2941_v2 = vmul.f32 %v8812_v19, %v8809_v39  ;;  %v8815_v5 = vld [vmem:[#allocation60_spill] sm:$0xff] }
 0x1fe   :  { %v2942_v30 = vmul.f32 %v8813_v21, %v8811_v54  ;;  %v7245_v3 = vmul.f32 %v8814_v10, %v8815_v5  ;;  %v5180_v61 = vrot.slane %v2938_v63, 9  ;;  %v3004_v43 = vrot.slane %v2939_v32, 5 }
 0x1ff   :  { %v2900_v12 = vadd.f32 %v2873_v57, %v2839_v4  ;;  %v3007_v42 = vrot.slane %v2940_v41, 5  ;;  %v5181_v1 = vrot.slane %v2941_v2, 9  ;;  %v3133_v40 = vmul.f32 %v8816_v15, %v8797_v22  ;;  %v8818_v4 = vld [vmem:[#allocation85_spill] sm:$0xff] }
 0x200   :  { %v3012_v28 = vrot.slane %v2942_v30, 5  ;;  %v3134_v57 = vmul.f32 %v8817_v18, %v8798_v53  ;;  %v3135_v21 = vmul.f32 %v8818_v4, %v8803_v13  ;;  %v3005_v10 = vsel %vm5958_vm8, %v5180_v61, %v3004_v43 }
 0x201   :  { %v3006_v19 = vrot.slane %v3004_v43, 4  ;;  %v3009_v63 = vrot.slane %v3007_v42, 4  ;;  %v3136_v41 = vmul.f32 %v8816_v15, %v8809_v39  ;;  %v3091_v30 = vadd.f32 %v3005_v10, %v2896_v27 }
 0x202   :  { %v3013_v32 = vsel %vm5958_vm8, %v5181_v1, %v3012_v28  ;;  %v3014_v2 = vrot.slane %v3012_v28, 4  ;;  %v3137_v6 = vmul.f32 %v8817_v18, %v8811_v54  ;;  %v7266_v61 = vmul.f32 %v8818_v4, %v8815_v5 }
 0x203   :  { %v3008_v45 = vsel %vm5958_vm8, %v3006_v19, %v3007_v42  ;;  %v3093_v38 = vadd.f32 %v3009_v63, %v2898_v46  ;;  %v3094_v26 = vadd.f32 %v3013_v32, %v2899_v16  ;;  %v8820_v43 = vrot.slane %v7245_v3, 5  ;;  %v8821_v42 = vld [vmem:[#allocation37_spill] sm:$0xff] }
 0x204   :  { %8819 = vst [vmem:[#allocation50_spill] sm:$0xff] %v7266_v61  ;;  %v3092_v1 = vadd.f32 %v3008_v45, %v2897_v59  ;;  %v5189_v28 = vrot.slane %v3133_v40, 10  ;;  %v3199_v27 = vrot.slane %v3134_v57, 6  ;;  %v3202_v48 = vrot.slane %v3135_v21, 6 }
 0x205   :  { %v3016_v15 = vsel %vm5958_vm8, %v3014_v2, %v8820_v43  ;;  %v5190_v18 = vrot.slane %v3136_v41, 10  ;;  %v3207_v9 = vrot.slane %v3137_v6, 6  ;;  %v8544_v19 = vrot.slane %v7266_v61, 6  ;;  %v8823_v6 = vld [vmem:[#allocation88_spill] sm:$0xff] }
 0x206   :  { %v3095_v10 = vadd.f32 %v3016_v15, %v2900_v12  ;;  %v3200_v46 = vsel %vm5970_vm9, %v5189_v28, %v3199_v27  ;;  %v3201_v16 = vrot.slane %v3199_v27, 4  ;;  %v3328_v63 = vmul.f32 %v8821_v42, %v8797_v22  ;;  %v8822_v15 = vld [vmem:[#allocation87_spill] sm:$0xff] }
 0x207   :  { %v3204_v32 = vrot.slane %v3202_v48, 4  ;;  %v3208_v2 = vsel %vm5970_vm9, %v5190_v18, %v3207_v9  ;;  %v3209_v45 = vrot.slane %v3207_v9, 4  ;;  %v3286_v59 = vadd.f32 %v3200_v46, %v3091_v30 }
 0x208   :  { %v3203_v21 = vsel %vm5970_vm9, %v3201_v16, %v3202_v48  ;;  %v3289_v12 = vadd.f32 %v3208_v2, %v3094_v26  ;;  %v3329_v40 = vmul.f32 %v8822_v15, %v8798_v53  ;;  %v3330_v57 = vmul.f32 %v8823_v6, %v8803_v13 }
 0x209   :  { %v3211_v41 = vsel %vm5970_vm9, %v3209_v45, %v8544_v19  ;;  %v3287_v43 = vadd.f32 %v3203_v21, %v3092_v1  ;;  %v3288_v28 = vadd.f32 %v3204_v32, %v3093_v38  ;;  %v3331_v9 = vmul.f32 %v8821_v42, %v8809_v39  ;;  %v8825_v32 = vld [vmem:[#allocation5_spill] sm:$0xff] }
 0x20a   :  { %v3290_v18 = vadd.f32 %v3211_v41, %v3095_v10  ;;  %v3332_v48 = vmul.f32 %v8822_v15, %v8811_v54  ;;  %v7295_v26 = vmul.f32 %v8823_v6, %v8815_v5  ;;  %v5198_v30 = vrot.slane %v3328_v63, 11 }
 0x20b   :  { %v3394_v27 = vrot.slane %v3329_v40, 7  ;;  %v3397_v46 = vrot.slane %v3330_v57, 7  ;;  %v5199_v16 = vrot.slane %v3331_v9, 11  ;;  %v4195_v2 = vrot.slane %v6972_v7, %v6925_v58  ;;  %v8826_v57 = vld [vmem:[#allocation39_spill] sm:$0xff] }
 0x20c   :  { %8824 = vst [vmem:[#allocation49_spill] sm:$0xff] %v7295_v26  ;;  %v3402_v1 = vrot.slane %v3332_v48, 7  ;;  %v7302_v10 = vmul.f32 %v8825_v32, %v8767_v14  ;;  %v7306_v45 = vmul.f32 %v8825_v32, %v8774_v44  ;;  %v7312_v41 = vmul.f32 %v8826_v57, %v8775_v23 }
 0x20d   :  { %v3395_v63 = vsel %vm5977_vm10, %v5198_v30, %v3394_v27  ;;  %v3396_v21 = vrot.slane %v3394_v27, 4  ;;  %v3399_v40 = vrot.slane %v3397_v46, 4  ;;  %v7318_v14 = vmul.f32 %v8825_v32, %v8776_v8 }
 0x20e   :  { %v3403_v7 = vsel %vm5977_vm10, %v5199_v16, %v3402_v1  ;;  %v3404_v9 = vrot.slane %v3402_v1, 4  ;;  %v3481_v48 = vadd.f32 %v3395_v63, %v3286_v59  ;;  %v7324_v27 = vmul.f32 %v8825_v32, %v8797_v22 }
 0x20f   :  { %v3398_v19 = vsel %vm5977_vm10, %v3396_v21, %v3397_v46  ;;  %v3483_v38 = vadd.f32 %v3399_v40, %v3288_v28  ;;  %v3484_v30 = vadd.f32 %v3403_v7, %v3289_v12  ;;  %v8827_v57 = vrot.slane %v7295_v26, 7 }
 0x210   :  { %v3482_v1 = vadd.f32 %v3398_v19, %v3287_v43  ;;  %v3659_v59 = vrot.slane %v3481_v48, %v6925_v58  ;;  %v1000_v63 = vmul.f32 %v8780_v17, %v8774_v44  ;;  %v1001_v28 = vmul.f32 %v8781_v29, %v8775_v23 }
 0x211   :  { %v3406_v16 = vsel %vm5977_vm10, %v3404_v9, %v8827_v57  ;;  %v3707_v46 = vrot.slane %v3483_v38, %v6925_v58  ;;  %v3721_v12 = vrot.slane %v3484_v30, %v6925_v58  ;;  %v1002_v19 = vmul.f32 %v8782_v37, %v8776_v8 }
 0x212   :  { %v3485_v6 = vadd.f32 %v3406_v16, %v3290_v18  ;;  %v3660_v21 = vcombine.high %v3659_v59, %v3659_v59  ;;  %v3667_v40 = vrot.slane %v3659_v59, %v6925_v58  ;;  %v3683_v7 = vrot.slane %v3482_v1, %v6925_v58 }
 0x213   :  { %v3714_v43 = vrot.slane %v3707_v46, %v6925_v58  ;;  %v3722_v57 = vcombine.high %v3721_v12, %v3721_v12  ;;  %v3729_v18 = vrot.slane %v3721_v12, %v6925_v58  ;;  %v1003_v16 = vmul.f32 %v8780_v17, %v8797_v22 }
 0x214   :  { %v7344_v38 = vrot.slane %v3485_v6, %v6925_v58  ;;  %v3674_v9 = vrot.slane %v3660_v21, %v6925_v58  ;;  %v3684_v48 = vcombine.high %v3683_v7, %v3683_v7  ;;  %v3691_v30 = vrot.slane %v3683_v7, %v6925_v58 }
 0x215   :  { %v3736_v1 = vrot.slane %v3722_v57, %v6925_v58  ;;  %v3737_v59 = vcombine.high %v3729_v18, %v3729_v18  ;;  %v4235_v37 = vcombine.low %v3714_v43, %v3729_v18  ;;  %v7358_v21 = vmul.f32 %v8781_v29, %v8798_v53 }
 0x216   :  { %8828 = vst [vmem:[#allocation51_spill] sm:$0xff] %v7344_v38  ;;  %v7353_v46 = vrot.slane %v7344_v38, %v6925_v58  ;;  %v3698_v12 = vrot.slane %v3684_v48, %v6925_v58  ;;  %v4186_v6 = vcombine.low %v3667_v40, %v3674_v9  ;;  %v5207_v32 = vcombine.high %v3667_v40, %v3674_v9 }
 0x217   :  { %v3738_v7 = vcombine.high %v3736_v1, %v3736_v1  ;;  %v4236_v26 = vcombine.low %v3736_v1, %v3737_v59  ;;  %v4251_v17 = vrot.slane %v4235_v37, %v6925_v58  ;;  %v8829_v57 = vrot.slane %v6982_v31, 5 }
 0x218   :  { %v4188_v42 = vcombine.low %v3691_v30, %v3698_v12  ;;  %v4202_v38 = vrot.slane %v4186_v6, %v6925_v58  ;;  %v4209_v43 = vrot.slane %v5207_v32, %v6925_v58  ;;  %v5208_v18 = vcombine.high %v3691_v30, %v3698_v12 }
 0x219   :  { %v1076_v15 = vrot.slane %v8829_v57, 4  ;;  %v4237_v48 = vcombine.low %v3738_v7, %v7353_v46  ;;  %v4258_v40 = vrot.slane %v4236_v26, %v6925_v58  ;;  %v5101_v9 = vrot.slane %v1000_v63, 9 }
 0x21a   :  { %v1079_v29 = vrot.slane %v1001_v28, 5  ;;  %v4216_v61 = vrot.slane %v4188_v42, %v6925_v58  ;;  %v4217_v1 = vcombine.low %v4195_v2, %v4202_v38  ;;  %v4244_v37 = vrot.slane %v5208_v18, %v6925_v58 }
 0x21b   :  { %v1082_v59 = vrot.slane %v1002_v19, 5  ;;  %v4265_v31 = vrot.slane %v4237_v48, %v6925_v58  ;;  %v5102_v32 = vrot.slane %v1003_v16, 9  ;;  %v8559_v2 = vrot.slane %v7358_v21, 5 }
 0x21c   :  { %v1080_v6 = vsel %vm5958_vm8, %v5101_v9, %v1079_v29  ;;  %v1081_v57 = vrot.slane %v1079_v29, 4  ;;  %v4218_v30 = vcombine.low %v4209_v43, %v4216_v61  ;;  %v4225_v12 = vrot.slane %v4217_v1, %v6925_v58 }
 0x21d   :  { %v4266_v7 = vcombine.low %v4244_v37, %v4251_v17  ;;  %v1084_v26 = vrot.slane %v1082_v59, 4  ;;  %v4267_v63 = vcombine.low %v4258_v40, %v4265_v31  ;;  %v1155_v28 = vadd.f32 %v1076_v15, %v7302_v10 }
 0x21e   :  { %v1083_v42 = vsel %vm5958_vm8, %v1081_v57, %v1082_v59  ;;  %v4232_v19 = vrot.slane %v4218_v30, %v6925_v58  ;;  %v1156_v29 = vadd.f32 %v1080_v6, %v7306_v45  ;;  %v1088_v17 = vsel %vm5958_vm8, %v5102_v32, %v8559_v2 }
 0x21f   :  { %v4274_v38 = vrot.slane %v4266_v7, %v6925_v58  ;;  %v1157_v61 = vadd.f32 %v1083_v42, %v7312_v41  ;;  %v4281_v16 = vrot.slane %v4267_v63, %v6925_v58  ;;  %v1158_v43 = vadd.f32 %v1084_v26, %v7318_v14 }
 0x220   :  { %v1201_v15 = vmul.f32 %v8783_v49, %v8774_v44  ;;  %v4233_v10 = vcombine.low %v4225_v12, %v4232_v19  ;;  %v1159_v18 = vadd.f32 %v1088_v17, %v7324_v27  ;;  %v1202_v45 = vmul.f32 %v8784_v35, %v8775_v23 }
 0x221   :  { %v1203_v41 = vmul.f32 %v8785_v36, %v8776_v8  ;;  %v4282_v48 = vcombine.low %v4274_v38, %v4281_v16  ;;  %v1204_v40 = vmul.f32 %v8783_v49, %v8797_v22  ;;  %v7398_v9 = vmul.f32 %v8784_v35, %v8798_v53 }
 0x222   :  { %v8830_v14 = vrot.slane %v7015_v52, 6  ;;  %v5110_v37 = vrot.slane %v1201_v15, 10  ;;  %v1277_v59 = vrot.slane %v1202_v45, 6  ;;  %v1396_v31 = vmul.f32 %v8786_v33, %v8774_v44 }
 0x223   :  { %v1280_v27 = vrot.slane %v1203_v41, 6  ;;  %v4603_v6 = vpack.c.bf16 %v4282_v48, %v4233_v10  ;;  %v5111_v57 = vrot.slane %v1204_v40, 10  ;;  %v8558_v32 = vrot.slane %v7398_v9, 6 }
 0x224   :  { %v1274_v1 = vrot.slane %v8830_v14, 4  ;;  %v1278_v12 = vsel %vm5970_vm9, %v5110_v37, %v1277_v59  ;;  %v1279_v7 = vrot.slane %v1277_v59, 4  ;;  %v1397_v52 = vmul.f32 %v8787_v51, %v8775_v23 }
 0x225   :  { %v1282_v26 = vrot.slane %v1280_v27, 4  ;;  %5480 = vmatmul.mubr.bf16.vlgmr.msra.gmra.mrb[40].mxu0 %v4603_v6  ;;  %v1286_v63 = vsel %vm5970_vm9, %v5111_v57, %v8558_v32  ;;  %v1354_v44 = vadd.f32 %v1278_v12, %v1156_v29  ;;  %v1398_v42 = vmul.f32 %v6016_v34, %v8776_v8 }
 0x226   :  { %v1353_v30 = vadd.f32 %v1274_v1, %v1155_v28  ;;  %v1399_v28 = vmul.f32 %v8786_v33, %v8797_v22  ;;  %v1281_v19 = vsel %vm5970_vm9, %v1279_v7, %v1280_v27  ;;  %v1357_v16 = vadd.f32 %v1286_v63, %v1159_v18 }
 0x227   :  { %v1356_v38 = vadd.f32 %v1282_v26, %v1158_v43  ;;  %v7421_v23 = vmul.f32 %v8787_v51, %v8798_v53  ;;  %v1355_v17 = vadd.f32 %v1281_v19, %v1157_v61  ;;  %v8831_v15 = vrot.slane %v7040_v24, 7 }
 0x228   :  { %v5119_v29 = vrot.slane %v1396_v31, 11  ;;  %v1472_v45 = vrot.slane %v1397_v52, 7  ;;  %v1475_v41 = vrot.slane %v1398_v42, 7  ;;  %v5120_v48 = vrot.slane %v1399_v28, 11 }
 0x229   :  { %v1469_v10 = vrot.slane %v8831_v15, 4  ;;  %v8557_v40 = vrot.slane %v7421_v23, 7  ;;  %v1582_v14 = vmul.f32 %v8706_v50, %v8776_v8  ;;  %v1583_v61 = vmul.f32 %v8706_v50, %v8797_v22 }
 0x22a   :  { %v1473_v43 = vsel %vm5977_vm10, %v5119_v29, %v1472_v45  ;;  %v1474_v18 = vrot.slane %v1472_v45, 4  ;;  %v1477_v37 = vrot.slane %v1475_v41, 4  ;;  %v1584_v27 = vmul.f32 %v6138_v11, %v8798_v53 }
 0x22b   :  { %v1548_v1 = vadd.f32 %v1469_v10, %v1353_v30  ;;  %v1481_v24 = vsel %vm5977_vm10, %v5120_v48, %v8557_v40  ;;  %v1549_v59 = vadd.f32 %v1473_v43, %v1354_v44  ;;  %v1585_v6 = vmul.f32 %v8706_v50, %v8803_v13  ;;  %v8834_v43 = vld [vmem:[#allocation11_spill] sm:$0xff]  ;;  %v8845_v40 = vld [vmem:[#allocation41_spill] sm:$0xff] }
 0x22c   :  { %v1476_v8 = vsel %vm5977_vm10, %v1474_v18, %v1475_v41  ;;  %v1552_v31 = vadd.f32 %v1481_v24, %v1357_v16  ;;  %v1586_v57 = vmul.f32 %v8706_v50, %v8809_v39  ;;  %v1551_v12 = vadd.f32 %v1477_v37, %v1356_v38 }
 0x22d   :  { %v1550_v30 = vadd.f32 %v1476_v8, %v1355_v17  ;;  %v1609_v7 = vadd.f32 %v1582_v14, %v1548_v1  ;;  %v1610_v26 = vadd.f32 %v1583_v61, %v1549_v59  ;;  %v1652_v63 = vmul.f32 %v5964_v60, %v8797_v22  ;;  %v8832_v17 = vld [vmem:[#allocation42_spill] sm:$0xff]  ;;  %v8835_v1 = vld [vmem:[#allocation17_spill] sm:$0xff] }
 0x22e   :  { %v1613_v52 = vadd.f32 %v1586_v57, %v1552_v31  ;;  %v1653_v44 = vmul.f32 %v6003_v20, %v8798_v53  ;;  %v1654_v42 = vmul.f32 %v8788_v47, %v8803_v13  ;;  %v1612_v19 = vadd.f32 %v1585_v6, %v1551_v12  ;;  %v8836_v6 = vld [vmem:[#allocation18_spill] sm:$0xff] }
 0x22f   :  { %v1611_v28 = vadd.f32 %v1584_v27, %v1550_v30  ;;  %v1655_v16 = vmul.f32 %v5964_v60, %v8809_v39  ;;  %v7454_v38 = vmul.f32 %v6003_v20, %v8811_v54  ;;  %v8833_v15 = vrot.slane %v8832_v17, 5 }
 0x230   :  { %v5128_v29 = vrot.slane %v1652_v63, 9  ;;  %v1728_v45 = vrot.slane %v1653_v44, 5  ;;  %v1731_v41 = vrot.slane %v1654_v42, 5  ;;  %v1847_v18 = vmul.f32 %v8834_v43, %v8797_v22 }
 0x231   :  { %v1725_v10 = vrot.slane %v8833_v15, 4  ;;  %v5129_v48 = vrot.slane %v1655_v16, 9  ;;  %v8555_v14 = vrot.slane %v7454_v38, 5  ;;  %v1848_v61 = vmul.f32 %v8835_v1, %v8798_v53  ;;  %v8837_v16 = vld [vmem:[#allocation44_spill] sm:$0xff] }
 0x232   :  { %v1729_v37 = vsel %vm5958_vm8, %v5128_v29, %v1728_v45  ;;  %v1730_v24 = vrot.slane %v1728_v45, 4  ;;  %v1733_v59 = vrot.slane %v1731_v41, 4  ;;  %v1849_v57 = vmul.f32 %v8836_v6, %v8803_v13 }
 0x233   :  { %v1804_v27 = vadd.f32 %v1725_v10, %v1609_v7  ;;  %v1737_v8 = vsel %vm5958_vm8, %v5129_v48, %v8555_v14  ;;  %v1805_v31 = vadd.f32 %v1729_v37, %v1610_v26  ;;  %v1850_v30 = vmul.f32 %v8834_v43, %v8809_v39  ;;  %v8839_v37 = vld [vmem:[#allocation15_spill] sm:$0xff] }
 0x234   :  { %v1732_v12 = vsel %vm5958_vm8, %v1730_v24, %v1731_v41  ;;  %v1807_v63 = vadd.f32 %v1733_v59, %v1612_v19  ;;  %v1808_v44 = vadd.f32 %v1737_v8, %v1613_v52  ;;  %v7477_v7 = vmul.f32 %v8835_v1, %v8811_v54  ;;  %v8840_v24 = vld [vmem:[#allocation23_spill] sm:$0xff]  ;;  %v8841_v8 = vld [vmem:[#allocation26_spill] sm:$0xff] }
 0x235   :  { %v1806_v42 = vadd.f32 %v1732_v12, %v1611_v28  ;;  %v8838_v17 = vrot.slane %v8837_v16, 6  ;;  %v5137_v26 = vrot.slane %v1847_v18, 10  ;;  %v1923_v10 = vrot.slane %v1848_v61, 6 }
 0x236   :  { %v1926_v29 = vrot.slane %v1849_v57, 6  ;;  %v5138_v45 = vrot.slane %v1850_v30, 10  ;;  %v8556_v48 = vrot.slane %v7477_v7, 6  ;;  %v2042_v14 = vmul.f32 %v8839_v37, %v8797_v22 }
 0x237   :  { %v1920_v15 = vrot.slane %v8838_v17, 4  ;;  %v1924_v52 = vsel %vm5970_vm9, %v5137_v26, %v1923_v10  ;;  %v1925_v19 = vrot.slane %v1923_v10, 4  ;;  %v2043_v28 = vmul.f32 %v8840_v24, %v8798_v53 }
 0x238   :  { %v1928_v59 = vrot.slane %v1926_v29, 4  ;;  %v1932_v18 = vsel %vm5970_vm9, %v5138_v45, %v8556_v48  ;;  %v2000_v61 = vadd.f32 %v1924_v52, %v1805_v31  ;;  %v2044_v57 = vmul.f32 %v8841_v8, %v8803_v13 }
 0x239   :  { %v1999_v41 = vadd.f32 %v1920_v15, %v1804_v27  ;;  %v1927_v22 = vsel %vm5970_vm9, %v1925_v19, %v1926_v29  ;;  %v2003_v30 = vadd.f32 %v1932_v18, %v1808_v44  ;;  %v2045_v27 = vmul.f32 %v8839_v37, %v8809_v39  ;;  %v8844_v44 = vld [vmem:[#allocation19_spill] sm:$0xff] }
 0x23a   :  { %v7500_v12 = vmul.f32 %v8840_v24, %v8811_v54  ;;  %v2001_v16 = vadd.f32 %v1927_v22, %v1806_v42  ;;  %v2002_v17 = vadd.f32 %v1928_v59, %v1807_v63  ;;  %v8843_v15 = vrot.slane %v7125_v55, 7  ;;  %v8846_v22 = vld [vmem:[#allocation65_spill] sm:$0xff]  ;;  %v8871_v37 = vld [vmem:[#allocation83_spill] sm:$0xff] }
 0x23b   :  { %v5146_v31 = vrot.slane %v2042_v14, 11  ;;  %v2118_v10 = vrot.slane %v2043_v28, 7  ;;  %v2121_v45 = vrot.slane %v2044_v57, 7  ;;  %v5147_v52 = vrot.slane %v2045_v27, 11 }
 0x23c   :  { %8842 = vst [vmem:[#allocation54_spill] sm:$0xff] %v7500_v12  ;;  %v2115_v26 = vrot.slane %v8843_v15, 4  ;;  %v8560_v48 = vrot.slane %v7500_v12, 7  ;;  %v2228_v19 = vmul.f32 %v8844_v44, %v8803_v13  ;;  %v2229_v18 = vmul.f32 %v8844_v44, %v8809_v39 }
 0x23d   :  { %v2230_v42 = vmul.f32 %v8845_v40, %v8811_v54  ;;  %v2119_v55 = vsel %vm5977_vm10, %v5146_v31, %v2118_v10  ;;  %v2120_v63 = vrot.slane %v2118_v10, 4  ;;  %v2123_v14 = vrot.slane %v2121_v45, 4 }
 0x23e   :  { %v2194_v29 = vadd.f32 %v2115_v26, %v1999_v41  ;;  %v2127_v28 = vsel %vm5977_vm10, %v5147_v52, %v8560_v48  ;;  %v2195_v41 = vadd.f32 %v2119_v55, %v2000_v61  ;;  %v2231_v57 = vmul.f32 %v8844_v44, %v8815_v5  ;;  %v8847_v61 = vld [vmem:[#allocation30_spill] sm:$0xff]  ;;  %v8848_v55 = vld [vmem:[#allocation35_spill] sm:$0xff] }
 0x23f   :  { %v2198_v59 = vadd.f32 %v2127_v28, %v2003_v30  ;;  %v2232_v27 = vmul.f32 %v8844_v44, %v8846_v22  ;;  %v2122_v15 = vsel %vm5977_vm10, %v2120_v63, %v2121_v45  ;;  %v2197_v26 = vadd.f32 %v2123_v14, %v2002_v17  ;;  %v8849_v44 = vld [vmem:[#allocation64_spill] sm:$0xff] }
 0x240   :  { %v2255_v31 = vadd.f32 %v2228_v19, %v2194_v29  ;;  %v2298_v10 = vmul.f32 %v8799_v25, %v8809_v39  ;;  %v2196_v32 = vadd.f32 %v2122_v15, %v2001_v16  ;;  %v2256_v2 = vadd.f32 %v2229_v18, %v2195_v41  ;;  %v8851_v29 = vld [vmem:[#allocation47_spill] sm:$0xff] }
 0x241   :  { %v2259_v40 = vadd.f32 %v2232_v27, %v2198_v59  ;;  %v2299_v30 = vmul.f32 %v8847_v61, %v8811_v54  ;;  %v2258_v52 = vadd.f32 %v2231_v57, %v2197_v26  ;;  %v2300_v28 = vmul.f32 %v8848_v55, %v8815_v5  ;;  %v8853_v57 = vld [vmem:[#allocation24_spill] sm:$0xff] }
 0x242   :  { %v2301_v48 = vmul.f32 %v8799_v25, %v8846_v22  ;;  %v7533_v17 = vmul.f32 %v8847_v61, %v8849_v44  ;;  %v2257_v45 = vadd.f32 %v2230_v42, %v2196_v32  ;;  %v8852_v19 = vrot.slane %v8851_v29, 5  ;;  %v8854_v61 = vld [vmem:[#allocation33_spill] sm:$0xff] }
 0x243   :  { %v5155_v18 = vrot.slane %v2298_v10, 9  ;;  %v2374_v63 = vrot.slane %v2299_v30, 5  ;;  %v2377_v14 = vrot.slane %v2300_v28, 5  ;;  %v2493_v27 = vmul.f32 %v8853_v57, %v8809_v39  ;;  %v8855_v30 = vld [vmem:[#allocation27_spill] sm:$0xff] }
 0x244   :  { %8850 = vst [vmem:[#allocation52_spill] sm:$0xff] %v7533_v17  ;;  %v2371_v16 = vrot.slane %v8852_v19, 4  ;;  %v5156_v41 = vrot.slane %v2301_v48, 9  ;;  %v8565_v59 = vrot.slane %v7533_v17, 5  ;;  %v2494_v32 = vmul.f32 %v8854_v61, %v8811_v54  ;;  %v8857_v17 = vld [vmem:[#allocation46_spill] sm:$0xff] }
 0x245   :  { %v2375_v15 = vsel %vm5958_vm8, %v5155_v18, %v2374_v63  ;;  %v2376_v26 = vrot.slane %v2374_v63, 4  ;;  %v2379_v42 = vrot.slane %v2377_v14, 4  ;;  %v2495_v28 = vmul.f32 %v8855_v30, %v8815_v5 }
 0x246   :  { %v2450_v25 = vadd.f32 %v2371_v16, %v2255_v31  ;;  %v2383_v10 = vsel %vm5958_vm8, %v5156_v41, %v8565_v59  ;;  %v2451_v48 = vadd.f32 %v2375_v15, %v2256_v2  ;;  %v2496_v31 = vmul.f32 %v8853_v57, %v8846_v22 }
 0x247   :  { %v2378_v29 = vsel %vm5958_vm8, %v2376_v26, %v2377_v14  ;;  %v2454_v19 = vadd.f32 %v2383_v10, %v2259_v40  ;;  %v7556_v16 = vmul.f32 %v8854_v61, %v8849_v44  ;;  %v2453_v63 = vadd.f32 %v2379_v42, %v2258_v52  ;;  %v8859_v40 = vld [vmem:[#allocation25_spill] sm:$0xff]  ;;  %v8860_v10 = vld [vmem:[#allocation34_spill] sm:$0xff]  ;;  %v8861_v61 = vld [vmem:[#allocation28_spill] sm:$0xff] }
 0x248   :  { %v2452_v18 = vadd.f32 %v2378_v29, %v2257_v45  ;;  %v8858_v55 = vrot.slane %v8857_v17, 6  ;;  %v5164_v2 = vrot.slane %v2493_v27, 10  ;;  %v2569_v15 = vrot.slane %v2494_v32, 6 }
 0x249   :  { %8856 = vst [vmem:[#allocation55_spill] sm:$0xff] %v7556_v16  ;;  %v2572_v59 = vrot.slane %v2495_v28, 6  ;;  %v5165_v30 = vrot.slane %v2496_v31, 10  ;;  %v8571_v12 = vrot.slane %v7556_v16, 6  ;;  %v2688_v26 = vmul.f32 %v8859_v40, %v8809_v39 }
 0x24a   :  { %v2566_v41 = vrot.slane %v8858_v55, 4  ;;  %v2689_v57 = vmul.f32 %v8860_v10, %v8811_v54  ;;  %v2690_v45 = vmul.f32 %v8861_v61, %v8815_v5  ;;  %v2570_v52 = vsel %vm5970_vm9, %v5164_v2, %v2569_v15 }
 0x24b   :  { %v2571_v55 = vrot.slane %v2569_v15, 4  ;;  %v2574_v17 = vrot.slane %v2572_v59, 4  ;;  %v2578_v27 = vsel %vm5970_vm9, %v5165_v30, %v8571_v12  ;;  %v2691_v42 = vmul.f32 %v8859_v40, %v8846_v22 }
 0x24c   :  { %v2645_v14 = vadd.f32 %v2566_v41, %v2450_v25  ;;  %v2646_v25 = vadd.f32 %v2570_v52, %v2451_v48  ;;  %v2649_v32 = vadd.f32 %v2578_v27, %v2454_v19  ;;  %v7577_v28 = vmul.f32 %v8860_v10, %v8849_v44  ;;  %v8863_v41 = vld [vmem:[#allocation48_spill] sm:$0xff] }
 0x24d   :  { %v2573_v29 = vsel %vm5970_vm9, %v2571_v55, %v2572_v59  ;;  %v2648_v31 = vadd.f32 %v2574_v17, %v2453_v63  ;;  %v8864_v2 = vrot.slane %v8863_v41, 7  ;;  %v5173_v61 = vrot.slane %v2688_v26, 11  ;;  %v8865_v27 = vld [vmem:[#allocation20_spill] sm:$0xff]  ;;  %v8866_v26 = vld [vmem:[#allocation67_spill] sm:$0xff] }
 0x24e   :  { %8862 = vst [vmem:[#allocation53_spill] sm:$0xff] %v7577_v28  ;;  %v2647_v16 = vadd.f32 %v2573_v29, %v2452_v18  ;;  %v2764_v24 = vrot.slane %v2689_v57, 7  ;;  %v2767_v30 = vrot.slane %v2690_v45, 7  ;;  %v5174_v48 = vrot.slane %v2691_v42, 11  ;;  %v8867_v45 = vld [vmem:[#allocation45_spill] sm:$0xff]  ;;  %v8868_v42 = vld [vmem:[#allocation66_spill] sm:$0xff] }
 0x24f   :  { %v2761_v15 = vrot.slane %v8864_v2, 4  ;;  %v8575_v19 = vrot.slane %v7577_v28, 7  ;;  %v2874_v12 = vmul.f32 %v8865_v27, %v8815_v5  ;;  %v2875_v10 = vmul.f32 %v8865_v27, %v8846_v22  ;;  %v8869_v28 = vld [vmem:[#allocation31_spill] sm:$0xff] }
 0x250   :  { %v2765_v59 = vsel %vm5977_vm10, %v5173_v61, %v2764_v24  ;;  %v2766_v63 = vrot.slane %v2764_v24, 4  ;;  %v2769_v55 = vrot.slane %v2767_v30, 4  ;;  %v2876_v18 = vmul.f32 %v8866_v26, %v8849_v44 }
 0x251   :  { %v2840_v52 = vadd.f32 %v2761_v15, %v2645_v14  ;;  %v2773_v57 = vsel %vm5977_vm10, %v5174_v48, %v8575_v19  ;;  %v2841_v14 = vadd.f32 %v2765_v59, %v2646_v25  ;;  %v2877_v17 = vmul.f32 %v8865_v27, %v8867_v45  ;;  %v8870_v48 = vld [vmem:[#allocation29_spill] sm:$0xff] }
 0x252   :  { %v2878_v29 = vmul.f32 %v8865_v27, %v8868_v42  ;;  %v2768_v61 = vsel %vm5977_vm10, %v2766_v63, %v2767_v30  ;;  %v2843_v24 = vadd.f32 %v2769_v55, %v2648_v31  ;;  %v2844_v41 = vadd.f32 %v2773_v57, %v2649_v32  ;;  %v8872_v31 = vld [vmem:[#allocation22_spill] sm:$0xff]  ;;  %v8875_v57 = vld [vmem:[#allocation36_spill] sm:$0xff] }
 0x253   :  { %v2901_v2 = vadd.f32 %v2874_v12, %v2840_v52  ;;  %v2842_v15 = vadd.f32 %v2768_v61, %v2647_v16  ;;  %v2902_v26 = vadd.f32 %v2875_v10, %v2841_v14  ;;  %v2944_v40 = vmul.f32 %v8869_v28, %v8846_v22  ;;  %v8876_v61 = vld [vmem:[#allocation84_spill] sm:$0xff] }
 0x254   :  { %v2945_v25 = vmul.f32 %v8870_v48, %v8849_v44  ;;  %v2904_v59 = vadd.f32 %v2877_v17, %v2843_v24  ;;  %v2905_v19 = vadd.f32 %v2878_v29, %v2844_v41  ;;  %v2946_v8 = vmul.f32 %v8871_v37, %v8867_v45 }
 0x255   :  { %v2947_v27 = vmul.f32 %v8869_v28, %v8868_v42  ;;  %v2903_v30 = vadd.f32 %v2876_v18, %v2842_v15  ;;  %v7612_v12 = vmul.f32 %v8870_v48, %v8872_v31  ;;  %v8874_v16 = vrot.slane %v7245_v3, 5 }
 0x256   :  { %v5182_v32 = vrot.slane %v2944_v40, 9  ;;  %v3020_v52 = vrot.slane %v2945_v25, 5  ;;  %v3023_v63 = vrot.slane %v2946_v8, 5  ;;  %v3139_v14 = vmul.f32 %v8875_v57, %v8846_v22  ;;  %v8878_v25 = vld [vmem:[#allocation50_spill] sm:$0xff] }
 0x257   :  { %8873 = vst [vmem:[#allocation58_spill] sm:$0xff] %v7612_v12  ;;  %v3017_v10 = vrot.slane %v8874_v16, 4  ;;  %v5183_v55 = vrot.slane %v2947_v27, 9  ;;  %v8583_v17 = vrot.slane %v7612_v12, 5  ;;  %v3140_v18 = vmul.f32 %v8876_v61, %v8849_v44 }
 0x258   :  { %v3141_v24 = vmul.f32 %v8818_v4, %v8867_v45  ;;  %v3021_v3 = vsel %vm5958_vm8, %v5182_v32, %v3020_v52  ;;  %v3022_v41 = vrot.slane %v3020_v52, 4  ;;  %v3025_v40 = vrot.slane %v3023_v63, 4 }
 0x259   :  { %v3096_v29 = vadd.f32 %v3017_v10, %v2901_v2  ;;  %v3142_v8 = vmul.f32 %v8875_v57, %v8868_v42  ;;  %v3029_v27 = vsel %vm5958_vm8, %v5183_v55, %v8583_v17  ;;  %v3097_v2 = vadd.f32 %v3021_v3, %v2902_v26  ;;  %v8880_v3 = vld [vmem:[#allocation37_spill] sm:$0xff] }
 0x25a   :  { %v7633_v15 = vmul.f32 %v8876_v61, %v8872_v31  ;;  %v8879_v16 = vrot.slane %v8878_v25, 6  ;;  %v3024_v32 = vsel %vm5958_vm8, %v3022_v41, %v3023_v63  ;;  %v3099_v52 = vadd.f32 %v3025_v40, %v2904_v59  ;;  %v8881_v61 = vld [vmem:[#allocation87_spill] sm:$0xff]  ;;  %v8883_v40 = vld [vmem:[#allocation49_spill] sm:$0xff] }
 0x25b   :  { %v3100_v4 = vadd.f32 %v3029_v27, %v2905_v19  ;;  %v5191_v48 = vrot.slane %v3139_v14, 10  ;;  %v3098_v57 = vadd.f32 %v3024_v32, %v2903_v30  ;;  %v3215_v28 = vrot.slane %v3140_v18, 6  ;;  %v8882_v19 = vld [vmem:[#allocation88_spill] sm:$0xff] }
 0x25c   :  { %8877 = vst [vmem:[#allocation56_spill] sm:$0xff] %v7633_v15  ;;  %v3212_v10 = vrot.slane %v8879_v16, 4  ;;  %v3218_v12 = vrot.slane %v3141_v24, 6  ;;  %v5192_v37 = vrot.slane %v3142_v8, 10  ;;  %v8585_v55 = vrot.slane %v7633_v15, 6 }
 0x25d   :  { %v3334_v17 = vmul.f32 %v8880_v3, %v8846_v22  ;;  %v3335_v25 = vmul.f32 %v8881_v61, %v8849_v44  ;;  %v3216_v16 = vsel %vm5970_vm9, %v5191_v48, %v3215_v28  ;;  %v3217_v63 = vrot.slane %v3215_v28, 4 }
 0x25e   :  { %v3291_v26 = vadd.f32 %v3212_v10, %v3096_v29  ;;  %v3220_v59 = vrot.slane %v3218_v12, 4  ;;  %v3336_v30 = vmul.f32 %v8882_v19, %v8867_v45  ;;  %v3224_v14 = vsel %vm5970_vm9, %v5192_v37, %v8585_v55 }
 0x25f   :  { %v3292_v29 = vadd.f32 %v3216_v16, %v3097_v2  ;;  %v3337_v18 = vmul.f32 %v8880_v3, %v8868_v42  ;;  %v7656_v24 = vmul.f32 %v8881_v61, %v8872_v31  ;;  %v3219_v28 = vsel %vm5970_vm9, %v3217_v63, %v3218_v12  ;;  %v8885_v3 = vld [vmem:[#allocation51_spill] sm:$0xff] }
 0x260   :  { %v3294_v48 = vadd.f32 %v3220_v59, %v3099_v52  ;;  %v3295_v41 = vadd.f32 %v3224_v14, %v3100_v4  ;;  %v8884_v8 = vrot.slane %v8883_v40, 7  ;;  %v3293_v10 = vadd.f32 %v3219_v28, %v3098_v57 }
 0x261   :  { %v5200_v32 = vrot.slane %v3334_v17, 11  ;;  %v3410_v19 = vrot.slane %v3335_v25, 7  ;;  %v3413_v37 = vrot.slane %v3336_v30, 7  ;;  %v5201_v2 = vrot.slane %v3337_v18, 11 }
 0x262   :  { %v3407_v27 = vrot.slane %v8884_v8, 4  ;;  %v8589_v16 = vrot.slane %v7656_v24, 7  ;;  %v3746_v61 = vcombine.high %v8885_v3, %v8885_v3  ;;  %v3761_v4 = vcombine.high %v7353_v46, %v7353_v46 }
 0x263   :  { %v3411_v15 = vsel %vm5977_vm10, %v5200_v32, %v3410_v19  ;;  %v3412_v12 = vrot.slane %v3410_v19, 4  ;;  %v3415_v52 = vrot.slane %v3413_v37, 4  ;;  %v8886_v19 = vld [vmem:[#allocation39_spill] sm:$0xff] }
 0x264   :  { %v3486_v55 = vadd.f32 %v3407_v27, %v3291_v26  ;;  %v3419_v57 = vsel %vm5977_vm10, %v5201_v2, %v8589_v16  ;;  %v3487_v17 = vadd.f32 %v3411_v15, %v3292_v29  ;;  %v3760_v25 = vrot.slane %v3746_v61, %v6925_v58  ;;  %v8887_v29 = vld [vmem:[#allocation5_spill] sm:$0xff] }
 0x265   :  { %v3414_v3 = vsel %vm5977_vm10, %v3412_v12, %v3413_v37  ;;  %v3489_v63 = vadd.f32 %v3415_v52, %v3294_v48  ;;  %v3490_v59 = vadd.f32 %v3419_v57, %v3295_v41  ;;  %v7679_v30 = vmul.f32 %v8886_v19, %v8798_v53 }
 0x266   :  { %v3769_v26 = vrot.slane %v3486_v55, %v6925_v58  ;;  %v3488_v46 = vadd.f32 %v3414_v3, %v3293_v10  ;;  %v3762_v14 = vcombine.high %v3760_v25, %v3760_v25  ;;  %v3783_v28 = vrot.slane %v3487_v17, %v6925_v58 }
 0x267   :  { %v3831_v15 = vrot.slane %v3489_v63, %v6925_v58  ;;  %v3845_v61 = vrot.slane %v3490_v59, %v6925_v58  ;;  %v4283_v55 = vcombine.low %v3760_v25, %v3761_v4  ;;  %v933_v40 = vmul.f32 %v8887_v29, %v8803_v13 }
 0x268   :  { %v3776_v18 = vrot.slane %v3769_v26, %v6925_v58  ;;  %v3784_v48 = vcombine.high %v3783_v28, %v3783_v28  ;;  %v3791_v41 = vrot.slane %v3783_v28, %v6925_v58  ;;  %v3807_v53 = vrot.slane %v3488_v46, %v6925_v58 }
 0x269   :  { %v3838_v27 = vrot.slane %v3831_v15, %v6925_v58  ;;  %v3846_v10 = vcombine.high %v3845_v61, %v3845_v61  ;;  %v3853_v32 = vrot.slane %v3845_v61, %v6925_v58  ;;  %v4293_v37 = vrot.slane %v4283_v55, %v6925_v58 }
 0x26a   :  { %v4284_v8 = vcombine.low %v3762_v14, %v3776_v18  ;;  %v3798_v2 = vrot.slane %v3784_v48, %v6925_v58  ;;  %v3808_v12 = vcombine.high %v3807_v53, %v3807_v53  ;;  %v3815_v52 = vrot.slane %v3807_v53, %v6925_v58 }
 0x26b   :  { %v7696_v57 = vrot.slane %v3846_v10, %v6925_v58  ;;  %v3861_v17 = vcombine.high %v3853_v32, %v3853_v32  ;;  %v4334_v25 = vcombine.low %v3838_v27, %v3853_v32  ;;  %v934_v26 = vmul.f32 %v8887_v29, %v8809_v39  ;;  %v8889_v10 = vld [vmem:[#allocation40_spill] sm:$0xff] }
 0x26c   :  { %v4300_v4 = vrot.slane %v4284_v8, %v6925_v58  ;;  %v3822_v3 = vrot.slane %v3808_v12, %v6925_v58  ;;  %v4285_v63 = vcombine.low %v3791_v41, %v3798_v2  ;;  %v5209_v59 = vcombine.high %v3791_v41, %v3798_v2  ;;  %v8890_v12 = vld [vmem:[#allocation9_spill] sm:$0xff] }
 0x26d   :  { %8888 = vst [vmem:[#allocation2_spill] sm:$0xff] %v7696_v57  ;;  %v4335_v14 = vcombine.low %v7696_v57, %v3861_v17  ;;  %v4356_v18 = vrot.slane %v4334_v25, %v6925_v58  ;;  %v935_v28 = vmul.f32 %v8886_v19, %v8811_v54  ;;  %v936_v15 = vmul.f32 %v8887_v29, %v8815_v5  ;;  %v8891_v17 = vld [vmem:[#allocation38_spill] sm:$0xff] }
 0x26e   :  { %v4315_v46 = vcombine.low %v4293_v37, %v4300_v4  ;;  %v4307_v61 = vrot.slane %v4285_v63, %v6925_v58  ;;  %v4314_v55 = vrot.slane %v5209_v59, %v6925_v58  ;;  %v4332_v53 = vcombine.low %v3815_v52, %v3822_v3 }
 0x26f   :  { %v5210_v8 = vcombine.high %v3815_v52, %v3822_v3  ;;  %v4363_v41 = vrot.slane %v4335_v14, %v6925_v58  ;;  %v937_v27 = vmul.f32 %v8887_v29, %v8846_v22  ;;  %v1005_v32 = vmul.f32 %v8889_v10, %v8803_v13 }
 0x270   :  { %v4323_v48 = vrot.slane %v4315_v46, %v6925_v58  ;;  %v4316_v37 = vcombine.low %v4307_v61, %v4314_v55  ;;  %v4342_v2 = vrot.slane %v4332_v53, %v6925_v58  ;;  %v1006_v4 = vmul.f32 %v8890_v12, %v8809_v39 }
 0x271   :  { %v1007_v25 = vmul.f32 %v8891_v17, %v8811_v54  ;;  %v4349_v63 = vrot.slane %v5210_v8, %v6925_v58  ;;  %v4365_v52 = vcombine.low %v4356_v18, %v4363_v41  ;;  %v1008_v3 = vmul.f32 %v8889_v10, %v8815_v5 }
 0x272   :  { %v1009_v59 = vmul.f32 %v8890_v12, %v8846_v22  ;;  %v4330_v46 = vrot.slane %v4316_v37, %v6925_v58  ;;  %v7728_v14 = vmul.f32 %v8891_v17, %v8849_v44  ;;  %v8892_v61 = vrot.slane %v7358_v21, 5 }
 0x273   :  { %v1090_v53 = vrot.slane %v1005_v32, 5  ;;  %v4364_v16 = vcombine.low %v4342_v2, %v4349_v63  ;;  %v4379_v8 = vrot.slane %v4365_v52, %v6925_v58  ;;  %v5103_v18 = vrot.slane %v1006_v4, 9 }
 0x274   :  { %v1089_v55 = vrot.slane %v8892_v61, 4  ;;  %v1095_v41 = vrot.slane %v1007_v25, 5  ;;  %v4331_v29 = vcombine.low %v4323_v48, %v4330_v46  ;;  %v1098_v19 = vrot.slane %v1008_v3, 5 }
 0x275   :  { %v1092_v12 = vrot.slane %v1090_v53, 4  ;;  %v4372_v37 = vrot.slane %v4364_v16, %v6925_v58  ;;  %v5104_v21 = vrot.slane %v1009_v59, 9  ;;  %v8602_v32 = vrot.slane %v7728_v14, 5 }
 0x276   :  { %v1091_v10 = vsel %vm5958_vm8, %v1089_v55, %v1090_v53  ;;  %v1096_v17 = vsel %vm5958_vm8, %v5103_v18, %v1095_v41  ;;  %v1097_v57 = vrot.slane %v1095_v41, 4  ;;  %v1100_v61 = vrot.slane %v1098_v19, 4 }
 0x277   :  { %v1160_v2 = vadd.f32 %v1091_v10, %v7679_v30  ;;  %v1161_v4 = vadd.f32 %v1092_v12, %v933_v40  ;;  %v4380_v25 = vcombine.low %v4372_v37, %v4379_v8  ;;  %v1162_v63 = vadd.f32 %v1096_v17, %v934_v26 }
 0x278   :  { %v1099_v48 = vsel %vm5958_vm8, %v1097_v57, %v1098_v19  ;;  %v1206_v52 = vmul.f32 %v8785_v36, %v8803_v13  ;;  %v1104_v16 = vsel %vm5958_vm8, %v5104_v21, %v8602_v32  ;;  %v1164_v59 = vadd.f32 %v1100_v61, %v936_v15 }
 0x279   :  { %v1163_v3 = vadd.f32 %v1099_v48, %v935_v28  ;;  %v1207_v46 = vmul.f32 %v8783_v49, %v8809_v39  ;;  %v4604_v30 = vpack.c.bf16 %v4380_v25, %v4331_v29  ;;  %v1165_v40 = vadd.f32 %v1104_v16, %v937_v27 }
 0x27a   :  { %v1208_v10 = vmul.f32 %v8784_v35, %v8811_v54  ;;  %v1209_v19 = vmul.f32 %v8785_v36, %v8815_v5  ;;  %v1210_v57 = vmul.f32 %v8783_v49, %v8846_v22  ;;  %v7758_v26 = vmul.f32 %v8784_v35, %v8849_v44 }
 0x27b   :  { %v8893_v28 = vrot.slane %v7398_v9, 6  ;;  %v1288_v55 = vrot.slane %v1206_v52, 6  ;;  %5483 = vmatprep.mubr.bf16.mxu0 %v4604_v30  ;;  %v5112_v29 = vrot.slane %v1207_v46, 10  ;;  %v1401_v8 = vmul.f32 %v6016_v34, %v8803_v13 }
 0x27c   :  { %v1293_v27 = vrot.slane %v1208_v10, 6  ;;  %v1296_v53 = vrot.slane %v1209_v19, 6  ;;  %v5113_v49 = vrot.slane %v1210_v57, 10  ;;  %v8601_v12 = vrot.slane %v7758_v26, 6 }
 0x27d   :  { %v1287_v15 = vrot.slane %v8893_v28, 4  ;;  %v1290_v41 = vrot.slane %v1288_v55, 4  ;;  %v1402_v25 = vmul.f32 %v8786_v33, %v8809_v39  ;;  %v1403_v46 = vmul.f32 %v8787_v51, %v8811_v54 }
 0x27e   :  { %v1294_v35 = vsel %vm5970_vm9, %v5112_v29, %v1293_v27  ;;  %v1295_v9 = vrot.slane %v1293_v27, 4  ;;  %v1298_v37 = vrot.slane %v1296_v53, 4  ;;  %v1302_v21 = vsel %vm5970_vm9, %v5113_v49, %v8601_v12 }
 0x27f   :  { %v1289_v18 = vsel %vm5970_vm9, %v1287_v15, %v1288_v55  ;;  %v1359_v61 = vadd.f32 %v1290_v41, %v1161_v4  ;;  %v1360_v13 = vadd.f32 %v1294_v35, %v1162_v63  ;;  %v1363_v16 = vadd.f32 %v1302_v21, %v1165_v40 }
 0x280   :  { %v1358_v17 = vadd.f32 %v1289_v18, %v1160_v2  ;;  %v1297_v48 = vsel %vm5970_vm9, %v1295_v9, %v1296_v53  ;;  %v1362_v52 = vadd.f32 %v1298_v37, %v1164_v59  ;;  %v1404_v2 = vmul.f32 %v6016_v34, %v8815_v5 }
 0x281   :  { %v1361_v30 = vadd.f32 %v1297_v48, %v1163_v3  ;;  %v1405_v10 = vmul.f32 %v8786_v33, %v8846_v22  ;;  %v7785_v4 = vmul.f32 %v8787_v51, %v8849_v44  ;;  %v8894_v39 = vrot.slane %v7421_v23, 7 }
 0x282   :  { %v1483_v19 = vrot.slane %v1401_v8, 7  ;;  %v5121_v59 = vrot.slane %v1402_v25, 11  ;;  %v1488_v40 = vrot.slane %v1403_v46, 7  ;;  %v1491_v57 = vrot.slane %v1404_v2, 7 }
 0x283   :  { %v1482_v63 = vrot.slane %v8894_v39, 4  ;;  %v5122_v28 = vrot.slane %v1405_v10, 11  ;;  %v8597_v3 = vrot.slane %v7785_v4, 7  ;;  %v1587_v15 = vmul.f32 %v6138_v11, %v8811_v54 }
 0x284   :  { %v1485_v55 = vrot.slane %v1483_v19, 4  ;;  %v1489_v51 = vsel %vm5977_vm10, %v5121_v59, %v1488_v40  ;;  %v1490_v29 = vrot.slane %v1488_v40, 4  ;;  %v1493_v23 = vrot.slane %v1491_v57, 4 }
 0x285   :  { %v1484_v33 = vsel %vm5977_vm10, %v1482_v63, %v1483_v19  ;;  %v1497_v27 = vsel %vm5977_vm10, %v5122_v28, %v8597_v3  ;;  %v1555_v8 = vadd.f32 %v1489_v51, %v1360_v13  ;;  %v1588_v49 = vmul.f32 %v8706_v50, %v8815_v5 }
 0x286   :  { %v1553_v53 = vadd.f32 %v1484_v33, %v1358_v17  ;;  %v1492_v18 = vsel %vm5977_vm10, %v1490_v29, %v1491_v57  ;;  %v1554_v54 = vadd.f32 %v1485_v55, %v1359_v61  ;;  %v1558_v41 = vadd.f32 %v1497_v27, %v1363_v16 }
 0x287   :  { %v1556_v35 = vadd.f32 %v1492_v18, %v1361_v30  ;;  %v1557_v9 = vadd.f32 %v1493_v23, %v1362_v52  ;;  %v1589_v37 = vmul.f32 %v8706_v50, %v8846_v22  ;;  %v1590_v21 = vmul.f32 %v6138_v11, %v8849_v44 }
 0x288   :  { %v1591_v17 = vmul.f32 %v8706_v50, %v8867_v45  ;;  %v1592_v13 = vmul.f32 %v8706_v50, %v8868_v42  ;;  %v1614_v25 = vadd.f32 %v1587_v15, %v1553_v53  ;;  %v1615_v61 = vadd.f32 %v1588_v49, %v1554_v54 }
 0x289   :  { %v1616_v48 = vadd.f32 %v1589_v37, %v1555_v8  ;;  %v1617_v16 = vadd.f32 %v1590_v21, %v1556_v35  ;;  %v1657_v46 = vmul.f32 %v8788_v47, %v8815_v5  ;;  %v1658_v52 = vmul.f32 %v5964_v60, %v8846_v22 }
 0x28a   :  { %v1618_v30 = vadd.f32 %v1591_v17, %v1557_v9  ;;  %v1619_v2 = vadd.f32 %v1592_v13, %v1558_v41  ;;  %v1659_v10 = vmul.f32 %v6003_v20, %v8849_v44  ;;  %v1660_v39 = vmul.f32 %v8788_v47, %v8867_v45 }
 0x28b   :  { %v1661_v63 = vmul.f32 %v5964_v60, %v8868_v42  ;;  %v7824_v19 = vmul.f32 %v6003_v20, %v8872_v31  ;;  %v8895_v59 = vrot.slane %v7454_v38, 5  ;;  %v1739_v57 = vrot.slane %v1657_v46, 5 }
 0x28c   :  { %v5130_v28 = vrot.slane %v1658_v52, 9  ;;  %v1744_v15 = vrot.slane %v1659_v10, 5  ;;  %v1747_v33 = vrot.slane %v1660_v39, 5  ;;  %v1852_v55 = vmul.f32 %v8836_v6, %v8815_v5  ;;  %v8897_v39 = vld [vmem:[#allocation26_spill] sm:$0xff] }
 0x28d   :  { %v1738_v40 = vrot.slane %v8895_v59, 4  ;;  %v1741_v29 = vrot.slane %v1739_v57, 4  ;;  %v5131_v23 = vrot.slane %v1661_v63, 9  ;;  %v8596_v60 = vrot.slane %v7824_v19, 5 }
 0x28e   :  { %v1745_v20 = vsel %vm5958_vm8, %v5130_v28, %v1744_v15  ;;  %v1746_v27 = vrot.slane %v1744_v15, 4  ;;  %v1749_v38 = vrot.slane %v1747_v33, 4  ;;  %v1853_v41 = vmul.f32 %v8834_v43, %v8846_v22 }
 0x28f   :  { %v1740_v51 = vsel %vm5958_vm8, %v1738_v40, %v1739_v57  ;;  %v1753_v8 = vsel %vm5958_vm8, %v5131_v23, %v8596_v60  ;;  %v1810_v18 = vadd.f32 %v1741_v29, %v1615_v61  ;;  %v1811_v54 = vadd.f32 %v1745_v20, %v1616_v48 }
 0x290   :  { %v1809_v53 = vadd.f32 %v1740_v51, %v1614_v25  ;;  %v1748_v49 = vsel %vm5958_vm8, %v1746_v27, %v1747_v33  ;;  %v1813_v35 = vadd.f32 %v1749_v38, %v1618_v30  ;;  %v1814_v9 = vadd.f32 %v1753_v8, %v1619_v2  ;;  %v8898_v51 = vld [vmem:[#allocation15_spill] sm:$0xff] }
 0x291   :  { %v1854_v37 = vmul.f32 %v8835_v1, %v8849_v44  ;;  %v1812_v21 = vadd.f32 %v1748_v49, %v1617_v16  ;;  %v1855_v17 = vmul.f32 %v8836_v6, %v8867_v45  ;;  %v1856_v13 = vmul.f32 %v8834_v43, %v8868_v42  ;;  %v8899_v27 = vld [vmem:[#allocation23_spill] sm:$0xff] }
 0x292   :  { %v7851_v25 = vmul.f32 %v8835_v1, %v8872_v31  ;;  %v8896_v61 = vrot.slane %v7477_v7, 6  ;;  %v1934_v46 = vrot.slane %v1852_v55, 6  ;;  %v5139_v52 = vrot.slane %v1853_v41, 10 }
 0x293   :  { %v1939_v30 = vrot.slane %v1854_v37, 6  ;;  %v1942_v2 = vrot.slane %v1855_v17, 6  ;;  %v5140_v10 = vrot.slane %v1856_v13, 10  ;;  %v2047_v63 = vmul.f32 %v8897_v39, %v8815_v5 }
 0x294   :  { %v1933_v48 = vrot.slane %v8896_v61, 4  ;;  %v8595_v16 = vrot.slane %v7851_v25, 6  ;;  %v1936_v59 = vrot.slane %v1934_v46, 4  ;;  %v2048_v29 = vmul.f32 %v8898_v51, %v8846_v22 }
 0x295   :  { %v1940_v1 = vsel %vm5970_vm9, %v5139_v52, %v1939_v30  ;;  %v1941_v40 = vrot.slane %v1939_v30, 4  ;;  %v1944_v7 = vrot.slane %v1942_v2, 4  ;;  %v2049_v38 = vmul.f32 %v8899_v27, %v8849_v44 }
 0x296   :  { %v1935_v43 = vsel %vm5970_vm9, %v1933_v48, %v1934_v46  ;;  %v1948_v57 = vsel %vm5970_vm9, %v5140_v10, %v8595_v16  ;;  %v2006_v15 = vadd.f32 %v1940_v1, %v1811_v54  ;;  %v2005_v5 = vadd.f32 %v1936_v59, %v1810_v18  ;;  %v8900_v18 = vld [vmem:[#allocation54_spill] sm:$0xff]  ;;  %v8903_v1 = vld [vmem:[#allocation19_spill] sm:$0xff] }
 0x297   :  { %v2004_v28 = vadd.f32 %v1935_v43, %v1809_v53  ;;  %v1943_v33 = vsel %vm5970_vm9, %v1941_v40, %v1942_v2  ;;  %v2009_v55 = vadd.f32 %v1948_v57, %v1814_v9  ;;  %v2008_v20 = vadd.f32 %v1944_v7, %v1813_v35  ;;  %v5606_v7 = vld [vmem:[%s8343_s4] sm:$0xff]  }
 0x298   :  { %v2007_v23 = vadd.f32 %v1943_v33, %v1812_v21  ;;  %v2050_v8 = vmul.f32 %v8897_v39, %v8867_v45  ;;  %v2051_v53 = vmul.f32 %v8898_v51, %v8868_v42  ;;  %v7878_v54 = vmul.f32 %v8899_v27, %v8872_v31  ;;  %v8902_v21 = vld [vmem:[#allocation41_spill] sm:$0xff]  ;;  %v8904_v27 = vld [vmem:[#allocation68_spill] sm:$0xff]  ;;  %5491 = vmatprep.subr.bf16.mxu1 %v5606_v7 }
 0x299   :  { %v8901_v41 = vrot.slane %v8900_v18, 7  ;;  %v2129_v9 = vrot.slane %v2047_v63, 7  ;;  %v5148_v22 = vrot.slane %v2048_v29, 11  ;;  %v2134_v37 = vrot.slane %v2049_v38, 7  ;;  %5492 = vmatpush3.bf16.msra.mxu1 %v5606_v7  ;;  %v8912_v7 = vld [vmem:[#allocation27_spill] sm:$0xff] }
 0x29a   :  { %v2137_v35 = vrot.slane %v2050_v8, 7  ;;  %v2233_v17 = vmul.f32 %v8902_v21, %v8849_v44  ;;  %v5149_v48 = vrot.slane %v2051_v53, 11  ;;  %v8594_v46 = vrot.slane %v7878_v54, 7  ;;  %v8905_v8 = vld [vmem:[#allocation70_spill] sm:$0xff] }
 0x29b   :  { %v2128_v49 = vrot.slane %v8901_v41, 4  ;;  %v2131_v61 = vrot.slane %v2129_v9, 4  ;;  %v2135_v52 = vsel %vm5977_vm10, %v5148_v22, %v2134_v37  ;;  %v2136_v30 = vrot.slane %v2134_v37, 4  ;;  %v8906_v41 = vld [vmem:[#allocation35_spill] sm:$0xff]  ;;  %v8907_v37 = vld [vmem:[#allocation21_spill] sm:$0xff] }
 0x29c   :  { %v2139_v2 = vrot.slane %v2137_v35, 4  ;;  %v2143_v63 = vsel %vm5977_vm10, %v5149_v48, %v8594_v46  ;;  %v2201_v59 = vadd.f32 %v2135_v52, %v2006_v15  ;;  %v2234_v40 = vmul.f32 %v8903_v1, %v8867_v45 }
 0x29d   :  { %v2130_v13 = vsel %vm5977_vm10, %v2128_v49, %v2129_v9  ;;  %v2200_v43 = vadd.f32 %v2131_v61, %v2005_v5  ;;  %v2138_v57 = vsel %vm5977_vm10, %v2136_v30, %v2137_v35  ;;  %v2204_v51 = vadd.f32 %v2143_v63, %v2009_v55  ;;  %v5607_v5 = vld [vmem:[%s8343_s4 + $0x8] sm:$0xff]   ;;  %v8908_v61 = vld [vmem:[#allocation30_spill] sm:$0xff]  ;;  %v8909_v30 = vld [vmem:[#allocation69_spill] sm:$0xff] }
 0x29e   :  { %v2199_v10 = vadd.f32 %v2130_v13, %v2004_v28  ;;  %v2203_v33 = vadd.f32 %v2139_v2, %v2008_v20  ;;  %v2235_v28 = vmul.f32 %v8903_v1, %v8868_v42  ;;  %v2202_v15 = vadd.f32 %v2138_v57, %v2007_v23  ;;  %5493 = vmatprep.subr.bf16.mxu1 %v5607_v5  ;;  %v5608_v13 = vld [vmem:[%s8343_s4 + $0x10] sm:$0xff]  }
 0x29f   :  { %v2236_v29 = vmul.f32 %v8902_v21, %v8872_v31  ;;  %v2237_v38 = vmul.f32 %v8903_v1, %v8904_v27  ;;  %v2238_v53 = vmul.f32 %v8903_v1, %v8905_v8  ;;  %v2261_v55 = vadd.f32 %v2234_v40, %v2200_v43  ;;  %5494 = vmatpush3.bf16.msra.mxu1 %v5607_v5 }
 0x2a0   :  { %v2260_v20 = vadd.f32 %v2233_v17, %v2199_v10  ;;  %v2262_v18 = vadd.f32 %v2235_v28, %v2201_v59  ;;  %v2303_v49 = vmul.f32 %v8906_v41, %v8867_v45  ;;  %v2304_v35 = vmul.f32 %v8907_v37, %v8868_v42  ;;  %v8910_v10 = vld [vmem:[#allocation52_spill] sm:$0xff]  ;;  %5495 = vmatprep.subr.bf16.mxu1 %v5608_v13 }
 0x2a1   :  { %v2263_v9 = vadd.f32 %v2236_v29, %v2202_v15  ;;  %v2264_v22 = vadd.f32 %v2237_v38, %v2203_v33  ;;  %v2265_v23 = vadd.f32 %v2238_v53, %v2204_v51  ;;  %v2305_v17 = vmul.f32 %v8908_v61, %v8872_v31  ;;  %v8913_v53 = vld [vmem:[#allocation24_spill] sm:$0xff] }
 0x2a2   :  { %v2306_v48 = vmul.f32 %v8906_v41, %v8904_v27  ;;  %v2307_v52 = vmul.f32 %v8907_v37, %v8905_v8  ;;  %v7926_v2 = vmul.f32 %v8908_v61, %v8909_v30  ;;  %v8911_v63 = vrot.slane %v8910_v10, 5  ;;  %v8914_v61 = vld [vmem:[#allocation33_spill] sm:$0xff] }
 0x2a3   :  { %v2385_v59 = vrot.slane %v2303_v49, 5  ;;  %v5157_v40 = vrot.slane %v2304_v35, 9  ;;  %v2498_v57 = vmul.f32 %v8912_v7, %v8867_v45  ;;  %v2390_v33 = vrot.slane %v2305_v17, 5  ;;  %v5609_v35 = vld [vmem:[%s8343_s4 + $0x18] sm:$0xff]   ;;  %5496 = vmatpush3.bf16.msra.mxu1 %v5608_v13 }
 0x2a4   :  { %v2384_v43 = vrot.slane %v8911_v63, 4  ;;  %v2393_v51 = vrot.slane %v2306_v48, 5  ;;  %v5158_v28 = vrot.slane %v2307_v52, 9  ;;  %v8599_v15 = vrot.slane %v7926_v2, 5  ;;  %5497 = vmatprep.subr.bf16.mxu1 %v5609_v35 }
 0x2a5   :  { %v2387_v38 = vrot.slane %v2385_v59, 4  ;;  %v2499_v37 = vmul.f32 %v8913_v53, %v8868_v42  ;;  %v2500_v49 = vmul.f32 %v8914_v61, %v8872_v31  ;;  %v2391_v17 = vsel %vm5958_vm8, %v5157_v40, %v2390_v33 }
 0x2a6   :  { %v2386_v29 = vsel %vm5958_vm8, %v2384_v43, %v2385_v59  ;;  %v2392_v48 = vrot.slane %v2390_v33, 4  ;;  %v2395_v5 = vrot.slane %v2393_v51, 4  ;;  %v2399_v52 = vsel %vm5958_vm8, %v5158_v28, %v8599_v15 }
 0x2a7   :  { %v2455_v10 = vadd.f32 %v2386_v29, %v2260_v20  ;;  %v2456_v63 = vadd.f32 %v2387_v38, %v2261_v55  ;;  %v2457_v43 = vadd.f32 %v2391_v17, %v2262_v18  ;;  %v2460_v59 = vadd.f32 %v2399_v52, %v2265_v23  ;;  %v8915_v20 = vld [vmem:[#allocation55_spill] sm:$0xff]  ;;  %5498 = vmatpush3.bf16.msra.mxu1 %v5609_v35  ;;  %v8918_v52 = vld [vmem:[#allocation25_spill] sm:$0xff] }
 0x2a8   :  { %v2394_v46 = vsel %vm5958_vm8, %v2392_v48, %v2393_v51  ;;  %v2459_v16 = vadd.f32 %v2395_v5, %v2264_v22  ;;  %v2501_v60 = vmul.f32 %v8912_v7, %v8904_v27  ;;  %v2502_v40 = vmul.f32 %v8913_v53, %v8905_v8  ;;  %v5610_v22 = vld [vmem:[%s8343_s4 + $0x20] sm:$0xff]   ;;  %v8917_v53 = vld [vmem:[#allocation28_spill] sm:$0xff] }
 0x2a9   :  { %v2458_v33 = vadd.f32 %v2394_v46, %v2263_v9  ;;  %v7956_v3 = vmul.f32 %v8914_v61, %v8909_v30  ;;  %v8916_v55 = vrot.slane %v8915_v20, 6  ;;  %v2580_v23 = vrot.slane %v2498_v57, 6  ;;  %5499 = vmatprep.subr.bf16.mxu1 %v5610_v22  ;;  %v5611_v20 = vld [vmem:[%s8343_s4 + $0x28] sm:$0xff]  }
 0x2aa   :  { %v5166_v51 = vrot.slane %v2499_v37, 10  ;;  %v2585_v28 = vrot.slane %v2500_v49, 6  ;;  %v2588_v29 = vrot.slane %v2501_v60, 6  ;;  %v5167_v38 = vrot.slane %v2502_v40, 10 }
 0x2ab   :  { %v2579_v18 = vrot.slane %v8916_v55, 4  ;;  %v2582_v9 = vrot.slane %v2580_v23, 4  ;;  %v8598_v13 = vrot.slane %v7956_v3, 6  ;;  %v2693_v61 = vmul.f32 %v8917_v53, %v8867_v45  ;;  %5500 = vmatpush3.bf16.msra.mxu1 %v5610_v22 }
 0x2ac   :  { %v2586_v57 = vsel %vm5970_vm9, %v5166_v51, %v2585_v28  ;;  %v2587_v17 = vrot.slane %v2585_v28, 4  ;;  %v2590_v48 = vrot.slane %v2588_v29, 4  ;;  %v2694_v40 = vmul.f32 %v8918_v52, %v8868_v42  ;;  %v8920_v28 = vld [vmem:[#allocation53_spill] sm:$0xff]  ;;  %5501 = vmatprep.subr.bf16.mxu1 %v5611_v20 }
 0x2ad   :  { %v2581_v46 = vsel %vm5970_vm9, %v2579_v18, %v2580_v23  ;;  %v2594_v60 = vsel %vm5970_vm9, %v5167_v38, %v8598_v13  ;;  %v2651_v37 = vadd.f32 %v2582_v9, %v2456_v63  ;;  %v2652_v49 = vadd.f32 %v2586_v57, %v2457_v43  ;;  %v8919_v18 = vld [vmem:[#allocation34_spill] sm:$0xff] }
 0x2ae   :  { %v2650_v5 = vadd.f32 %v2581_v46, %v2455_v10  ;;  %v2589_v55 = vsel %vm5970_vm9, %v2587_v17, %v2588_v29  ;;  %v2654_v10 = vadd.f32 %v2590_v48, %v2459_v16  ;;  %v2655_v35 = vadd.f32 %v2594_v60, %v2460_v59  ;;  %v8922_v17 = vld [vmem:[#allocation67_spill] sm:$0xff]  ;;  %v5612_v60 = vld [vmem:[%s8343_s4 + $0x30] sm:$0xff]  }
 0x2af   :  { %v2695_v23 = vmul.f32 %v8919_v18, %v8872_v31  ;;  %v2653_v51 = vadd.f32 %v2589_v55, %v2458_v33  ;;  %v2696_v63 = vmul.f32 %v8917_v53, %v8904_v27  ;;  %v2697_v42 = vmul.f32 %v8918_v52, %v8905_v8  ;;  %5502 = vmatpush3.bf16.msra.mxu1 %v5611_v20 }
 0x2b0   :  { %v7989_v43 = vmul.f32 %v8919_v18, %v8909_v30  ;;  %v8921_v38 = vrot.slane %v8920_v28, 7  ;;  %v2775_v29 = vrot.slane %v2693_v61, 7  ;;  %v5175_v16 = vrot.slane %v2694_v40, 11  ;;  %5503 = vmatprep.subr.bf16.mxu1 %v5612_v60 }
 0x2b1   :  { %v2780_v59 = vrot.slane %v2695_v23, 7  ;;  %v2783_v9 = vrot.slane %v2696_v63, 7  ;;  %v5176_v57 = vrot.slane %v2697_v42, 11  ;;  %v2879_v48 = vmul.f32 %v8922_v17, %v8872_v31 }
 0x2b2   :  { %v2774_v46 = vrot.slane %v8921_v38, 4  ;;  %v8600_v33 = vrot.slane %v7989_v43, 7  ;;  %v2777_v55 = vrot.slane %v2775_v29, 4  ;;  %v2882_v15 = vmul.f32 %v8922_v17, %v8909_v30 }
 0x2b3   :  { %v2781_v61 = vsel %vm5977_vm10, %v5175_v16, %v2780_v59  ;;  %v2782_v22 = vrot.slane %v2780_v59, 4  ;;  %v2785_v40 = vrot.slane %v2783_v9, 4  ;;  %5504 = vmatpush3.bf16.msra.mxu1 %v5612_v60 }
 0x2b4   :  { %v2776_v52 = vsel %vm5977_vm10, %v2774_v46, %v2775_v29  ;;  %v2789_v18 = vsel %vm5977_vm10, %v5176_v57, %v8600_v33  ;;  %v2847_v63 = vadd.f32 %v2781_v61, %v2652_v49  ;;  %v2846_v28 = vadd.f32 %v2777_v55, %v2651_v37  ;;  %v8923_v46 = vld [vmem:[#allocation20_spill] sm:$0xff]  ;;  %v8924_v49 = vld [vmem:[#allocation74_spill] sm:$0xff]  ;;  %v8927_v61 = vld [vmem:[#allocation31_spill] sm:$0xff] }
 0x2b5   :  { %v2845_v23 = vadd.f32 %v2776_v52, %v2650_v5  ;;  %v2784_v42 = vsel %vm5977_vm10, %v2782_v22, %v2783_v9  ;;  %v2850_v38 = vadd.f32 %v2789_v18, %v2655_v35  ;;  %v2880_v29 = vmul.f32 %v8923_v46, %v8904_v27  ;;  %v5613_v5 = vld [vmem:[%s8343_s4 + $0x38] sm:$0xff]   ;;  %v8925_v35 = vld [vmem:[#allocation72_spill] sm:$0xff]  ;;  %v8926_v52 = vld [vmem:[#allocation83_spill] sm:$0xff] }
 0x2b6   :  { %v2848_v13 = vadd.f32 %v2784_v42, %v2653_v51  ;;  %v2849_v16 = vadd.f32 %v2785_v40, %v2654_v10  ;;  %v2881_v59 = vmul.f32 %v8923_v46, %v8905_v8  ;;  %v2883_v37 = vmul.f32 %v8923_v46, %v8924_v49  ;;  %v8928_v42 = vld [vmem:[#allocation29_spill] sm:$0xff]  ;;  %5505 = vmatprep.subr.bf16.mxu1 %v5613_v5 }
 0x2b7   :  { %v2884_v9 = vmul.f32 %v8923_v46, %v8925_v35  ;;  %v2906_v20 = vadd.f32 %v2879_v48, %v2845_v23  ;;  %v2907_v51 = vadd.f32 %v2880_v29, %v2846_v28  ;;  %v2949_v55 = vmul.f32 %v8926_v52, %v8904_v27  ;;  %v8929_v23 = vld [vmem:[#allocation75_spill] sm:$0xff]  ;;  %5506 = vmatpush3.bf16.msra.mxu1 %v5613_v5 }
 0x2b8   :  { %v2908_v10 = vadd.f32 %v2881_v59, %v2847_v63  ;;  %v2909_v57 = vadd.f32 %v2882_v15, %v2848_v13  ;;  %v2950_v22 = vmul.f32 %v8927_v61, %v8905_v8  ;;  %v2910_v40 = vadd.f32 %v2883_v37, %v2849_v16  ;;  %v8931_v13 = vld [vmem:[#allocation58_spill] sm:$0xff]  ;;  %v8933_v37 = vld [vmem:[#allocation85_spill] sm:$0xff] }
 0x2b9   :  { %v2911_v18 = vadd.f32 %v2884_v9, %v2850_v38  ;;  %v2951_v33 = vmul.f32 %v8928_v42, %v8909_v30  ;;  %v2952_v12 = vmul.f32 %v8926_v52, %v8924_v49  ;;  %v2953_v48 = vmul.f32 %v8927_v61, %v8925_v35 }
 0x2ba   :  { %v8034_v15 = vmul.f32 %v8928_v42, %v8929_v23  ;;  %v8932_v63 = vrot.slane %v8931_v13, 5  ;;  %v3031_v29 = vrot.slane %v2949_v55, 5  ;;  %v5184_v38 = vrot.slane %v2950_v22, 9 }
 0x2bb   :  { %v3036_v16 = vrot.slane %v2951_v33, 5  ;;  %v3039_v59 = vrot.slane %v2952_v12, 5  ;;  %v3144_v9 = vmul.f32 %v8933_v37, %v8904_v27  ;;  %v5185_v61 = vrot.slane %v2953_v48, 9 }
 0x2bc   :  { %8930 = vst [vmem:[#allocation7_spill] sm:$0xff] %v8034_v15  ;;  %v3030_v28 = vrot.slane %v8932_v63, 4  ;;  %v3033_v32 = vrot.slane %v3031_v29, 4  ;;  %v8606_v46 = vrot.slane %v8034_v15, 5  ;;  %v3147_v5 = vmul.f32 %v8933_v37, %v8924_v49 }
 0x2bd   :  { %v3037_v42 = vsel %vm5958_vm8, %v5184_v38, %v3036_v16  ;;  %v3038_v13 = vrot.slane %v3036_v16, 4  ;;  %v3041_v63 = vrot.slane %v3039_v59, 4  ;;  %v8935_v38 = vld [vmem:[#allocation84_spill] sm:$0xff] }
 0x2be   :  { %v3032_v60 = vsel %vm5958_vm8, %v3030_v28, %v3031_v29  ;;  %v3045_v12 = vsel %vm5958_vm8, %v5185_v61, %v8606_v46  ;;  %v3102_v33 = vadd.f32 %v3033_v32, %v2907_v51  ;;  %v3103_v22 = vadd.f32 %v3037_v42, %v2908_v10  ;;  %v8934_v28 = vld [vmem:[#allocation36_spill] sm:$0xff] }
 0x2bf   :  { %v3101_v55 = vadd.f32 %v3032_v60, %v2906_v20  ;;  %v3145_v29 = vmul.f32 %v8934_v28, %v8905_v8  ;;  %v3040_v48 = vsel %vm5958_vm8, %v3038_v13, %v3039_v59  ;;  %v3105_v52 = vadd.f32 %v3041_v63, %v2910_v40  ;;  %v8937_v51 = vld [vmem:[#allocation56_spill] sm:$0xff] }
 0x2c0   :  { %v3106_v17 = vadd.f32 %v3045_v12, %v2911_v18  ;;  %v3146_v16 = vmul.f32 %v8935_v38, %v8909_v30  ;;  %v3104_v20 = vadd.f32 %v3040_v48, %v2909_v57  ;;  %v3148_v60 = vmul.f32 %v8934_v28, %v8925_v35  ;;  %v8939_v63 = vld [vmem:[#allocation88_spill] sm:$0xff] }
 0x2c1   :  { %v8061_v32 = vmul.f32 %v8935_v38, %v8929_v23  ;;  %v8938_v10 = vrot.slane %v8937_v51, 6  ;;  %v3226_v59 = vrot.slane %v3144_v9, 6  ;;  %v5193_v40 = vrot.slane %v3145_v29, 10 }
 0x2c2   :  { %v3231_v18 = vrot.slane %v3146_v16, 6  ;;  %v3234_v42 = vrot.slane %v3147_v5, 6  ;;  %v5194_v13 = vrot.slane %v3148_v60, 10  ;;  %v3339_v12 = vmul.f32 %v8939_v63, %v8904_v27 }
 0x2c3   :  { %8936 = vst [vmem:[#allocation12_spill] sm:$0xff] %v8061_v32  ;;  %v3225_v61 = vrot.slane %v8938_v10, 4  ;;  %v3239_v57 = vrot.slane %v8061_v32, 6  ;;  %v3228_v48 = vrot.slane %v3226_v59, 4  ;;  %v3342_v32 = vmul.f32 %v8939_v63, %v8924_v49 }
 0x2c4   :  { %v3232_v38 = vsel %vm5970_vm9, %v5193_v40, %v3231_v18  ;;  %v3233_v46 = vrot.slane %v3231_v18, 4  ;;  %v3236_v51 = vrot.slane %v3234_v42, 4  ;;  %v8941_v40 = vld [vmem:[#allocation87_spill] sm:$0xff] }
 0x2c5   :  { %v3227_v28 = vsel %vm5970_vm9, %v3225_v61, %v3226_v59  ;;  %v3240_v9 = vsel %vm5970_vm9, %v5194_v13, %v3239_v57  ;;  %v3298_v16 = vadd.f32 %v3232_v38, %v3103_v22  ;;  %v3297_v60 = vadd.f32 %v3228_v48, %v3102_v33  ;;  %v8940_v61 = vld [vmem:[#allocation37_spill] sm:$0xff] }
 0x2c6   :  { %v3296_v29 = vadd.f32 %v3227_v28, %v3101_v55  ;;  %v3235_v5 = vsel %vm5970_vm9, %v3233_v46, %v3234_v42  ;;  %v3301_v10 = vadd.f32 %v3240_v9, %v3106_v17  ;;  %v3340_v59 = vmul.f32 %v8940_v61, %v8905_v8  ;;  %v8943_v42 = vld [vmem:[#allocation2_spill] sm:$0xff] }
 0x2c7   :  { %v3299_v37 = vadd.f32 %v3235_v5, %v3104_v20  ;;  %v3300_v15 = vadd.f32 %v3236_v51, %v3105_v52  ;;  %v3341_v18 = vmul.f32 %v8941_v40, %v8909_v30  ;;  %v3343_v55 = vmul.f32 %v8940_v61, %v8925_v35 }
 0x2c8   :  { %v8088_v22 = vmul.f32 %v8941_v40, %v8929_v23  ;;  %v8942_v17 = vrot.slane %v7656_v24, 7  ;;  %v3421_v33 = vrot.slane %v3339_v12, 7  ;;  %v5202_v8 = vrot.slane %v3340_v59, 11  ;;  %v8944_v59 = vld [vmem:[#allocation39_spill] sm:$0xff] }
 0x2c9   :  { %v3426_v20 = vrot.slane %v3341_v18, 7  ;;  %v3429_v52 = vrot.slane %v3342_v32, 7  ;;  %v3862_v13 = vcombine.high %v8943_v42, %v8943_v42  ;;  %v5203_v38 = vrot.slane %v3343_v55, 11 }
 0x2ca   :  { %v3420_v46 = vrot.slane %v8942_v17, 4  ;;  %v3423_v48 = vrot.slane %v3421_v33, 4  ;;  %v8610_v35 = vrot.slane %v8088_v22, 7  ;;  %v938_v40 = vmul.f32 %v8944_v59, %v8849_v44 }
 0x2cb   :  { %v3427_v51 = vsel %vm5977_vm10, %v5202_v8, %v3426_v20  ;;  %v3428_v9 = vrot.slane %v3426_v20, 4  ;;  %v3431_v24 = vrot.slane %v3429_v52, 4  ;;  %v8945_v20 = vld [vmem:[#allocation5_spill] sm:$0xff] }
 0x2cc   :  { %v3422_v28 = vsel %vm5977_vm10, %v3420_v46, %v3421_v33  ;;  %v3435_v32 = vsel %vm5977_vm10, %v5203_v38, %v8610_v35  ;;  %v3492_v12 = vadd.f32 %v3423_v48, %v3297_v60  ;;  %v3493_v61 = vadd.f32 %v3427_v51, %v3298_v16 }
 0x2cd   :  { %v3491_v5 = vadd.f32 %v3422_v28, %v3296_v29  ;;  %v3430_v18 = vsel %vm5977_vm10, %v3428_v9, %v3429_v52  ;;  %v3495_v55 = vadd.f32 %v3431_v24, %v3300_v15  ;;  %v3496_v17 = vadd.f32 %v3435_v32, %v3301_v10 }
 0x2ce   :  { %v3494_v33 = vadd.f32 %v3430_v18, %v3299_v37  ;;  %v3893_v29 = vrot.slane %v3492_v12, %v6925_v58  ;;  %v3907_v8 = vrot.slane %v3493_v61, %v6925_v58  ;;  %v939_v42 = vmul.f32 %v8945_v20, %v8867_v45 }
 0x2cf   :  { %v3869_v46 = vrot.slane %v3491_v5, %v6925_v58  ;;  %v3955_v44 = vrot.slane %v3495_v55, %v6925_v58  ;;  %v8115_v28 = vrot.slane %v3496_v17, %v6925_v58  ;;  %v8946_v55 = vld [vmem:[#allocation40_spill] sm:$0xff] }
 0x2d0   :  { %v3900_v15 = vrot.slane %v3893_v29, %v6925_v58  ;;  %v3908_v10 = vcombine.high %v3907_v8, %v3907_v8  ;;  %v3915_v37 = vrot.slane %v3907_v8, %v6925_v58  ;;  %v3931_v52 = vrot.slane %v3494_v33, %v6925_v58 }
 0x2d1   :  { %v3870_v60 = vcombine.high %v3869_v46, %v3869_v46  ;;  %v3877_v16 = vrot.slane %v3869_v46, %v6925_v58  ;;  %v3962_v51 = vrot.slane %v3955_v44, %v6925_v58  ;;  %v8124_v9 = vrot.slane %v8115_v28, %v6925_v58 }
 0x2d2   :  { %v3922_v24 = vrot.slane %v3908_v10, %v6925_v58  ;;  %v3932_v5 = vcombine.high %v3931_v52, %v3931_v52  ;;  %v3939_v32 = vrot.slane %v3931_v52, %v6925_v58  ;;  %v1011_v17 = vmul.f32 %v8946_v55, %v8867_v45 }
 0x2d3   :  { %v3884_v48 = vrot.slane %v3870_v60, %v6925_v58  ;;  %v3885_v38 = vcombine.high %v3877_v16, %v3877_v16  ;;  %v4381_v12 = vcombine.low %v3862_v13, %v3877_v16  ;;  %v4433_v18 = vcombine.low %v3962_v51, %v8124_v9 }
 0x2d4   :  { %v3946_v46 = vrot.slane %v3932_v5, %v6925_v58  ;;  %v4384_v33 = vcombine.low %v3915_v37, %v3922_v24  ;;  %v5211_v8 = vcombine.high %v3915_v37, %v3922_v24  ;;  %v8947_v13 = vrot.slane %v7728_v14, 5 }
 0x2d5   :  { %v3886_v61 = vcombine.high %v3884_v48, %v3884_v48  ;;  %v4382_v59 = vcombine.low %v3884_v48, %v3885_v38  ;;  %v4391_v29 = vrot.slane %v4381_v12, %v6925_v58  ;;  %v4461_v10 = vrot.slane %v4433_v18, %v6925_v58 }
 0x2d6   :  { %v1105_v16 = vrot.slane %v8947_v13, 4  ;;  %v4412_v52 = vrot.slane %v4384_v33, %v6925_v58  ;;  %v4431_v48 = vcombine.low %v3939_v32, %v3946_v46  ;;  %v5212_v38 = vcombine.high %v3939_v32, %v3946_v46 }
 0x2d7   :  { %v4383_v60 = vcombine.low %v3886_v61, %v3900_v15  ;;  %v4398_v44 = vrot.slane %v4382_v59, %v6925_v58  ;;  %v4440_v51 = vrot.slane %v5211_v8, %v6925_v58  ;;  %v1106_v35 = vrot.slane %v1011_v17, 5 }
 0x2d8   :  { %v1212_v15 = vmul.f32 %v8785_v36, %v8867_v45  ;;  %v4447_v37 = vrot.slane %v4431_v48, %v6925_v58  ;;  %v4454_v24 = vrot.slane %v5212_v38, %v6925_v58  ;;  %v8948_v14 = vrot.slane %v7758_v26, 6 }
 0x2d9   :  { %v4405_v5 = vrot.slane %v4383_v60, %v6925_v58  ;;  %v4413_v55 = vcombine.low %v4391_v29, %v4398_v44  ;;  %v1407_v61 = vmul.f32 %v6016_v34, %v8867_v45  ;;  %v1107_v18 = vsel %vm5958_vm8, %v1105_v16, %v1106_v35 }
 0x2da   :  { %v1303_v12 = vrot.slane %v8948_v14, 4  ;;  %v1108_v17 = vrot.slane %v1106_v35, 4  ;;  %v4462_v46 = vcombine.low %v4440_v51, %v4447_v37  ;;  %v4463_v33 = vcombine.low %v4454_v24, %v4461_v10 }
 0x2db   :  { %v4414_v32 = vcombine.low %v4405_v5, %v4412_v52  ;;  %v4421_v59 = vrot.slane %v4413_v55, %v6925_v58  ;;  %v1166_v36 = vadd.f32 %v1107_v18, %v938_v40  ;;  %v1304_v29 = vrot.slane %v1212_v15, 6 }
 0x2dc   :  { %v1167_v60 = vadd.f32 %v1108_v17, %v939_v42  ;;  %v8949_v26 = vrot.slane %v7785_v4, 7  ;;  %v1499_v13 = vrot.slane %v1407_v61, 7  ;;  %v4470_v34 = vrot.slane %v4462_v46, %v6925_v58  ;;  %v8952_v17 = vld [vmem:[#allocation89_spill] sm:$0xff] }
 0x2dd   :  { %v4428_v8 = vrot.slane %v4414_v32, %v6925_v58  ;;  %v4477_v45 = vrot.slane %v4463_v33, %v6925_v58  ;;  %v1305_v52 = vsel %vm5970_vm9, %v1303_v12, %v1304_v29  ;;  %v1306_v16 = vrot.slane %v1304_v29, 4 }
 0x2de   :  { %v1498_v44 = vrot.slane %v8949_v26, 4  ;;  %v1364_v48 = vadd.f32 %v1305_v52, %v1166_v36  ;;  %v1501_v10 = vrot.slane %v1499_v13, 4  ;;  %v1593_v4 = vmul.f32 %v6138_v11, %v8872_v31 }
 0x2df   :  { %v4429_v35 = vcombine.low %v4421_v59, %v4428_v8  ;;  %v4478_v38 = vcombine.low %v4470_v34, %v4477_v45  ;;  %v1365_v42 = vadd.f32 %v1306_v16, %v1167_v60  ;;  %v1594_v51 = vmul.f32 %v8706_v50, %v8904_v27 }
 0x2e0   :  { %v1500_v40 = vsel %vm5977_vm10, %v1498_v44, %v1499_v13  ;;  %v1663_v55 = vmul.f32 %v8788_v47, %v8904_v27  ;;  %v8950_v15 = vrot.slane %v7824_v19, 5  ;;  %v1858_v24 = vmul.f32 %v8836_v6, %v8904_v27  ;;  %v8954_v47 = vld [vmem:[#allocation90_spill] sm:$0xff] }
 0x2e1   :  { %v1559_v5 = vadd.f32 %v1500_v40, %v1364_v48  ;;  %v4605_v14 = vpack.c.bf16 %v4478_v38, %v4429_v35  ;;  %v1560_v12 = vadd.f32 %v1501_v10, %v1365_v42  ;;  %v8951_v61 = vrot.slane %v7851_v25, 6 }
 0x2e2   :  { %v1754_v37 = vrot.slane %v8950_v15, 4  ;;  %v2053_v11 = vmul.f32 %v8897_v39, %v8904_v27  ;;  %v1755_v59 = vrot.slane %v1663_v55, 5  ;;  %v1950_v18 = vrot.slane %v1858_v24, 6  ;;  %v8960_v15 = vld [vmem:[#allocation77_spill] sm:$0xff] }
 0x2e3   :  { %v1949_v32 = vrot.slane %v8951_v61, 4  ;;  %v1620_v31 = vadd.f32 %v1593_v4, %v1559_v5  ;;  %v8953_v46 = vrot.slane %v8952_v17, 7  ;;  %5484 = vmatmul.mubr.bf16.gmra.mrb[44].mxu0 %v4605_v14  ;;  %v1621_v33 = vadd.f32 %v1594_v51, %v1560_v12 }
 0x2e4   :  { %v1756_v6 = vsel %vm5958_vm8, %v1754_v37, %v1755_v59  ;;  %v1757_v36 = vrot.slane %v1755_v59, 4  ;;  %v8955_v25 = vrot.slane %v7878_v54, 7  ;;  %v2145_v8 = vrot.slane %v2053_v11, 7  ;;  %v8961_v37 = vld [vmem:[#allocation83_spill] sm:$0xff] }
 0x2e5   :  { %v3446_v19 = vsel %vm5977_vm10, %v8954_v47, %v8953_v46  ;;  %v1815_v39 = vadd.f32 %v1756_v6, %v1620_v31  ;;  %v1951_v60 = vsel %vm5970_vm9, %v1949_v32, %v1950_v18  ;;  %v2239_v26 = vmul.f32 %v8902_v21, %v8909_v30  ;;  %v8964_v46 = vld [vmem:[#allocation85_spill] sm:$0xff] }
 0x2e6   :  { %v2144_v29 = vrot.slane %v8955_v25, 4  ;;  %v2309_v44 = vmul.f32 %v8906_v41, %v8924_v49  ;;  %v1816_v13 = vadd.f32 %v1757_v36, %v1621_v33  ;;  %v1952_v34 = vrot.slane %v1950_v18, 4  ;;  %v8965_v36 = vld [vmem:[#allocation43_spill] sm:$0xff] }
 0x2e7   :  { %v8956_v45 = vrot.slane %v7926_v2, 5  ;;  %v2504_v54 = vmul.f32 %v8912_v7, %v8924_v49  ;;  %v2010_v16 = vadd.f32 %v1951_v60, %v1815_v39  ;;  %v8957_v48 = vrot.slane %v7956_v3, 6 }
 0x2e8   :  { %v2401_v35 = vrot.slane %v2309_v44, 5  ;;  %v2699_v10 = vmul.f32 %v8917_v53, %v8924_v49  ;;  %v2011_v21 = vadd.f32 %v1952_v34, %v1816_v13  ;;  %v2146_v41 = vsel %vm5977_vm10, %v2144_v29, %v2145_v8  ;;  %v8959_v53 = vld [vmem:[#allocation67_spill] sm:$0xff] }
 0x2e9   :  { %v2400_v52 = vrot.slane %v8956_v45, 4  ;;  %v2595_v40 = vrot.slane %v8957_v48, 4  ;;  %v2147_v30 = vrot.slane %v2145_v8, 4  ;;  %v2596_v38 = vrot.slane %v2504_v54, 6 }
 0x2ea   :  { %v2205_v42 = vadd.f32 %v2146_v41, %v2010_v16  ;;  %v2240_v2 = vmul.f32 %v8903_v1, %v8924_v49  ;;  %v8958_v7 = vrot.slane %v7989_v43, 7  ;;  %v2791_v51 = vrot.slane %v2699_v10, 7  ;;  %v8962_v43 = vld [vmem:[#allocation7_spill] sm:$0xff] }
 0x2eb   :  { %v2206_v5 = vadd.f32 %v2147_v30, %v2011_v21  ;;  %v2402_v3 = vsel %vm5958_vm8, %v2400_v52, %v2401_v35  ;;  %v2885_v55 = vmul.f32 %v8959_v53, %v8929_v23  ;;  %v2955_v24 = vmul.f32 %v8961_v37, %v8960_v15 }
 0x2ec   :  { %v2790_v4 = vrot.slane %v8958_v7, 4  ;;  %v2266_v14 = vadd.f32 %v2239_v26, %v2205_v42  ;;  %v2403_v12 = vrot.slane %v2401_v35, 4  ;;  %v2597_v61 = vsel %vm5970_vm9, %v2595_v40, %v2596_v38 }
 0x2ed   :  { %v2598_v32 = vrot.slane %v2596_v38, 4  ;;  %v2267_v11 = vadd.f32 %v2240_v2, %v2206_v5  ;;  %v8963_v31 = vrot.slane %v8962_v43, 5  ;;  %v3047_v18 = vrot.slane %v2955_v24, 5  ;;  %v8972_v43 = vld [vmem:[#allocation73_spill] sm:$0xff] }
 0x2ee   :  { %v3150_v47 = vmul.f32 %v8964_v46, %v8960_v15  ;;  %v2461_v33 = vadd.f32 %v2402_v3, %v2266_v14  ;;  %v2792_v23 = vsel %vm5977_vm10, %v2790_v4, %v2791_v51  ;;  %v3345_v6 = vmul.f32 %v8939_v63, %v8960_v15  ;;  %v8970_v3 = vld [vmem:[#allocation71_spill] sm:$0xff] }
 0x2ef   :  { %v3046_v59 = vrot.slane %v8963_v31, 4  ;;  %v3500_v25 = vadd.f32 %v3446_v19, %v8965_v36  ;;  %v2462_v29 = vadd.f32 %v2403_v12, %v2267_v11  ;;  %v3241_v60 = vrot.slane %v3239_v57, 4  ;;  %v8969_v57 = vld [vmem:[#allocation20_spill] sm:$0xff] }
 0x2f0   :  { %v3242_v26 = vrot.slane %v3150_v47, 6  ;;  %v2656_v44 = vadd.f32 %v2597_v61, %v2461_v33  ;;  %v8967_v13 = vrot.slane %v8088_v22, 7  ;;  %v3437_v45 = vrot.slane %v3345_v6, 7  ;;  %v8974_v6 = vld [vmem:[#allocation76_spill] sm:$0xff] }
 0x2f1   :  { %v3048_v8 = vsel %vm5958_vm8, %v3046_v59, %v3047_v18  ;;  %v3970_v52 = vcombine.high %v8115_v28, %v8115_v28  ;;  %v2657_v54 = vadd.f32 %v2598_v32, %v2462_v29  ;;  %v2793_v63 = vrot.slane %v2791_v51, 4 }
 0x2f2   :  { %v3436_v34 = vrot.slane %v8967_v13, 4  ;;  %v3243_v19 = vsel %vm5970_vm9, %v3241_v60, %v3242_v26  ;;  %v4031_v16 = vrot.slane %v8968_v56, %v6925_v58  ;;  %v2851_v35 = vadd.f32 %v2792_v23, %v2656_v44 }
 0x2f3   :  { %v2886_v48 = vmul.f32 %v8969_v57, %v8960_v15  ;;  %v3049_v40 = vrot.slane %v3047_v18, 4  ;;  %v2852_v10 = vadd.f32 %v2793_v63, %v2657_v54  ;;  %v3985_v28 = vcombine.high %v8124_v9, %v8124_v9 }
 0x2f4   :  { %v3438_v22 = vsel %vm5977_vm10, %v3436_v34, %v3437_v45  ;;  %v4032_v21 = vcombine.high %v4031_v16, %v4031_v16  ;;  %v4055_v41 = vrot.slane %v3500_v25, %v6925_v58  ;;  %v2912_v62 = vadd.f32 %v2885_v55, %v2851_v35  ;;  %v8976_v34 = vld [vmem:[#allocation6_spill] sm:$0xff] }
 0x2f5   :  { %v3244_v30 = vrot.slane %v3242_v26, 4  ;;  %v3439_v38 = vrot.slane %v3437_v45, 4  ;;  %v3984_v42 = vrot.slane %v3970_v52, %v6925_v58  ;;  %v2913_v2 = vadd.f32 %v2886_v48, %v2852_v10  ;;  %v8266_v48 = vld [vmem:[%s8342_s5] sm:$0xff] }
 0x2f6   :  { %v4039_v7 = vrot.slane %v4031_v16, %v6925_v58  ;;  %v4046_v4 = vrot.slane %v4032_v21, %v6925_v58  ;;  %v4056_v51 = vcombine.high %v4055_v41, %v4055_v41  ;;  %v3107_v0 = vadd.f32 %v3048_v8, %v2912_v62  ;;  %v8979_v10 = vld [vmem:[#allocation78_spill] sm:$0xff] }
 0x2f7   :  { %v4063_v5 = vrot.slane %v4055_v41, %v6925_v58  ;;  %v942_v9 = vmul.f32 %v8945_v20, %v8904_v27  ;;  %v8971_v53 = vrot.slane %v8970_v3, 5  ;;  %v3108_v55 = vadd.f32 %v3049_v40, %v2913_v2 }
 0x2f8   :  { %v4070_v24 = vrot.slane %v4056_v51, %v6925_v58  ;;  %v4528_v14 = vcombine.low %v4039_v7, %v4046_v4  ;;  %v5213_v12 = vcombine.high %v4039_v7, %v4046_v4  ;;  %v3302_v61 = vadd.f32 %v3243_v19, %v3107_v0  ;;  %v8981_v4 = vld [vmem:[#allocation79_spill] sm:$0xff] }
 0x2f9   :  { %v1116_v37 = vrot.slane %v8971_v53, 4  ;;  %v3986_v32 = vcombine.high %v3984_v42, %v3984_v42  ;;  %v8973_v31 = vrot.slane %v8972_v43, 6  ;;  %v3303_v18 = vadd.f32 %v3244_v30, %v3108_v55 }
 0x2fa   :  { %v4530_v46 = vcombine.low %v4063_v5, %v4070_v24  ;;  %v5214_v47 = vcombine.high %v4063_v5, %v4070_v24  ;;  %v4538_v33 = vrot.slane %v4528_v14, %v6925_v58  ;;  %v3497_v27 = vadd.f32 %v3438_v22, %v3302_v61  ;;  %v5481_v5 = vpop.f32.mrb[40].mxu0 }
 0x2fb   :  { %v1170_v11 = vadd.f32 %v1116_v37, %v942_v9  ;;  %v1314_v59 = vrot.slane %v8973_v31, 4  ;;  %v4545_v20 = vrot.slane %v5213_v12, %v6925_v58  ;;  %v8975_v36 = vrot.slane %v8974_v6, 7  ;;  %v4710_v55 = vpop.f32.mrb[41].mxu0 }
 0x2fc   :  { %v3498_v29 = vadd.f32 %v3439_v38, %v3303_v18  ;;  %v4552_v8 = vrot.slane %v4530_v46, %v6925_v58  ;;  %v4559_v39 = vrot.slane %v5214_v47, %v6925_v58  ;;  %v1597_v60 = vmul.f32 %v8706_v50, %v8924_v49  ;;  %v8978_v50 = vld [vmem:[#allocation3_spill] sm:$0xff]  ;;  %v5482_v12 = vpop.f32.mrb[42].mxu0 }
 0x2fd   :  { %v1368_v23 = vadd.f32 %v1314_v59, %v1170_v11  ;;  %v1509_v25 = vrot.slane %v8975_v36, 4  ;;  %v3993_v26 = vrot.slane %v3497_v27, %v6925_v58  ;;  %v4560_v44 = vcombine.low %v4538_v33, %v4545_v20  ;;  %v4713_v31 = vpop.f32.mrb[43].mxu0  ;;  %v8983_v27 = vld [vmem:[#allocation80_spill] sm:$0xff] }
 0x2fe   :  { %v8977_v45 = vrot.slane %v8976_v34, 5  ;;  %v4017_v54 = vrot.slane %v3498_v29, %v6925_v58  ;;  %v4479_v63 = vcombine.low %v3984_v42, %v3985_v28  ;;  %v4561_v19 = vcombine.low %v4552_v8, %v4559_v39 }
 0x2ff   :  { %v1563_v13 = vadd.f32 %v1509_v25, %v1368_v23  ;;  %v3994_v56 = vcombine.high %v3993_v26, %v3993_v26  ;;  %v4001_v16 = vrot.slane %v3993_v26, %v6925_v58  ;;  %v8270_v49 = vrot.slane %v8266_v48, %v8978_v50 }
 0x300   :  { %v1765_v52 = vrot.slane %v8977_v45, 4  ;;  %v4568_v40 = vrot.slane %v4560_v44, %v6925_v58  ;;  %v4575_v22 = vrot.slane %v4561_v19, %v6925_v58  ;;  %v8980_v28 = vrot.slane %v8979_v10, 6 }
 0x301   :  { %v1624_v35 = vadd.f32 %v1597_v60, %v1563_v13  ;;  %v4008_v41 = vrot.slane %v3994_v56, %v6925_v58  ;;  %v4009_v62 = vcombine.high %v4001_v16, %v4001_v16  ;;  %v4480_v30 = vcombine.low %v3986_v32, %v4001_v16  ;;  %v8989_v16 = vld [vmem:[#allocation10_spill] sm:$0xff] }
 0x302   :  { %v1960_v21 = vrot.slane %v8980_v28, 4  ;;  %v4024_v42 = vrot.slane %v4017_v54, %v6925_v58  ;;  %v4489_v2 = vrot.slane %v4479_v63, %v6925_v58  ;;  %v4576_v7 = vcombine.low %v4568_v40, %v4575_v22  ;;  %v8990_v22 = vld [vmem:[#allocation32_spill] sm:$0xff] }
 0x303   :  { %v1819_v38 = vadd.f32 %v1765_v52, %v1624_v35  ;;  %v8982_v51 = vrot.slane %v8981_v4, 7  ;;  %v4010_v9 = vcombine.high %v4008_v41, %v4008_v41  ;;  %v4481_v3 = vcombine.low %v4008_v41, %v4009_v62  ;;  %v8987_v52 = vld [vmem:[#allocation82_spill] sm:$0xff] }
 0x304   :  { %v4496_v53 = vrot.slane %v4480_v30, %v6925_v58  ;;  %v4719_v24 = vadd.f32 %v5481_v5, %v8270_v49  ;;  %v4711_v14 = vadd.f32 %v4710_v55, %v8270_v49  ;;  %v2243_v43 = vmul.f32 %v8903_v1, %v8960_v15  ;;  %v8985_v1 = vld [vmem:[#allocation81_spill] sm:$0xff]  ;;  %v8992_v41 = vld [vmem:[#allocation86_spill] sm:$0xff] }
 0x305   :  { %v2155_v0 = vrot.slane %v8982_v51, 4  ;;  %v2014_v37 = vadd.f32 %v1960_v21, %v1819_v38  ;;  %v4482_v61 = vcombine.low %v4010_v9, %v4024_v42  ;;  %v4722_v59 = vadd.f32 %v5482_v12, %v8270_v49 }
 0x306   :  { %v4511_v32 = vcombine.low %v4489_v2, %v4496_v53  ;;  %v4714_v18 = vadd.f32 %v4713_v31, %v8270_v49  ;;  %v4503_v46 = vrot.slane %v4481_v3, %v6925_v58  ;;  %v8984_v20 = vrot.slane %v8983_v27, 5  ;;  %v8995_v31 = vld [vmem:[#allocation4_spill] sm:$0xff] }
 0x307   :  { %v2209_v11 = vadd.f32 %v2155_v0, %v2014_v37  ;;  %v4510_v47 = vrot.slane %v4482_v61, %v6925_v58  ;;  %v4758_v6 = vmax.f32 %v4719_v24, 0.0  ;;  %v4756_v36 = vmax.f32 %v4711_v14, 0.0 }
 0x308   :  { %v2411_v23 = vrot.slane %v8984_v20, 4  ;;  %v4759_v25 = vmax.f32 %v4722_v59, 0.0  ;;  %v4757_v29 = vmax.f32 %v4714_v18, 0.0  ;;  %v8986_v15 = vrot.slane %v8985_v1, 6 }
 0x309   :  { %v2270_v33 = vadd.f32 %v2243_v43, %v2209_v11  ;;  %v4512_v8 = vcombine.low %v4503_v46, %v4510_v47  ;;  %v4519_v13 = vrot.slane %v4511_v32, %v6925_v58  ;;  %v8988_v54 = vrot.slane %v8987_v52, 7 }
 0x30a   :  { %v2606_v60 = vrot.slane %v8986_v15, 4  ;;  %v4768_v26 = vpack.c.bf16 %v4759_v25, %v4758_v6  ;;  %v4767_v44 = vpack.c.bf16 %v4757_v29, %v4756_v36  ;;  %v2889_v35 = vmul.f32 %v8969_v57, %v8989_v16 }
 0x30b   :  { %v2465_v39 = vadd.f32 %v2411_v23, %v2270_v33  ;;  %v4526_v34 = vrot.slane %v4512_v8, %v6925_v58  ;;  %v2801_v63 = vrot.slane %v8988_v54, 4  ;;  %v8991_v10 = vrot.slane %v8990_v22, 5 }
 0x30c   :  { %5507 = vmatprep.mubr.bf16.mxu1 %v4767_v44  ;;  %v8993_v62 = vrot.slane %v8992_v41, 6  ;;  %v8994_v42 = vrot.slane %v8952_v17, 7  ;;  %v4792_v59 = vrot.slane %v8266_v48, %v8995_v31 }
 0x30d   :  { %v2660_v45 = vadd.f32 %v2606_v60, %v2465_v39  ;;  %v4527_v19 = vcombine.low %v4519_v13, %v4526_v34  ;;  %5508 = vmatmul.mubr.bf16.vlgmr.msra.gmra.mrb[40].mxu1 %v4768_v26  ;;  %v3057_v28 = vrot.slane %v8991_v10, 4 }
 0x30e   :  { %v3252_v30 = vrot.slane %v8993_v62, 4  ;;  %v3447_v2 = vrot.slane %v8994_v42, 4 }
 0x30f   :  { %v2855_v56 = vadd.f32 %v2801_v63, %v2660_v45  ;;  %v4606_v50 = vpack.c.bf16 %v4576_v7, %v4527_v19 }
 0x311   :  { %v2916_v40 = vadd.f32 %v2889_v35, %v2855_v56  ;;  %5487 = vmatprep.mubr.bf16.mxu0 %v4606_v50 }
 0x313   :  { %v3111_v21 = vadd.f32 %v3057_v28, %v2916_v40 }
 0x315   :  { %v3306_v38 = vadd.f32 %v3252_v30, %v3111_v21 }
 0x317   :  { %v3501_v4 = vadd.f32 %v3447_v2, %v3306_v38 }
 0x319   :  { %v4079_v51 = vrot.slane %v3501_v4, %v6925_v58 }
 0x31b   :  { %v4086_v57 = vrot.slane %v4079_v51, %v6925_v58 }
 0x31d   :  { %v4583_v7 = vrot.slane %v4086_v57, %v6925_v58 }
 0x31f   :  { %v4590_v0 = vrot.slane %v4583_v7, %v6925_v58 }
 0x321   :  { %v4607_v5 = vpack.c.bf16 %v4590_v0, %v4590_v0 }
 0x323   :  { %5488 = vmatmul.mubr.bf16.gmra.mrb[48].mxu0 %v4607_v5 }
 0x3b6   :  { %v5485_v9 = vpop.f32.mrb[44].mxu0 }
 0x3b7   :  { %v4735_v3 = vadd.f32 %v5485_v9, %v8270_v49  ;;  %v4726_v53 = vpop.f32.mrb[45].mxu0 }
 0x3b8   :  { %v4727_v37 = vadd.f32 %v4726_v53, %v8270_v49  ;;  %v5486_v55 = vpop.f32.mrb[46].mxu0 }
 0x3b9   :  { %v4738_v17 = vadd.f32 %v5486_v55, %v8270_v49  ;;  %v4729_v24 = vpop.f32.mrb[47].mxu0  ;;  %v4762_v12 = vmax.f32 %v4735_v3, 0.0 }
 0x3ba   :  { %v4730_v14 = vadd.f32 %v4729_v24, %v8270_v49  ;;  %v4760_v32 = vmax.f32 %v4727_v37, 0.0 }
 0x3bb   :  { %v4763_v61 = vmax.f32 %v4738_v17, 0.0 }
 0x3bc   :  { %v4761_v11 = vmax.f32 %v4730_v14, 0.0 }
 0x3bd   :  { %v4770_v43 = vpack.c.bf16 %v4763_v61, %v4762_v12 }
 0x3be   :  { %v4769_v58 = vpack.c.bf16 %v4761_v11, %v4760_v32 }
 0x3c0   :  { %5511 = vmatprep.mubr.bf16.mxu1 %v4769_v58 }
 0x3c1   :  { %5512 = vmatmul.mubr.bf16.gmra.mrb[44].mxu1 %v4770_v43 }
 0x3e0   :  { %v5509_v18 = vpop.f32.mrb[40].mxu1 }
 0x3e1   :  { %v4875_v46 = vpop.f32.mrb[41].mxu1  ;;  %v4884_v33 = vadd.f32 %v5509_v18, %v4792_v59 }
 0x3e2   :  { %v5510_v47 = vpop.f32.mrb[42].mxu1  ;;  %v4876_v23 = vadd.f32 %v4875_v46, %v4792_v59 }
 0x3e3   :  { %v4887_v27 = vadd.f32 %v5510_v47, %v4792_v59  ;;  %v4878_v20 = vpop.f32.mrb[43].mxu1 }
 0x3e4   :  { %v4879_v6 = vadd.f32 %v4878_v20, %v4792_v59 }
 0x3e5   :  { %v5260_v36 = vpack.c.bf16 %v4887_v27, %v4884_v33 }
 0x3e6   :  { %v5255_v25 = vpack.c.bf16 %v4879_v6, %v4876_v23 }
 0x3e7   :  { %5277 = vst [vmem:[%s8344_s6 + $0x8] sm:$0xff] %v5260_v36  }
 0x3e8   :  { %5256 = vst [vmem:[%s8344_s6] sm:$0xff] %v5255_v25  }
 0x3f6   :  { %v5489_v29 = vpop.f32.mrb[48].mxu0 }
 0x3f7   :  { %v4751_v48 = vadd.f32 %v5489_v29, %v8270_v49  ;;  %v4742_v8 = vpop.f32.mrb[49].mxu0 }
 0x3f8   :  { %v4743_v39 = vadd.f32 %v4742_v8, %v8270_v49  ;;  %v5490_v1 = vpop.f32.mrb[50].mxu0 }
 0x3f9   :  { %v4745_v15 = vpop.f32.mrb[51].mxu0  ;;  %v4766_v26 = vmax.f32 %v4751_v48, 0.0 }
 0x3fa   :  { %v4746_v60 = vadd.f32 %v4745_v15, %v8270_v49  ;;  %v4764_v44 = vmax.f32 %v4743_v39, 0.0 }
 0x3fb   :  { %v4772_v45 = vpack.c.bf16 %v4766_v26, %v4766_v26 }
 0x3fc   :  { %v4765_v13 = vmax.f32 %v4746_v60, 0.0 }
 0x3fe   :  { %v4771_v34 = vpack.c.bf16 %v4765_v13, %v4764_v44 }
 0x400   :  { %5515 = vmatprep.mubr.bf16.mxu1 %v4771_v34 }
 0x401   :  { %5516 = vmatmul.mubr.bf16.gmra.mrb[48].mxu1 %v4772_v45 }
 0x494   :  { %v5513_v52 = vpop.f32.mrb[44].mxu1 }
 0x495   :  { %v4891_v54 = vpop.f32.mrb[45].mxu1  ;;  %v4900_v19 = vadd.f32 %v5513_v52, %v4792_v59 }
 0x496   :  { %v5514_v63 = vpop.f32.mrb[46].mxu1  ;;  %v4892_v35 = vadd.f32 %v4891_v54, %v4792_v59 }
 0x497   :  { %v4903_v56 = vadd.f32 %v5514_v63, %v4792_v59  ;;  %v4894_v16 = vpop.f32.mrb[47].mxu1 }
 0x498   :  { %v4895_v50 = vadd.f32 %v4894_v16, %v4792_v59 }
 0x499   :  { %v5270_v40 = vpack.c.bf16 %v4903_v56, %v4900_v19 }
 0x49a   :  { %v5265_v22 = vpack.c.bf16 %v4895_v50, %v4892_v35 }
 0x49b   :  { %5279 = vst [vmem:[%s8344_s6 + $0x18] sm:$0xff] %v5270_v40  }
 0x49c   :  { %5278 = vst [vmem:[%s8344_s6 + $0x10] sm:$0xff] %v5265_v22  }
 0x4d4   :  { %v5517_v49 = vpop.f32.mrb[48].mxu1 }
 0x4d5   :  { %v4916_v10 = vadd.f32 %v5517_v49, %v4792_v59  ;;  %v4907_v28 = vpop.f32.mrb[49].mxu1 }
 0x4d6   :  { %v5518_v21 = vpop.f32.mrb[50].mxu1  ;;  %v4908_v30 = vadd.f32 %v4907_v28, %v4792_v59 }
 0x4d7   :  { %v4926_v41 = vpack.c.bf16 %v4916_v10, %v4916_v10  ;;  %v4910_v62 = vpop.f32.mrb[51].mxu1 }
 0x4d8   :  { %v4911_v38 = vadd.f32 %v4910_v62, %v4792_v59 }
 0x4d9   :  { %v4930_v42 = vsel %vm4929_vm12, %v4926_v41, 0 }
 0x4da   :  { %v5241_v2 = vcombine.low %v4930_v42, %v4930_v42  ;;  %v5275_v4 = vpack.c.bf16 %v4911_v38, %v4908_v30 }
 0x4dc   :  { %4980 = vst [vmem:[%s8344_s6 + $0x28] sm:$0xf] %v5241_v2  ;;  %5280 = vst [vmem:[%s8344_s6 + $0x20] sm:$0xff] %v5275_v4  }

</bundles_post_ra>
